<compile_context>
chip_gen: v5e
topology: v5e:2x2
jax: 0.10.0
libtpu: 0.0.40
codegen_flags: <defaults>
</compile_context>

<pallas_src>
import functools
import math

import jax
import jax.numpy as jnp
from jax.experimental import pallas as pl
from jax.experimental.pallas import tpu as pltpu


def _round_up(x, m):
    return (x + m - 1) // m * m


def _dis_kernel(x_ref, w1_ref, b1_ref, w2_ref, b2_ref, o_ref):
    # Layer 1: MXU matmul (f32 accumulate, HIGHEST for f32 parity) + bias + ReLU.
    h = jnp.dot(x_ref[...], w1_ref[...],
                preferred_element_type=jnp.float32,
                precision=jax.lax.Precision.HIGHEST)
    h = jnp.maximum(h + b1_ref[...].astype(jnp.float32), 0.0)
    # Layer 2: packed K/N keep the MXU well utilised.
    y = jnp.dot(h, w2_ref[...],
                preferred_element_type=jnp.float32,
                precision=jax.lax.Precision.HIGHEST)
    o_ref[...] = (y + b2_ref[...].astype(jnp.float32)).astype(o_ref.dtype)


def _block_diag(w, pack):
    """Replicate w (in, out) into a (pack*in, pack*out) block-diagonal matrix."""
    if pack == 1:
        return w
    in_d, out_d = w.shape
    eye = jnp.eye(pack, dtype=w.dtype)
    return jnp.einsum("pq,io->piqo", eye, w).reshape(pack * in_d, pack * out_d)


def _choose_pack(out_dim, mid):
    """Minimum pack makes the packed output a multiple of 128 lanes.  On chips
    with a 256-wide MXU (v6e/v7x) raise it so layer-1's N (= pack*mid) is at
    least 128; on v5e and older keep the minimum (stay memory-bound)."""
    base = 128 // math.gcd(out_dim, 128)
    try:
        kind = jax.devices()[0].device_kind.lower()
    except Exception:
        kind = ""
    narrow_mxu = any(t in kind for t in ("v2", "v3", "v4", "v5"))
    pack = base
    if not narrow_mxu and pack * mid < 128:
        pack = base * (-(-128 // (base * mid)))
    return pack


def _dis_forward_impl(x, w1, b1, w2, b2, *, block_rows=1024):
    """Fused DIS forward: relu(x @ w1 + b1) @ w2 + b2.

    x : (B, hidden_dim);  w1: (hidden, mid), b1: (1, mid);
    w2: (mid, out_dim),   b2: (1, out_dim).  Returns (B, out_dim).
    """
    B, hidden = x.shape
    mid = w1.shape[1]
    out_dim = w2.shape[1]
    assert mid >= 1
    assert w1.shape == (hidden, mid) and b1.shape == (1, mid)
    assert w2.shape == (mid, out_dim) and b2.shape == (1, out_dim)
    dtype = x.dtype

    pack = _choose_pack(out_dim, mid)
    packed_in, packed_mid, packed_out = pack * hidden, pack * mid, pack * out_dim

    # Pad the batch only to a multiple of `pack` (<= pack-1 rows); the partial
    # last grid tile is handled by Pallas masking, not by extra padding.
    b_pad = _round_up(B, pack)
    if b_pad != B:
        x = jnp.pad(x, ((0, b_pad - B), (0, 0)))
    r = b_pad // pack                       # packed rows
    x_packed = x.reshape(r, packed_in)      # row-major reshape: free

    # Row tile: multiple of 8 (sublane) unless a single full-extent block;
    # capped so the grid has >= 2 steps when possible (megacore on v7x).
    if r <= 8:
        tm = r
    else:
        tm = max(8, min(_round_up(max(block_rows, 8), 8),
                        _round_up(pl.cdiv(r, 2), 8)))
    grid = (pl.cdiv(r, tm),)

    # Block-diagonal weights + tiled biases (tiny; built once under jit).
    w1p = _block_diag(w1, pack)             # (packed_in,  packed_mid)
    w2p = _block_diag(w2, pack)             # (packed_mid, packed_out)
    b1p = jnp.tile(b1, (1, pack))           # (1, packed_mid)
    b2p = jnp.tile(b2, (1, pack))           # (1, packed_out)

    itemsize = jnp.dtype(dtype).itemsize
    flops = 2 * r * packed_in * packed_mid + 2 * r * packed_mid * packed_out
    bytes_accessed = itemsize * (
        r * packed_in + r * packed_out
        + w1p.size + w2p.size + b1p.size + b2p.size)

    # Double-buffered VMEM footprint; raise the scoped limit only if a large
    # user tile would exceed the most conservative default (16 MiB on v5e).
    vmem_bytes = itemsize * (
        2 * tm * (packed_in + packed_out)
        + 2 * (w1p.size + w2p.size + b1p.size + b2p.size))
    vmem_limit = int(vmem_bytes) + (4 << 20) if vmem_bytes > (14 << 20) else None

    out_packed = pl.pallas_call(
        _dis_kernel,
        out_shape=jax.ShapeDtypeStruct((r, packed_out), dtype),
        grid=grid,
        in_specs=[
            pl.BlockSpec((tm, packed_in), lambda i: (i, 0)),          # x: tiled
            pl.BlockSpec((packed_in, packed_mid), lambda i: (0, 0)),  # resident
            pl.BlockSpec((1, packed_mid), lambda i: (0, 0)),          # resident
            pl.BlockSpec((packed_mid, packed_out), lambda i: (0, 0)), # resident
            pl.BlockSpec((1, packed_out), lambda i: (0, 0)),          # resident
        ],
        out_specs=pl.BlockSpec((tm, packed_out), lambda i: (i, 0)),
        compiler_params=pltpu.CompilerParams(
            dimension_semantics=("parallel",),
            vmem_limit_bytes=vmem_limit),
        cost_estimate=pl.CostEstimate(
            flops=flops, transcendentals=0, bytes_accessed=bytes_accessed),
    )(x_packed, w1p, b1p, w2p, b2p)

    # Unpack (r, pack*out) -> (b_pad, out) and drop the pad rows.
    return out_packed.reshape(b_pad, out_dim)[:B]


dis_forward = jax.jit(_dis_forward_impl, static_argnames=("block_rows",))


def init_dis_params(key, hidden_dim, out_dim, dtype=jnp.float32):
    """Deterministic init mimicking torch.nn.Linear default (+/- 1/sqrt(fan_in))."""
    mid = hidden_dim // 8
    k1, k2, k3, k4 = jax.random.split(key, 4)
    lim1 = 1.0 / (hidden_dim ** 0.5)
    lim2 = 1.0 / (mid ** 0.5)
    w1 = jax.random.uniform(k1, (hidden_dim, mid), dtype, -lim1, lim1)
    b1 = jax.random.uniform(k2, (1, mid), dtype, -lim1, lim1)
    w2 = jax.random.uniform(k3, (mid, out_dim), dtype, -lim2, lim2)
    b2 = jax.random.uniform(k4, (1, out_dim), dtype, -lim2, lim2)
    return w1, b1, w2, b2


if __name__ == "__main__":
    # DIS(hidden_dim=32, hash_dim=16, out_dim=8); hash_dim is stored by the
    # torch module but unused in forward.
    batch, hidden_dim, out_dim = 2, 32, 8

    key = jax.random.PRNGKey(0)
    kx, kp = jax.random.split(key)
    x = jax.random.normal(kx, (batch, hidden_dim), jnp.float32)
    w1, b1, w2, b2 = init_dis_params(kp, hidden_dim, out_dim)

    def ref_fn(xv):
        return jnp.maximum(xv @ w1 + b1, 0.0) @ w2 + b2

    out = jax.block_until_ready(dis_forward(x, w1, b1, w2, b2))
    assert out.shape == (batch, out_dim)
    assert jnp.allclose(out, ref_fn(x), atol=1e-5, rtol=1e-5)

    # Larger, pack-unaligned batch: exercises the pad-to-pack path, the
    # multi-step pipelined grid and the masked partial last tile.
    x2 = jax.random.normal(jax.random.PRNGKey(1), (3333, hidden_dim), jnp.float32)
    out2 = jax.block_until_ready(dis_forward(x2, w1, b1, w2, b2))
    assert out2.shape == (3333, out_dim)
    assert jnp.allclose(out2, ref_fn(x2), atol=1e-5, rtol=1e-5)

    print("KERNEL_OK")
</pallas_src>

<mosaic_0001>
module attributes {stable_mosaic.version = 11 : i64} {
  func.func @_dis_kernel(%arg0: i32, %arg1: memref<1x1024xf32, #tpu.memory_space<vmem>>, %arg2: memref<1024x128xf32, #tpu.memory_space<vmem>>, %arg3: memref<1x128xf32, #tpu.memory_space<vmem>>, %arg4: memref<128x256xf32, #tpu.memory_space<vmem>>, %arg5: memref<1x256xf32, #tpu.memory_space<vmem>>, %arg6: memref<1x256xf32, #tpu.memory_space<vmem>>) attributes {dimension_semantics = [#tpu.dimension_semantics<parallel>], iteration_bounds = array<i64: 1>, scalar_prefetch = 0 : i64, scratch_operands = 0 : i64, tpu.core_type = #tpu.core_type<tc>, window_params = [{transform_indices = @transform_0, window_bounds = array<i64: 1, 1024>}, {pipeline_mode = #tpu.pipeline_mode<synchronous>, transform_indices = @transform_1, window_bounds = array<i64: 1024, 128>}, {pipeline_mode = #tpu.pipeline_mode<synchronous>, transform_indices = @transform_2, window_bounds = array<i64: 1, 128>}, {pipeline_mode = #tpu.pipeline_mode<synchronous>, transform_indices = @transform_3, window_bounds = array<i64: 128, 256>}, {pipeline_mode = #tpu.pipeline_mode<synchronous>, transform_indices = @transform_4, window_bounds = array<i64: 1, 256>}, {transform_indices = @transform_5, window_bounds = array<i64: 1, 256>}]} {
    %c0 = arith.constant 0 : index
    %c0_0 = arith.constant 0 : index
    %0 = vector.load %arg1[%c0, %c0_0] : memref<1x1024xf32, #tpu.memory_space<vmem>>, vector<1x1024xf32>
    %c0_1 = arith.constant 0 : index
    %c0_2 = arith.constant 0 : index
    %1 = vector.load %arg2[%c0_1, %c0_2] : memref<1024x128xf32, #tpu.memory_space<vmem>>, vector<1024x128xf32>
    %cst = arith.constant dense<0.000000e+00> : vector<1x128xf32>
    %2 = tpu.matmul %0, %1, %cst {dimension_numbers = #tpu.dot_dimension_numbers<[1], [0], [0], [1], [0, 0, 1, 1], [], []>, precision = #tpu.contract_precision<fp32>} : vector<1x1024xf32>, vector<1024x128xf32>, vector<1x128xf32> -> vector<1x128xf32>
    %c0_3 = arith.constant 0 : index
    %c0_4 = arith.constant 0 : index
    %3 = vector.load %arg3[%c0_3, %c0_4] : memref<1x128xf32, #tpu.memory_space<vmem>>, vector<1x128xf32>
    %4 = arith.addf %2, %3 : vector<1x128xf32>
    %cst_5 = arith.constant 0.000000e+00 : f32
    %5 = vector.broadcast %cst_5 : f32 to vector<1x128xf32>
    %6 = arith.maximumf %4, %5 : vector<1x128xf32>
    %c0_6 = arith.constant 0 : index
    %c0_7 = arith.constant 0 : index
    %7 = vector.load %arg4[%c0_6, %c0_7] : memref<128x256xf32, #tpu.memory_space<vmem>>, vector<128x256xf32>
    %cst_8 = arith.constant dense<0.000000e+00> : vector<1x256xf32>
    %8 = tpu.matmul %6, %7, %cst_8 {dimension_numbers = #tpu.dot_dimension_numbers<[1], [0], [0], [1], [0, 0, 1, 1], [], []>, precision = #tpu.contract_precision<fp32>} : vector<1x128xf32>, vector<128x256xf32>, vector<1x256xf32> -> vector<1x256xf32>
    %c0_9 = arith.constant 0 : index
    %c0_10 = arith.constant 0 : index
    %9 = vector.load %arg5[%c0_9, %c0_10] : memref<1x256xf32, #tpu.memory_space<vmem>>, vector<1x256xf32>
    %10 = arith.addf %8, %9 : vector<1x256xf32>
    %c0_11 = arith.constant 0 : index
    %c0_12 = arith.constant 0 : index
    %11 = vector.load %arg6[%c0_11, %c0_12] : memref<1x256xf32, #tpu.memory_space<vmem>>, vector<1x256xf32>
    tpu.vector_store %arg6[%c0_11, %c0_12], %10 {strides = array<i32>} : memref<1x256xf32, #tpu.memory_space<vmem>>, vector<1x256xf32>,
    return
  }
  func.func @transform_0(%arg0: i32) -> (i32, i32) {
    %c0_i32 = arith.constant 0 : i32
    %c0_i32_0 = arith.constant 0 : i32
    return %arg0, %c0_i32 : i32, i32
  }
  func.func @transform_1(%arg0: i32) -> (i32, i32) {
    %c0_i32 = arith.constant 0 : i32
    %c0_i32_0 = arith.constant 0 : i32
    %c0_i32_1 = arith.constant 0 : i32
    return %c0_i32, %c0_i32_0 : i32, i32
  }
  func.func @transform_2(%arg0: i32) -> (i32, i32) {
    %c0_i32 = arith.constant 0 : i32
    %c0_i32_0 = arith.constant 0 : i32
    %c0_i32_1 = arith.constant 0 : i32
    return %c0_i32, %c0_i32_0 : i32, i32
  }
  func.func @transform_3(%arg0: i32) -> (i32, i32) {
    %c0_i32 = arith.constant 0 : i32
    %c0_i32_0 = arith.constant 0 : i32
    %c0_i32_1 = arith.constant 0 : i32
    return %c0_i32, %c0_i32_0 : i32, i32
  }
  func.func @transform_4(%arg0: i32) -> (i32, i32) {
    %c0_i32 = arith.constant 0 : i32
    %c0_i32_0 = arith.constant 0 : i32
    %c0_i32_1 = arith.constant 0 : i32
    return %c0_i32, %c0_i32_0 : i32, i32
  }
  func.func @transform_5(%arg0: i32) -> (i32, i32) {
    %c0_i32 = arith.constant 0 : i32
    %c0_i32_0 = arith.constant 0 : i32
    return %arg0, %c0_i32 : i32, i32
  }
}

</mosaic_0001>

<bundles_post_ra>
// kernel: _dis_forward_impl.1
= control target key start
LH: loop header
LB: loop body
LE: loop exit
PB: predicated region body
PF: predicated region fallthrough
CT: control target
= control target key end

     0   :  { %vm3619_vm0 = vcmask 1040384   ;;  %s6708_s1 = inlined_call_operand.vmem [shape: f32[1024,128], index: 1, kind: input, shape index: {}]   ;;  %s6709_s0 = inlined_call_operand.vmem [shape: f32[1,1024], index: 0, kind: input, shape index: {}]   ;;  %s6710_s2 = inlined_call_operand.vmem [shape: f32[1,128], index: 2, kind: input, shape index: {}]   ;;  %s6711_s3 = inlined_call_operand.vmem [shape: f32[128,256], index: 3, kind: input, shape index: {}]   ;;  %s6712_s4 = inlined_call_operand.vmem [shape: f32[1,256], index: 4, kind: input, shape index: {}]   ;;  %s6713_s5 = inlined_call_operand.vmem [shape: f32[1,256], index: 5, kind: output, shape index: {}]  }
   0x1   :  { %v36_v0 = vld [vmem:[%s6708_s1 + $0x78] sm:$0xff]  ;;  %v35_v1 = vld [vmem:[%s6708_s1 + $0x70] sm:$0xff]  ;;  %v34_v2 = vld [vmem:[%s6708_s1 + $0x68] sm:$0xff] }
   0x2   :  { %v3672_v3 = vand.u32 4294901760, %v36_v0  ;;  %v3674_v4 = vand.u32 4294901760, %v35_v1  ;;  %v3676_v5 = vand.u32 4294901760, %v34_v2  ;;  %v33_v6 = vld [vmem:[%s6708_s1 + $0x60] sm:$0xff]  ;;  %v32_v7 = vld [vmem:[%s6708_s1 + $0x58] sm:$0xff]  ;;  %v31_v8 = vld [vmem:[%s6708_s1 + $0x50] sm:$0xff] }
   0x3   :  { %v3687_v9 = vand.u32 4294901760, %v33_v6  ;;  %v3689_v10 = vand.u32 4294901760, %v32_v7  ;;  %v3691_v11 = vand.u32 4294901760, %v31_v8  ;;  %v30_v12 = vld [vmem:[%s6708_s1 + $0x48] sm:$0xff]  ;;  %v29_v13 = vld [vmem:[%s6708_s1 + $0x40] sm:$0xff]  ;;  %v28_v21 = vld [vmem:[%s6708_s1 + $0x38] sm:$0xff] }
   0x4   :  { %168 = vmatpush.msra.mxu0 %v3672_v3  ;;  %v3701_v14 = vsub.f32 %v36_v0, %v3672_v3  ;;  %v3704_v15 = vsub.f32 %v35_v1, %v3674_v4  ;;  %364 = vmatpush.msra.mxu3 %v3672_v3  ;;  %v3708_v16 = vsub.f32 %v34_v2, %v3676_v5  ;;  %v3710_v17 = vand.u32 4294901760, %v30_v12  ;;  %v27_v26 = vld [vmem:[%s6708_s1 + $0x30] sm:$0xff]  ;;  %v26_v36 = vld [vmem:[%s6708_s1 + $0x28] sm:$0xff]  ;;  %v25_v42 = vld [vmem:[%s6708_s1 + $0x20] sm:$0xff] }
   0x5   :  { %v3713_v18 = vsub.f32 %v33_v6, %v3687_v9  ;;  %v3716_v19 = vsub.f32 %v32_v7, %v3689_v10  ;;  %v3718_v20 = vand.u32 4294901760, %v29_v13  ;;  %v3729_v25 = vsub.f32 %v31_v8, %v3691_v11  ;;  %v24_v48 = vld [vmem:[%s6708_s1 + $0x18] sm:$0xff]  ;;  %v23_v54 = vld [vmem:[%s6708_s1 + $0x10] sm:$0xff]  ;;  %v22_v59 = vld [vmem:[%s6708_s1 + $0x8] sm:$0xff] }
   0x6   :  { %170 = vmatpush.msra.mxu0 %v3674_v4  ;;  %311 = vmatpush.msra.mxu2 %v3701_v14  ;;  %v210_v22 = vand.u32 4294901760, %v3701_v14  ;;  %v6729_v23 = vand.u32 4294901760, %v3704_v15  ;;  %v6727_v24 = vand.u32 4294901760, %v3708_v16  ;;  %v3738_v29 = vsub.f32 %v30_v12, %v3710_v17  ;;  %v52_v60 = vld [vmem:[%s6708_s1 + $0xf8] sm:$0xff]  ;;  %v51_v2 = vld [vmem:[%s6708_s1 + $0xf0] sm:$0xff]  ;;  %v21_v7 = vld [vmem:[%s6708_s1] sm:$0xff] }
   0x7   :  { %366 = vmatpush.msra.mxu3 %v3674_v4  ;;  %v6726_v27 = vand.u32 4294901760, %v3713_v18  ;;  %v6723_v28 = vand.u32 4294901760, %v3716_v19  ;;  %v3751_v33 = vand.u32 4294901760, %v28_v21  ;;  %v3754_v34 = vand.u32 4294901760, %v27_v26 }
   0x8   :  { %172 = vmatpush.msra.mxu0 %v3676_v5  ;;  %314 = vmatpush.msra.mxu2 %v3704_v15  ;;  %v211_v30 = vsub.f32 %v3701_v14, %v210_v22  ;;  %v217_v31 = vsub.f32 %v3704_v15, %v6729_v23  ;;  %v223_v32 = vsub.f32 %v3708_v16, %v6727_v24  ;;  %v6722_v40 = vand.u32 4294901760, %v3729_v25  ;;  %v43_v23 = vld [vmem:[%s6708_s1 + $0xb0] sm:$0xff] }
   0x9   :  { %368 = vmatpush.msra.mxu3 %v3676_v5  ;;  %v3757_v35 = vsub.f32 %v29_v13, %v3718_v20  ;;  %v229_v39 = vsub.f32 %v3713_v18, %v6726_v27  ;;  %v235_v41 = vsub.f32 %v3716_v19, %v6723_v28  ;;  %v3776_v44 = vand.u32 4294901760, %v26_v36 }
   0xa   :  { %174 = vmatpush.msra.mxu0 %v3687_v9  ;;  %v212_v37 = vand.u32 4294901760, %v211_v30  ;;  %317 = vmatpush.msra.mxu2 %v3708_v16  ;;  %v218_v38 = vand.u32 4294901760, %v217_v31  ;;  %v224_v43 = vand.u32 4294901760, %v223_v32  ;;  %v6721_v45 = vand.u32 4294901760, %v3738_v29  ;;  %v50_v32 = vld [vmem:[%s6708_s1 + $0xe8] sm:$0xff] }
   0xb   :  { %370 = vmatpush.msra.mxu3 %v3687_v9  ;;  %v3780_v46 = vsub.f32 %v28_v21, %v3751_v33  ;;  %v6719_v47 = vand.u32 4294901760, %v3757_v35  ;;  %v230_v49 = vand.u32 4294901760, %v229_v39  ;;  %v241_v50 = vsub.f32 %v3729_v25, %v6722_v40 }
   0xc   :  { %176 = vmatpush.msra.mxu0 %v3689_v10  ;;  %213 = vmatpush.msra.mxu1 %v212_v37  ;;  %v3792_v51 = vand.u32 4294901760, %v25_v42  ;;  %v3795_v52 = vsub.f32 %v27_v26, %v3754_v34  ;;  %v236_v53 = vand.u32 4294901760, %v235_v41  ;;  %v247_v55 = vsub.f32 %v3738_v29, %v6721_v45  ;;  %v49_v41 = vld [vmem:[%s6708_s1 + $0xe0] sm:$0xff] }
   0xd   :  { %320 = vmatpush.msra.mxu2 %v3713_v18  ;;  %372 = vmatpush.msra.mxu3 %v3689_v10  ;;  %v3806_v56 = vand.u32 4294901760, %v24_v48  ;;  %v6717_v57 = vand.u32 4294901760, %v3780_v46  ;;  %v3810_v58 = vsub.f32 %v26_v36, %v3776_v44  ;;  %v253_v61 = vsub.f32 %v3757_v35, %v6719_v47 }
   0xe   :  { %178 = vmatpush.msra.mxu0 %v3691_v11  ;;  %219 = vmatpush.msra.mxu1 %v218_v38  ;;  %v242_v62 = vand.u32 4294901760, %v241_v50  ;;  %v3824_v63 = vand.u32 4294901760, %v23_v54  ;;  %v6716_v0 = vand.u32 4294901760, %v3795_v52  ;;  %v3828_v1 = vsub.f32 %v25_v42, %v3792_v51 }
   0xf   :  { %323 = vmatpush.msra.mxu2 %v3716_v19  ;;  %374 = vmatpush.msra.mxu3 %v3691_v11  ;;  %v3835_v6 = vand.u32 4294901760, %v22_v59  ;;  %v3840_v8 = vand.u32 4294901760, %v52_v60  ;;  %v248_v12 = vand.u32 4294901760, %v247_v55  ;;  %v259_v13 = vsub.f32 %v3780_v46, %v6717_v57 }
  0x10   :  { %180 = vmatpush.msra.mxu0 %v3710_v17  ;;  %225 = vmatpush.msra.mxu1 %v224_v43  ;;  %v6715_v21 = vand.u32 4294901760, %v3810_v58  ;;  %v3848_v26 = vsub.f32 %v24_v48, %v3806_v56  ;;  %v254_v30 = vand.u32 4294901760, %v253_v61  ;;  %v3852_v31 = vand.u32 4294901760, %v51_v2 }
  0x11   :  { %326 = vmatpush.msra.mxu2 %v3729_v25  ;;  %376 = vmatpush.msra.mxu3 %v3710_v17  ;;  %6816 = vst [vmem:[#allocation2_spill] sm:$0xff] %v3840_v8  ;;  %v265_v36 = vsub.f32 %v3795_v52, %v6716_v0  ;;  %v3861_v37 = vand.u32 4294901760, %v21_v7  ;;  %v6714_v38 = vand.u32 4294901760, %v3828_v1  ;;  %v3865_v39 = vsub.f32 %v23_v54, %v3824_v63 }
  0x12   :  { %182 = vmatpush.msra.mxu0 %v3718_v20  ;;  %231 = vmatpush.msra.mxu1 %v230_v49  ;;  %v3873_v42 = vsub.f32 %v22_v59, %v3835_v6  ;;  %v3876_v43 = vsub.f32 %v52_v60, %v3840_v8  ;;  %v260_v48 = vand.u32 4294901760, %v259_v13  ;;  %v271_v49 = vsub.f32 %v3810_v58, %v6715_v21  ;;  %v48_v59 = vld [vmem:[%s6708_s1 + $0xd8] sm:$0xff] }
  0x13   :  { %329 = vmatpush.msra.mxu2 %v3738_v29  ;;  %378 = vmatpush.msra.mxu3 %v3718_v20  ;;  %6817 = vst [vmem:[#allocation3_spill] sm:$0xff] %v3861_v37  ;;  %v6718_v50 = vand.u32 4294901760, %v3848_v26  ;;  %v3888_v54 = vsub.f32 %v51_v2, %v3852_v31  ;;  %v3890_v55 = vand.u32 4294901760, %v49_v41  ;;  %v266_v60 = vand.u32 4294901760, %v265_v36 }
  0x14   :  { %184 = vmatpush.msra.mxu0 %v3751_v33  ;;  %237 = vmatpush.msra.mxu1 %v236_v53  ;;  %v3883_v53 = vand.u32 4294901760, %v50_v32  ;;  %v277_v61 = vsub.f32 %v3828_v1, %v6714_v38  ;;  %v6724_v2 = vand.u32 4294901760, %v3873_v42  ;;  %v6725_v13 = vand.u32 4294901760, %v3876_v43 }
  0x15   :  { %332 = vmatpush.msra.mxu2 %v3757_v35  ;;  %380 = vmatpush.msra.mxu3 %v3751_v33  ;;  %v272_v36 = vand.u32 4294901760, %v271_v49  ;;  %v3917_v21 = vand.u32 4294901760, %v48_v59  ;;  %v6728_v0 = vand.u32 4294901760, %v3888_v54  ;;  %v3923_v57 = vsub.f32 %v49_v41, %v3890_v55  ;;  %v45_v41 = vld [vmem:[%s6708_s1 + $0xc0] sm:$0xff] }
  0x16   :  { %186 = vmatpush.msra.mxu0 %v3754_v34  ;;  %243 = vmatpush.msra.mxu1 %v242_v62  ;;  %v6720_v62 = vand.u32 4294901760, %v3865_v39  ;;  %v3915_v38 = vsub.f32 %v50_v32, %v3883_v53  ;;  %v278_v32 = vand.u32 4294901760, %v277_v61  ;;  %v552_v61 = vsub.f32 %v3876_v43, %v6725_v13 }
  0x17   :  { %335 = vmatpush.msra.mxu2 %v3780_v46  ;;  %382 = vmatpush.msra.mxu3 %v3754_v34  ;;  %v3949_v40 = vsub.f32 %v48_v59, %v3917_v21  ;;  %v3959_v27 = vand.u32 4294901760, %v45_v41 }
  0x18   :  { %188 = vmatpush.msra.mxu0 %v3776_v44  ;;  %249 = vmatpush.msra.mxu1 %v248_v12  ;;  %v3901_v12 = vsub.f32 %v21_v7, %v3861_v37  ;;  %v283_v7 = vsub.f32 %v3848_v26, %v6718_v50  ;;  %v289_v49 = vsub.f32 %v3865_v39, %v6720_v62  ;;  %v6730_v45 = vand.u32 4294901760, %v3915_v38 }
  0x19   :  { %338 = vmatpush.msra.mxu2 %v3795_v52  ;;  %384 = vmatpush.msra.mxu3 %v3776_v44  ;;  %v553_v13 = vand.u32 4294901760, %v552_v61  ;;  %v6819_v61 = vand.u32 4294901760, %v3923_v57 }
  0x1a   :  { %190 = vmatpush.msra.mxu0 %v3792_v51  ;;  %255 = vmatpush.msra.mxu1 %v254_v30  ;;  %v47_v30 = vld [vmem:[%s6708_s1 + $0xd0] sm:$0xff]  ;;  %v6731_v50 = vand.u32 4294901760, %v3901_v12  ;;  %v284_v62 = vand.u32 4294901760, %v283_v7  ;;  %v290_v59 = vand.u32 4294901760, %v289_v49  ;;  %v42_v49 = vld [vmem:[%s6708_s1 + $0xa8] sm:$0xff] }
  0x1b   :  { %341 = vmatpush.msra.mxu2 %v3810_v58  ;;  %386 = vmatpush.msra.mxu3 %v3792_v51  ;;  %v3933_v47 = vand.u32 4294901760, %v47_v30 }
  0x1c   :  { %192 = vmatpush.msra.mxu0 %v3806_v56  ;;  %261 = vmatpush.msra.mxu1 %v260_v48  ;;  %v46_v48 = vld [vmem:[%s6708_s1 + $0xc8] sm:$0xff]  ;;  %v301_v7 = vsub.f32 %v3901_v12, %v6731_v50  ;;  %v3997_v50 = vsub.f32 %v45_v41, %v3959_v27  ;;  %v4013_v41 = vld [vmem:[%s6709_s0] sm:$0xff] }
  0x1d   :  { %344 = vmatpush.msra.mxu2 %v3828_v1  ;;  %388 = vmatpush.msra.mxu3 %v3806_v56  ;;  %v3951_v28 = vand.u32 4294901760, %v46_v48  ;;  %v3969_v24 = vsub.f32 %v47_v30, %v3933_v47 }
  0x1e   :  { %194 = vmatpush.msra.mxu0 %v3824_v63  ;;  %267 = vmatpush.msra.mxu1 %v266_v60  ;;  %v295_v60 = vsub.f32 %v3873_v42, %v6724_v2  ;;  %v558_v2 = vsub.f32 %v3888_v54, %v6728_v0 }
  0x1f   :  { %347 = vmatpush.msra.mxu2 %v3848_v26  ;;  %390 = vmatpush.msra.mxu3 %v3824_v63  ;;  %v3983_v14 = vsub.f32 %v46_v48, %v3951_v28  ;;  %v302_v48 = vand.u32 4294901760, %v301_v7  ;;  %v6821_v7 = vand.u32 4294901760, %v3949_v40 }
  0x20   :  { %196 = vmatpush.msra.mxu0 %v3835_v6  ;;  %273 = vmatpush.msra.mxu1 %v272_v36  ;;  %v44_v36 = vld [vmem:[%s6708_s1 + $0xb8] sm:$0xff]  ;;  %v296_v0 = vand.u32 4294901760, %v295_v60  ;;  %v6818_v60 = vand.u32 4294901760, %v3704_v15  ;;  %v6820_v15 = vand.u32 4294901760, %v3708_v16 }
  0x21   :  { %350 = vmatpush.msra.mxu2 %v3865_v39  ;;  %392 = vmatpush.msra.mxu3 %v3835_v6  ;;  %v576_v16 = vsub.f32 %v3949_v40, %v6821_v7 }
  0x22   :  { %198 = vmatpush.msra.mxu0 %v3861_v37  ;;  %279 = vmatpush.msra.mxu1 %v278_v32  ;;  %v564_v32 = vsub.f32 %v3915_v38, %v6730_v45  ;;  %v570_v45 = vsub.f32 %v3923_v57, %v6819_v61 }
  0x23   :  { %353 = vmatpush.msra.mxu2 %v3873_v42  ;;  %394 = vmatpush.msra.mxu3 %v3861_v37  ;;  %v4001_v37 = vand.u32 4294901760, %v43_v23 }
  0x24   :  { %405 = vmatpush.msrb.mxu0 %v210_v22  ;;  %285 = vmatpush.msra.mxu1 %v284_v62  ;;  %v3985_v22 = vand.u32 4294901760, %v44_v36  ;;  %v559_v62 = vand.u32 4294901760, %v558_v2  ;;  %v4005_v2 = vand.u32 4294901760, %v42_v49  ;;  %v571_v30 = vand.u32 4294901760, %v570_v45 }
  0x25   :  { %356 = vmatpush.msra.mxu2 %v3901_v12  ;;  %554 = vmatpush.msrb.mxu3 %v553_v13  ;;  %v6735_v13 = vand.u32 4294901760, %v3983_v14  ;;  %v151_v45 = vperm.slane %v4013_v41, 0 }
  0x26   :  { %409 = vmatpush.msrb.mxu0 %v6818_v60  ;;  %291 = vmatpush.msra.mxu1 %v290_v59  ;;  %v41_v60 = vld [vmem:[%s6708_s1 + $0xa0] sm:$0xff]  ;;  %v565_v59 = vand.u32 4294901760, %v564_v32  ;;  %v4021_v61 = vsub.f32 %v44_v36, %v3985_v22  ;;  %v6823_v32 = vand.u32 4294901760, %v3969_v24  ;;  %v4034_v36 = vsub.f32 %v43_v23, %v4001_v37 }
  0x27   :  { %509 = vmatpush.msrb.mxu2 %v3840_v8  ;;  %560 = vmatpush.msrb.mxu3 %v559_v62  ;;  %v6824_v62 = vand.u32 4294901760, %v3716_v19  ;;  %v588_v23 = vsub.f32 %v3983_v14, %v6735_v13  ;;  %v6825_v19 = vand.u32 4294901760, %v3729_v25  ;;  %v4066_v25 = vand.u32 4294901760, %v151_v45 }
  0x28   :  { %413 = vmatpush.msrb.mxu0 %v6820_v15  ;;  %297 = vmatpush.msra.mxu1 %v296_v0  ;;  %v6822_v15 = vand.u32 4294901760, %v3713_v18  ;;  %v40_v0 = vld [vmem:[%s6708_s1 + $0x98] sm:$0xff]  ;;  %v582_v7 = vsub.f32 %v3969_v24, %v6823_v32  ;;  %v4036_v18 = vand.u32 4294901760, %v41_v60  ;;  %v6736_v32 = vand.u32 4294901760, %v4021_v61 }
  0x29   :  { %511 = vmatpush.msrb.mxu2 %v3852_v31  ;;  %566 = vmatpush.msrb.mxu3 %v565_v59  ;;  %v4050_v8 = vand.u32 4294901760, %v40_v0  ;;  %v39_v59 = vld [vmem:[%s6708_s1 + $0x90] sm:$0xff] }
  0x2a   :  { %417 = vmatpush.msrb.mxu0 %v6822_v15  ;;  %303 = vmatpush.msra.mxu1 %v302_v48  ;;  %v4043_v48 = vsub.f32 %v42_v49, %v4005_v2  ;;  %v577_v15 = vand.u32 4294901760, %v576_v16  ;;  %v583_v16 = vand.u32 4294901760, %v582_v7  ;;  %v4064_v13 = vsub.f32 %v41_v60, %v4036_v18 }
  0x2b   :  { %513 = vmatpush.msrb.mxu2 %v3883_v53  ;;  %572 = vmatpush.msrb.mxu3 %v571_v30  ;;  %v589_v30 = vand.u32 4294901760, %v588_v23  ;;  %v600_v60 = vsub.f32 %v4021_v61, %v6736_v32  ;;  %v4079_v7 = vand.u32 4294901760, %v39_v59  ;;  %v4096_v32 = vsub.f32 %v151_v45, %v4066_v25 }
  0x2c   :  { %421 = vmatpush.msrb.mxu0 %v6824_v62  ;;  %472 = vmatpush.msrb.mxu1 %v3672_v3  ;;  %v6826_v3 = vand.u32 4294901760, %v3997_v50  ;;  %v6737_v62 = vand.u32 4294901760, %v4034_v36 }
  0x2d   :  { %515 = vmatpush.msrb.mxu2 %v3890_v55  ;;  %578 = vmatpush.msrb.mxu3 %v577_v15  ;;  %v37_v15 = vld [vmem:[%s6708_s1 + $0x80] sm:$0xff]  ;;  %v4109_v45 = vsub.f32 %v39_v59, %v4079_v7 }
  0x2e   :  { %425 = vmatpush.msrb.mxu0 %v6825_v19  ;;  %474 = vmatpush.msrb.mxu1 %v3674_v4  ;;  %v594_v49 = vsub.f32 %v3997_v50, %v6826_v3  ;;  %v6827_v4 = vand.u32 4294901760, %v3738_v29  ;;  %v611_v19 = vand.u32 4294901760, %v4043_v48  ;;  %v38_v3 = vld [vmem:[%s6708_s1 + $0x88] sm:$0xff]  ;;  %v4082_v29 = vsub.f32 %v40_v0, %v4050_v8 }
  0x2f   :  { %517 = vmatpush.msrb.mxu2 %v3917_v21  ;;  %584 = vmatpush.msrb.mxu3 %v583_v16  ;;  %v606_v23 = vsub.f32 %v4034_v36, %v6737_v62  ;;  %v617_v0 = vand.u32 4294901760, %v4064_v13  ;;  %v601_v16 = vand.u32 4294901760, %v600_v60  ;;  %v4111_v62 = vand.u32 4294901760, %v37_v15 }
  0x30   :  { %429 = vmatpush.msrb.mxu0 %v6827_v4  ;;  %476 = vmatpush.msrb.mxu1 %v3676_v5  ;;  %v6828_v5 = vand.u32 4294901760, %v3757_v35  ;;  %v595_v4 = vand.u32 4294901760, %v594_v49  ;;  %v4098_v35 = vand.u32 4294901760, %v38_v3  ;;  %v612_v49 = vsub.f32 %v4043_v48, %v611_v19 }
  0x31   :  { %519 = vmatpush.msrb.mxu2 %v3933_v47  ;;  %590 = vmatpush.msrb.mxu3 %v589_v30  ;;  %v618_v30 = vsub.f32 %v4064_v13, %v617_v0  ;;  %v201_v60 = vand.u32 4294901760, %v4096_v32 }
  0x32   :  { %433 = vmatpush.msrb.mxu0 %v6828_v5  ;;  %478 = vmatpush.msrb.mxu1 %v3687_v9  ;;  %v6829_v9 = vand.u32 4294901760, %v3780_v46  ;;  %v623_v5 = vand.u32 4294901760, %v4082_v29  ;;  %v6830_v46 = vand.u32 4294901760, %v3795_v52  ;;  %v4122_v59 = vsub.f32 %v38_v3, %v4098_v35 }
  0x33   :  { %521 = vmatpush.msrb.mxu2 %v3951_v28  ;;  %596 = vmatpush.msrb.mxu3 %v595_v4  ;;  %v613_v52 = vand.u32 4294901760, %v612_v49  ;;  %v629_v4 = vand.u32 4294901760, %v4109_v45  ;;  %v152_v3 = vperm.slane %v4013_v41, 1  ;;  %v202_v49 = vsub.f32 %v4096_v32, %v201_v60 }
  0x34   :  { %437 = vmatpush.msrb.mxu0 %v6829_v9  ;;  %480 = vmatpush.msrb.mxu1 %v3689_v10  ;;  %v607_v10 = vand.u32 4294901760, %v606_v23  ;;  %v6831_v9 = vand.u32 4294901760, %v3810_v58  ;;  %v4133_v23 = vsub.f32 %v37_v15, %v4111_v62  ;;  %v6832_v58 = vand.u32 4294901760, %v3828_v1 }
  0x35   :  { %523 = vmatpush.msrb.mxu2 %v3959_v27  ;;  %602 = vmatpush.msrb.mxu3 %v601_v16  ;;  %v635_v16 = vand.u32 4294901760, %v4122_v59 }
  0x36   :  { %441 = vmatpush.msrb.mxu0 %v6830_v46  ;;  %482 = vmatpush.msrb.mxu1 %v3691_v11  ;;  %v624_v11 = vsub.f32 %v4082_v29, %v623_v5  ;;  %v6833_v46 = vand.u32 4294901760, %v3848_v26  ;;  %v641_v15 = vand.u32 4294901760, %v4133_v23 }
  0x37   :  { %525 = vmatpush.msrb.mxu2 %v3985_v22  ;;  %608 = vmatpush.msrb.mxu3 %v607_v10  ;;  %v4150_v10 = vand.u32 4294901760, %v152_v3  ;;  %v636_v26 = vsub.f32 %v4122_v59, %v635_v16 }
  0x38   :  { %445 = vmatpush.msrb.mxu0 %v6831_v9  ;;  %484 = vmatpush.msrb.mxu1 %v3710_v17  ;;  %v619_v17 = vand.u32 4294901760, %v618_v30  ;;  %v625_v1 = vand.u32 4294901760, %v624_v11  ;;  %v6834_v30 = vand.u32 4294901760, %v3865_v39  ;;  %v6835_v9 = vand.u32 4294901760, %v3873_v42 }
  0x39   :  { %527 = vmatpush.msrb.mxu2 %v4001_v37  ;;  %614 = vmatpush.msrb.mxu3 %v613_v52  ;;  %v4167_v52 = vsub.f32 %v152_v3, %v4150_v10  ;;  %v6836_v11 = vand.u32 4294901760, %v3901_v12  ;;  %v6839_v12 = vld [vmem:[#allocation2_spill] sm:$0xff] }
  0x3a   :  { %449 = vmatpush.msrb.mxu0 %v6832_v58  ;;  %486 = vmatpush.msrb.mxu1 %v3718_v20  ;;  %v630_v20 = vsub.f32 %v4109_v45, %v629_v4 }
  0x3b   :  { %529 = vmatpush.msrb.mxu2 %v4005_v2  ;;  %620 = vmatpush.msrb.mxu3 %v619_v17  ;;  %v542_v3 = vand.u32 4294901760, %v4167_v52 }
  0x3c   :  { %453 = vmatpush.msrb.mxu0 %v6833_v46  ;;  %488 = vmatpush.msrb.mxu1 %v3751_v33  ;;  %v203_v33 = vand.u32 4294901760, %v202_v49  ;;  %v631_v39 = vand.u32 4294901760, %v630_v20 }
  0x3d   :  { %531 = vmatpush.msrb.mxu2 %v4036_v18  ;;  %626 = vmatpush.msrb.mxu3 %v625_v1 }
  0x3e   :  { %457 = vmatpush.msrb.mxu0 %v6834_v30  ;;  %490 = vmatpush.msrb.mxu1 %v3754_v34  ;;  %v642_v34 = vsub.f32 %v4133_v23, %v641_v15 }
  0x3f   :  { %533 = vmatpush.msrb.mxu2 %v4050_v8  ;;  %204 = vmatmul.f32.vlgmr.msra.gmra.mxu0 %v203_v33 }
  0x40   :  { %461 = vmatpush.msrb.mxu0 %v6835_v9  ;;  %492 = vmatpush.msrb.mxu1 %v3776_v44  ;;  %v637_v44 = vand.u32 4294901760, %v636_v26  ;;  %v643_v42 = vand.u32 4294901760, %v642_v34  ;;  %v153_v34 = vperm.slane %v4013_v41, 2 }
  0x41   :  { %535 = vmatpush.msrb.mxu2 %v4079_v7  ;;  %632 = vmatpush.msrb.mxu3 %v631_v39  ;;  %v57_v39 = vld [vmem:[%s6708_s1 + $0x120] sm:$0xff] }
  0x42   :  { %465 = vmatpush.msrb.mxu0 %v6836_v11  ;;  %494 = vmatpush.msrb.mxu1 %v3792_v51  ;;  %v6837_v51 = vand.u32 4294901760, %v3876_v43 }
  0x43   :  { %537 = vmatpush.msrb.mxu2 %v4098_v35  ;;  %638 = vmatpush.msrb.mxu3 %v637_v44 }
  0x44   :  { %652 = vmatpush.msra.mxu0 %v3876_v43  ;;  %496 = vmatpush.msrb.mxu1 %v3806_v56  ;;  %v543_v56 = vsub.f32 %v4167_v52, %v542_v3 }
  0x45   :  { %539 = vmatpush.msrb.mxu2 %v4111_v62  ;;  %644 = vmatpush.msrb.mxu3 %v643_v42 }
  0x46   :  { %655 = vmatpush.msra.mxu0 %v3888_v54  ;;  %498 = vmatpush.msrb.mxu1 %v3824_v63  ;;  %v6838_v63 = vand.u32 4294901760, %v3888_v54  ;;  %v544_v43 = vand.u32 4294901760, %v543_v56  ;;  %v6842_v54 = vand.u32 4294901760, %v3923_v57 }
  0x47   :  { %359 = vmatmul.f32.vlgmr.msra.gmra.mxu2 %v4096_v32  ;;  %398 = vmatmul.f32.vlgmr.msra.gmra.mxu3 %v201_v60  ;;  %v6840_v32 = vld [vmem:[#allocation3_spill] sm:$0xff] }
  0x48   :  { %658 = vmatpush.msra.mxu0 %v3915_v38  ;;  %746 = vmatpush.msra.mxu2 %v6837_v51  ;;  %v56_v51 = vld [vmem:[%s6708_s1 + $0x118] sm:$0xff] }
  0x49   :  { %500 = vmatpush.msrb.mxu1 %v3835_v6  ;;  %813 = vmatpush.msra.mxu3 %v6839_v12  ;;  %v6841_v6 = vand.u32 4294901760, %v3915_v38  ;;  %v6843_v38 = vand.u32 4294901760, %v3949_v40 }
  0x4a   :  { %661 = vmatpush.msra.mxu0 %v3923_v57  ;;  %750 = vmatpush.msra.mxu2 %v6838_v63  ;;  %v6844_v57 = vand.u32 4294901760, %v3969_v24  ;;  %v4399_v63 = vand.u32 4294901760, %v57_v39 }
  0x4b   :  { %502 = vmatpush.msrb.mxu1 %v6840_v32  ;;  %815 = vmatpush.msra.mxu3 %v3852_v31 }
  0x4c   :  { %664 = vmatpush.msra.mxu0 %v3949_v40  ;;  %305 = vmatmul.f32.vlgmr.msra.gmra.mxu1 %v4066_v25  ;;  %v6845_v40 = vand.u32 4294901760, %v3983_v14 }
  0x4d   :  { %754 = vmatpush.msra.mxu2 %v6841_v6  ;;  %705 = vmatpush.msra.mxu1 %v6839_v12 }
  0x4e   :  { %667 = vmatpush.msra.mxu0 %v3969_v24  ;;  %817 = vmatpush.msra.mxu3 %v3883_v53  ;;  %v6846_v24 = vand.u32 4294901760, %v3997_v50 }
  0x4f   :  { %758 = vmatpush.msra.mxu2 %v6842_v54  ;;  %707 = vmatpush.msra.mxu1 %v3852_v31  ;;  %v6847_v31 = vand.u32 4294901760, %v4021_v61  ;;  %v4410_v54 = vand.u32 4294901760, %v153_v34 }
  0x50   :  { %545 = vmatmul.f32.vlgmr.msrb.gmra.mxu2 %v544_v43  ;;  %670 = vmatpush.msra.mxu0 %v3983_v14  ;;  %v55_v43 = vld [vmem:[%s6708_s1 + $0x110] sm:$0xff] }
  0x51   :  { %709 = vmatpush.msra.mxu1 %v3883_v53  ;;  %762 = vmatpush.msra.mxu2 %v6843_v38  ;;  %v66_v53 = vld [vmem:[%s6708_s1 + $0x168] sm:$0xff] }
  0x52   :  { %819 = vmatpush.msra.mxu3 %v3890_v55  ;;  %467 = vmatmul.f32.vlgmr.msrb.gmra.mxu0 %v4066_v25  ;;  %v4262_v14 = vand.u32 4294901760, %v66_v53 }
  0x53   :  { %646 = vmatmul.f32.vlgmr.msrb.gmra.mxu3 %v4150_v10  ;;  %673 = vmatpush.msra.mxu0 %v3997_v50  ;;  %v6848_v50 = vand.u32 4294901760, %v4034_v36 }
  0x54   :  { %711 = vmatpush.msra.mxu1 %v3890_v55  ;;  %766 = vmatpush.msra.mxu2 %v6844_v57  ;;  %v65_v55 = vld [vmem:[%s6708_s1 + $0x160] sm:$0xff]  ;;  %v4416_v57 = vand.u32 4294901760, %v56_v51 }
  0x55   :  { %821 = vmatpush.msra.mxu3 %v3917_v21  ;;  %504 = vmatmul.f32.vlgmr.msrb.gmra.mxu1 %v4066_v25  ;;  %v4292_v25 = vsub.f32 %v66_v53, %v4262_v14  ;;  %v4432_v53 = vsub.f32 %v57_v39, %v4399_v63  ;;  %v83_v39 = vld [vmem:[%s6708_s1 + $0x1f0] sm:$0xff] }
  0x56   :  { %676 = vmatpush.msra.mxu0 %v4021_v61  ;;  %713 = vmatpush.msra.mxu1 %v3917_v21  ;;  %v68_v21 = vld [vmem:[%s6708_s1 + $0x178] sm:$0xff] }
  0x57   :  { %770 = vmatpush.msra.mxu2 %v6845_v40  ;;  %823 = vmatpush.msra.mxu3 %v3933_v47  ;;  %v64_v61 = vld [vmem:[%s6708_s1 + $0x158] sm:$0xff] }
  0x58   :  { %679 = vmatpush.msra.mxu0 %v4034_v36  ;;  %715 = vmatpush.msra.mxu1 %v3933_v47  ;;  %v67_v47 = vld [vmem:[%s6708_s1 + $0x170] sm:$0xff] }
  0x59   :  { %774 = vmatpush.msra.mxu2 %v6846_v24  ;;  %825 = vmatpush.msra.mxu3 %v3951_v28  ;;  %v63_v36 = vld [vmem:[%s6708_s1 + $0x150] sm:$0xff] }
  0x5a   :  { %682 = vmatpush.msra.mxu0 %v4043_v48  ;;  %717 = vmatpush.msra.mxu1 %v3951_v28  ;;  %v4242_v28 = vand.u32 4294901760, %v68_v21  ;;  %v4285_v48 = vand.u32 4294901760, %v64_v61 }
  0x5b   :  { %778 = vmatpush.msra.mxu2 %v6847_v31  ;;  %827 = vmatpush.msra.mxu3 %v3959_v27 }
  0x5c   :  { %685 = vmatpush.msra.mxu0 %v4064_v13  ;;  %719 = vmatpush.msra.mxu1 %v3959_v27  ;;  %v4252_v27 = vand.u32 4294901760, %v67_v47 }
  0x5d   :  { %782 = vmatpush.msra.mxu2 %v6848_v50  ;;  %829 = vmatpush.msra.mxu3 %v3985_v22 }
  0x5e   :  { %688 = vmatpush.msra.mxu0 %v4082_v29  ;;  %721 = vmatpush.msra.mxu1 %v3985_v22  ;;  %v4265_v22 = vsub.f32 %v68_v21, %v4242_v28  ;;  %v4278_v13 = vsub.f32 %v67_v47, %v4252_v27  ;;  %v4428_v47 = vand.u32 4294901760, %v55_v43 }
  0x5f   :  { %786 = vmatpush.msra.mxu2 %v611_v19  ;;  %831 = vmatpush.msra.mxu3 %v4001_v37  ;;  %v4296_v19 = vand.u32 4294901760, %v63_v36 }
  0x60   :  { %691 = vmatpush.msra.mxu0 %v4109_v45  ;;  %723 = vmatpush.msra.mxu1 %v4001_v37  ;;  %v4275_v37 = vand.u32 4294901760, %v65_v55  ;;  %v898_v29 = vand.u32 4294901760, %v4278_v13 }
  0x61   :  { %790 = vmatpush.msra.mxu2 %v617_v0  ;;  %833 = vmatpush.msra.mxu3 %v4005_v2 }
  0x62   :  { %694 = vmatpush.msra.mxu0 %v4122_v59  ;;  %725 = vmatpush.msra.mxu1 %v4005_v2  ;;  %v892_v2 = vand.u32 4294901760, %v4265_v22  ;;  %v4306_v0 = vsub.f32 %v65_v55, %v4275_v37  ;;  %v4328_v59 = vsub.f32 %v63_v36, %v4296_v19  ;;  %v54_v55 = vld [vmem:[%s6708_s1 + $0x108] sm:$0xff] }
  0x63   :  { %794 = vmatpush.msra.mxu2 %v623_v5  ;;  %835 = vmatpush.msra.mxu3 %v4036_v18  ;;  %v61_v5 = vld [vmem:[%s6708_s1 + $0x140] sm:$0xff] }
  0x64   :  { %697 = vmatpush.msra.mxu0 %v4133_v23  ;;  %727 = vmatpush.msra.mxu1 %v4036_v18  ;;  %v62_v18 = vld [vmem:[%s6708_s1 + $0x148] sm:$0xff]  ;;  %v893_v45 = vsub.f32 %v4265_v22, %v892_v2  ;;  %v899_v23 = vsub.f32 %v4278_v13, %v898_v29  ;;  %v4338_v58 = vand.u32 4294901760, %v61_v5  ;;  %v6749_v17 = vand.u32 4294901760, %v4306_v0 }
  0x65   :  { %798 = vmatpush.msra.mxu2 %v629_v4  ;;  %837 = vmatpush.msra.mxu3 %v4050_v8  ;;  %v4322_v60 = vand.u32 4294901760, %v62_v18  ;;  %v60_v4 = vld [vmem:[%s6708_s1 + $0x138] sm:$0xff] }
  0x66   :  { %700 = vmatmul.f32.vlgmr.msra.gmra.mxu0 %v4167_v52  ;;  %729 = vmatpush.msra.mxu1 %v4050_v8  ;;  %v4311_v8 = vsub.f32 %v64_v61, %v4285_v48  ;;  %v894_v46 = vand.u32 4294901760, %v893_v45  ;;  %v4352_v20 = vand.u32 4294901760, %v60_v4  ;;  %v900_v30 = vand.u32 4294901760, %v899_v23 }
  0x67   :  { %850 = vmatpush.msrb.mxu0 %v4242_v28  ;;  %802 = vmatpush.msra.mxu2 %v635_v16  ;;  %v59_v16 = vld [vmem:[%s6708_s1 + $0x130] sm:$0xff]  ;;  %v911_v33 = vsub.f32 %v4306_v0, %v6749_v17  ;;  %v4371_v9 = vsub.f32 %v61_v5, %v4338_v58  ;;  %v4440_v61 = vsub.f32 %v153_v34, %v4410_v54  ;;  %v4455_v23 = vand.u32 4294901760, %v54_v55 }
  0x68   :  { %839 = vmatpush.msra.mxu3 %v4079_v7  ;;  %731 = vmatpush.msra.mxu1 %v4079_v7  ;;  %v904_v7 = vand.u32 4294901760, %v4292_v25  ;;  %v6747_v49 = vand.u32 4294901760, %v4311_v8  ;;  %v4368_v26 = vand.u32 4294901760, %v59_v16  ;;  %v4388_v42 = vsub.f32 %v60_v4, %v4352_v20  ;;  %v84_v4 = vld [vmem:[%s6708_s1 + $0x1f8] sm:$0xff] }
  0x69   :  { %852 = vmatpush.msrb.mxu0 %v4252_v27  ;;  %806 = vmatpush.msra.mxu2 %v641_v15  ;;  %v6746_v15 = vand.u32 4294901760, %v4328_v59  ;;  %v912_v56 = vand.u32 4294901760, %v911_v33  ;;  %v6743_v12 = vand.u32 4294901760, %v4371_v9  ;;  %v4448_v45 = vsub.f32 %v56_v51, %v4416_v57 }
  0x6a   :  { %841 = vmatpush.msra.mxu3 %v4098_v35  ;;  %808 = vmatmul.f32.vlgmr.msra.gmra.mxu2 %v4150_v10  ;;  %v905_v1 = vsub.f32 %v4292_v25, %v904_v7  ;;  %v4403_v32 = vsub.f32 %v59_v16, %v4368_v26  ;;  %v6742_v40 = vand.u32 4294901760, %v4388_v42  ;;  %v53_v16 = vld [vmem:[%s6708_s1 + $0x100] sm:$0xff]  ;;  %v6752_v33 = vand.u32 4294901760, %v4440_v61 }
  0x6b   :  { %854 = vmatpush.msrb.mxu0 %v4262_v14  ;;  %993 = vmatpush.msrb.mxu2 %v4265_v22  ;;  %v935_v31 = vsub.f32 %v4371_v9, %v6743_v12  ;;  %v6741_v51 = vand.u32 4294901760, %v4448_v45  ;;  %v76_v22 = vld [vmem:[%s6708_s1 + $0x1b8] sm:$0xff] }
  0x6c   :  { %733 = vmatpush.msra.mxu1 %v4098_v35  ;;  %843 = vmatpush.msra.mxu3 %v4111_v62  ;;  %v4355_v35 = vsub.f32 %v62_v18, %v4322_v60  ;;  %v906_v11 = vand.u32 4294901760, %v905_v1  ;;  %v6740_v50 = vand.u32 4294901760, %v4403_v32  ;;  %v941_v18 = vsub.f32 %v4388_v42, %v6742_v40 }
  0x6d   :  { %845 = vmatmul.f32.vlgmr.msra.gmra.mxu3 %v4150_v10  ;;  %856 = vmatpush.msrb.mxu0 %v4275_v37  ;;  %v58_v10 = vld [vmem:[%s6708_s1 + $0x128] sm:$0xff] }
  0x6e   :  { %996 = vmatpush.msrb.mxu2 %v4278_v13  ;;  %1046 = vmatpush.msrb.mxu3 %v4242_v28  ;;  %v4384_v44 = vand.u32 4294901760, %v58_v10  ;;  %v6744_v52 = vand.u32 4294901760, %v4355_v35  ;;  %v947_v1 = vsub.f32 %v4403_v32, %v6740_v50  ;;  %v942_v34 = vand.u32 4294901760, %v941_v18  ;;  %v80_v50 = vld [vmem:[%s6708_s1 + $0x1d8] sm:$0xff]  ;;  %v75_v13 = vld [vmem:[%s6708_s1 + $0x1b0] sm:$0xff] }
  0x6f   :  { %735 = vmatpush.msra.mxu1 %v4111_v62  ;;  %858 = vmatpush.msrb.mxu0 %v4285_v48  ;;  %v917_v62 = vsub.f32 %v4311_v8, %v6747_v49 }
  0x70   :  { %739 = vmatmul.f32.vlgmr.msra.gmra.mxu1 %v542_v3  ;;  %999 = vmatpush.msrb.mxu2 %v4292_v25  ;;  %v923_v3 = vsub.f32 %v4328_v59, %v6746_v15  ;;  %v929_v38 = vsub.f32 %v4355_v35, %v6744_v52  ;;  %v4420_v24 = vsub.f32 %v58_v10, %v4384_v44  ;;  %v6738_v10 = vand.u32 4294901760, %v4432_v53 }
  0x71   :  { %895 = vmatpush.msrb.mxu1 %v894_v46  ;;  %1048 = vmatpush.msrb.mxu3 %v4252_v27  ;;  %v918_v6 = vand.u32 4294901760, %v917_v62  ;;  %v936_v46 = vand.u32 4294901760, %v935_v31  ;;  %v4471_v62 = vand.u32 4294901760, %v84_v4  ;;  %v4496_v31 = vand.u32 4294901760, %v83_v39 }
  0x72   :  { %860 = vmatpush.msrb.mxu0 %v4296_v19  ;;  %1002 = vmatpush.msrb.mxu2 %v4306_v0  ;;  %v924_v21 = vand.u32 4294901760, %v923_v3  ;;  %v930_v36 = vand.u32 4294901760, %v929_v38  ;;  %v6739_v5 = vand.u32 4294901760, %v4420_v24  ;;  %v4480_v3 = vand.u32 4294901760, %v53_v16 }
  0x73   :  { %901 = vmatpush.msrb.mxu1 %v900_v30  ;;  %1050 = vmatpush.msrb.mxu3 %v4262_v14  ;;  %v4466_v30 = vsub.f32 %v55_v43, %v4428_v47  ;;  %v948_v43 = vand.u32 4294901760, %v947_v1  ;;  %v959_v38 = vsub.f32 %v4432_v53, %v6738_v10  ;;  %v4507_v18 = vsub.f32 %v84_v4, %v4471_v62 }
  0x74   :  { %862 = vmatpush.msrb.mxu0 %v4322_v60  ;;  %1005 = vmatpush.msrb.mxu2 %v4311_v8  ;;  %6849 = vst [vmem:[#allocation2_spill] sm:$0xff] %v4480_v3  ;;  %v965_v1 = vsub.f32 %v4448_v45, %v6741_v51  ;;  %v4514_v10 = vsub.f32 %v53_v16, %v4480_v3  ;;  %v4536_v52 = vand.u32 4294901760, %v80_v50 }
  0x75   :  { %907 = vmatpush.msrb.mxu1 %v906_v11  ;;  %1052 = vmatpush.msrb.mxu3 %v4275_v37  ;;  %v953_v11 = vsub.f32 %v4420_v24, %v6739_v5  ;;  %v4531_v51 = vsub.f32 %v83_v39, %v4496_v31  ;;  %v6750_v12 = vand.u32 4294901760, %v4507_v18 }
  0x76   :  { %864 = vmatpush.msrb.mxu0 %v4338_v58  ;;  %1008 = vmatpush.msrb.mxu2 %v4328_v59  ;;  %v6751_v39 = vand.u32 4294901760, %v4514_v10 }
  0x77   :  { %913 = vmatpush.msrb.mxu1 %v912_v56  ;;  %1054 = vmatpush.msrb.mxu3 %v4285_v48  ;;  %v4486_v56 = vsub.f32 %v54_v55, %v4455_v23  ;;  %v81_v55 = vld [vmem:[%s6708_s1 + $0x1e0] sm:$0xff] }
  0x78   :  { %866 = vmatpush.msrb.mxu0 %v4352_v20  ;;  %1011 = vmatpush.msrb.mxu2 %v4355_v35 }
  0x79   :  { %919 = vmatpush.msrb.mxu1 %v918_v6  ;;  %1056 = vmatpush.msrb.mxu3 %v4296_v19  ;;  %v82_v6 = vld [vmem:[%s6708_s1 + $0x1e8] sm:$0xff]  ;;  %v6748_v4 = vand.u32 4294901760, %v4486_v56 }
  0x7a   :  { %868 = vmatpush.msrb.mxu0 %v4368_v26  ;;  %1014 = vmatpush.msrb.mxu2 %v4371_v9  ;;  %v4516_v5 = vand.u32 4294901760, %v82_v6 }
  0x7b   :  { %925 = vmatpush.msrb.mxu1 %v924_v21  ;;  %1058 = vmatpush.msrb.mxu3 %v4322_v60  ;;  %v6745_v21 = vand.u32 4294901760, %v4466_v30 }
  0x7c   :  { %870 = vmatpush.msrb.mxu0 %v4384_v44  ;;  %1017 = vmatpush.msrb.mxu2 %v4388_v42 }
  0x7d   :  { %931 = vmatpush.msrb.mxu1 %v930_v36  ;;  %1060 = vmatpush.msrb.mxu3 %v4338_v58  ;;  %v884_v36 = vsub.f32 %v4440_v61, %v6752_v33  ;;  %v971_v16 = vsub.f32 %v4466_v30, %v6745_v21  ;;  %v4544_v21 = vsub.f32 %v82_v6, %v4516_v5  ;;  %v4627_v33 = vand.u32 4294901760, %v75_v13 }
  0x7e   :  { %872 = vmatpush.msrb.mxu0 %v4399_v63  ;;  %1020 = vmatpush.msrb.mxu2 %v4403_v32 }
  0x7f   :  { %937 = vmatpush.msrb.mxu1 %v936_v46  ;;  %1062 = vmatpush.msrb.mxu3 %v4352_v20  ;;  %v954_v46 = vand.u32 4294901760, %v953_v11  ;;  %v960_v11 = vand.u32 4294901760, %v959_v38  ;;  %v885_v40 = vand.u32 4294901760, %v884_v36  ;;  %v966_v38 = vand.u32 4294901760, %v965_v1 }
  0x80   :  { %874 = vmatpush.msrb.mxu0 %v4416_v57  ;;  %1023 = vmatpush.msrb.mxu2 %v4420_v24  ;;  %v977_v36 = vsub.f32 %v4486_v56, %v6748_v4  ;;  %v972_v6 = vand.u32 4294901760, %v971_v16  ;;  %v6754_v1 = vand.u32 4294901760, %v4531_v51  ;;  %v4566_v4 = vsub.f32 %v80_v50, %v4536_v52 }
  0x81   :  { %943 = vmatpush.msrb.mxu1 %v942_v34  ;;  %1064 = vmatpush.msrb.mxu3 %v4368_v26  ;;  %v4524_v34 = vand.u32 4294901760, %v81_v55  ;;  %v6753_v16 = vand.u32 4294901760, %v4544_v21 }
  0x82   :  { %876 = vmatpush.msrb.mxu0 %v4428_v47  ;;  %1026 = vmatpush.msrb.mxu2 %v4432_v53  ;;  %v978_v50 = vand.u32 4294901760, %v977_v36 }
  0x83   :  { %949 = vmatpush.msrb.mxu1 %v948_v43  ;;  %1066 = vmatpush.msrb.mxu3 %v4384_v44  ;;  %v79_v43 = vld [vmem:[%s6708_s1 + $0x1d0] sm:$0xff]  ;;  %v4552_v15 = vsub.f32 %v81_v55, %v4524_v34  ;;  %v1234_v55 = vsub.f32 %v4507_v18, %v6750_v12 }
  0x84   :  { %878 = vmatpush.msrb.mxu0 %v4455_v23  ;;  %1029 = vmatpush.msrb.mxu2 %v4448_v45  ;;  %v4559_v49 = vand.u32 4294901760, %v79_v43 }
  0x85   :  { %955 = vmatpush.msrb.mxu1 %v954_v46  ;;  %1068 = vmatpush.msrb.mxu3 %v4399_v63  ;;  %v78_v46 = vld [vmem:[%s6708_s1 + $0x1c8] sm:$0xff]  ;;  %v6755_v12 = vand.u32 4294901760, %v4552_v15  ;;  %v1235_v36 = vand.u32 4294901760, %v1234_v55  ;;  %v4610_v55 = vand.u32 4294901760, %v76_v22 }
  0x86   :  { %880 = vmatpush.msrb.mxu0 %v4480_v3  ;;  %1032 = vmatpush.msrb.mxu2 %v4466_v30  ;;  %v4577_v17 = vand.u32 4294901760, %v78_v46 }
  0x87   :  { %961 = vmatpush.msrb.mxu1 %v960_v11  ;;  %1070 = vmatpush.msrb.mxu3 %v4416_v57  ;;  %v77_v11 = vld [vmem:[%s6708_s1 + $0x1c0] sm:$0xff]  ;;  %v1252_v25 = vsub.f32 %v4552_v15, %v6755_v12  ;;  %v6852_v12 = vand.u32 4294901760, %v4566_v4 }
  0x88   :  { %886 = vmatmul.f32.vlgmr.msrb.gmra.mxu0 %v885_v40  ;;  %1035 = vmatpush.msrb.mxu2 %v4486_v56  ;;  %v983_v40 = vsub.f32 %v4514_v10, %v6751_v39  ;;  %v4593_v39 = vand.u32 4294901760, %v77_v11 }
  0x89   :  { %1087 = vmatpush.msra.mxu0 %v892_v2  ;;  %967 = vmatpush.msrb.mxu1 %v966_v38  ;;  %v1240_v2 = vsub.f32 %v4531_v51, %v6754_v1  ;;  %v4591_v38 = vsub.f32 %v79_v43, %v4559_v49  ;;  %v1246_v43 = vsub.f32 %v4544_v21, %v6753_v16  ;;  %v6851_v16 = vand.u32 4294901760, %v4306_v0  ;;  %v73_v0 = vld [vmem:[%s6708_s1 + $0x1a0] sm:$0xff] }
  0x8a   :  { %1072 = vmatpush.msrb.mxu3 %v4428_v47  ;;  %1038 = vmatpush.msrb.mxu2 %v4514_v10 }
  0x8b   :  { %1091 = vmatpush.msra.mxu0 %v898_v29  ;;  %973 = vmatpush.msrb.mxu1 %v972_v6  ;;  %v984_v29 = vand.u32 4294901760, %v983_v40  ;;  %v4608_v6 = vsub.f32 %v78_v46, %v4577_v17  ;;  %v6850_v40 = vand.u32 4294901760, %v4440_v61  ;;  %v1241_v46 = vand.u32 4294901760, %v1240_v2 }
  0x8c   :  { %1074 = vmatpush.msrb.mxu3 %v4455_v23  ;;  %1041 = vmatmul.f32.vlgmr.msrb.gmra.mxu2 %v4440_v61  ;;  %v6757_v1 = vand.u32 4294901760, %v4591_v38  ;;  %v6853_v61 = vand.u32 4294901760, %v4311_v8  ;;  %v4640_v2 = vsub.f32 %v76_v22, %v4610_v55 }
  0x8d   :  { %1095 = vmatpush.msra.mxu0 %v904_v7  ;;  %1191 = vmatpush.msra.mxu2 %v4471_v62  ;;  %v74_v7 = vld [vmem:[%s6708_s1 + $0x1a8] sm:$0xff] }
  0x8e   :  { %979 = vmatpush.msrb.mxu1 %v978_v50  ;;  %1076 = vmatpush.msrb.mxu3 %v4480_v3  ;;  %v4625_v50 = vsub.f32 %v77_v11, %v4593_v39  ;;  %v1258_v3 = vsub.f32 %v4566_v4, %v6852_v12  ;;  %v6758_v11 = vand.u32 4294901760, %v4608_v6  ;;  %v1253_v12 = vand.u32 4294901760, %v1252_v25 }
  0x8f   :  { %1080 = vmatmul.f32.vlgmr.msrb.gmra.mxu3 %v6850_v40  ;;  %1099 = vmatpush.msra.mxu0 %v6851_v16  ;;  %v1247_v16 = vand.u32 4294901760, %v1246_v43  ;;  %v4642_v40 = vand.u32 4294901760, %v74_v7  ;;  %v1264_v8 = vsub.f32 %v4591_v38, %v6757_v1  ;;  %v4657_v43 = vand.u32 4294901760, %v73_v0 }
  0x90   :  { %1193 = vmatpush.msra.mxu2 %v4496_v31  ;;  %1236 = vmatpush.msra.mxu3 %v1235_v36  ;;  %v72_v36 = vld [vmem:[%s6708_s1 + $0x198] sm:$0xff]  ;;  %v6760_v22 = vand.u32 4294901760, %v4625_v50  ;;  %v6854_v25 = vand.u32 4294901760, %v4328_v59  ;;  %v71_v59 = vld [vmem:[%s6708_s1 + $0x190] sm:$0xff] }
  0x91   :  { %985 = vmatpush.msrb.mxu1 %v984_v29  ;;  %1103 = vmatpush.msra.mxu0 %v6853_v61  ;;  %v4655_v29 = vsub.f32 %v75_v13, %v4627_v33  ;;  %v1259_v61 = vand.u32 4294901760, %v1258_v3  ;;  %v4668_v13 = vsub.f32 %v74_v7, %v4642_v40  ;;  %v4670_v1 = vand.u32 4294901760, %v72_v36 }
  0x92   :  { %987 = vmatmul.f32.vlgmr.msrb.gmra.mxu1 %v4410_v54  ;;  %1195 = vmatpush.msra.mxu2 %v4516_v5  ;;  %v6855_v3 = vand.u32 4294901760, %v4355_v35  ;;  %v1276_v7 = vsub.f32 %v4625_v50, %v6760_v22  ;;  %v70_v35 = vld [vmem:[%s6708_s1 + $0x188] sm:$0xff]  ;;  %v6858_v22 = vand.u32 4294901760, %v4403_v32  ;;  %v6859_v32 = vand.u32 4294901760, %v4420_v24 }
  0x93   :  { %1154 = vmatpush.msra.mxu1 %v4242_v28  ;;  %1242 = vmatpush.msra.mxu3 %v1241_v46  ;;  %v1270_v28 = vsub.f32 %v4608_v6, %v6758_v11  ;;  %v6759_v46 = vand.u32 4294901760, %v4640_v2  ;;  %v4685_v11 = vsub.f32 %v73_v0, %v4657_v43 }
  0x94   :  { %1107 = vmatpush.msra.mxu0 %v6854_v25  ;;  %1197 = vmatpush.msra.mxu2 %v4524_v34  ;;  %v1287_v25 = vand.u32 4294901760, %v4655_v29 }
  0x95   :  { %1156 = vmatpush.msra.mxu1 %v4252_v27  ;;  %1248 = vmatpush.msra.mxu3 %v1247_v16  ;;  %v154_v27 = vperm.slane %v4013_v41, 3  ;;  %v1265_v16 = vand.u32 4294901760, %v1264_v8  ;;  %v4693_v41 = vand.u32 4294901760, %v71_v59  ;;  %v1282_v0 = vsub.f32 %v4640_v2, %v6759_v46 }
  0x96   :  { %1111 = vmatpush.msra.mxu0 %v6855_v3  ;;  %1199 = vmatpush.msra.mxu2 %v4536_v52  ;;  %v6856_v3 = vand.u32 4294901760, %v4371_v9  ;;  %v4701_v8 = vsub.f32 %v72_v36, %v4670_v1  ;;  %v69_v9 = vld [vmem:[%s6708_s1 + $0x180] sm:$0xff]  ;;  %v1288_v36 = vsub.f32 %v4655_v29, %v1287_v25  ;;  %v1299_v46 = vand.u32 4294901760, %v4685_v11 }
  0x97   :  { %1158 = vmatpush.msra.mxu1 %v4262_v14  ;;  %1254 = vmatpush.msra.mxu3 %v1253_v12  ;;  %v1271_v14 = vand.u32 4294901760, %v1270_v28  ;;  %v1293_v12 = vand.u32 4294901760, %v4668_v13  ;;  %v1277_v28 = vand.u32 4294901760, %v1276_v7 }
  0x98   :  { %1115 = vmatpush.msra.mxu0 %v6856_v3  ;;  %1201 = vmatpush.msra.mxu2 %v4559_v49  ;;  %v6857_v3 = vand.u32 4294901760, %v4388_v42  ;;  %v4722_v42 = vsub.f32 %v71_v59, %v4693_v41  ;;  %v1305_v7 = vand.u32 4294901760, %v4701_v8 }
  0x99   :  { %1160 = vmatpush.msra.mxu1 %v4275_v37  ;;  %1260 = vmatpush.msra.mxu3 %v1259_v61  ;;  %v4709_v37 = vand.u32 4294901760, %v70_v35  ;;  %v4711_v61 = vand.u32 4294901760, %v154_v27 }
  0x9a   :  { %1119 = vmatpush.msra.mxu0 %v6857_v3  ;;  %1203 = vmatpush.msra.mxu2 %v4577_v17  ;;  %v4724_v3 = vand.u32 4294901760, %v69_v9  ;;  %v1311_v24 = vand.u32 4294901760, %v4722_v42 }
  0x9b   :  { %1162 = vmatpush.msra.mxu1 %v4285_v48  ;;  %1266 = vmatpush.msra.mxu3 %v1265_v16  ;;  %v1283_v48 = vand.u32 4294901760, %v1282_v0  ;;  %v1294_v16 = vsub.f32 %v4668_v13, %v1293_v12  ;;  %v4738_v59 = vsub.f32 %v154_v27, %v4711_v61  ;;  %v6860_v0 = vand.u32 4294901760, %v4432_v53 }
  0x9c   :  { %1123 = vmatpush.msra.mxu0 %v6858_v22  ;;  %1205 = vmatpush.msra.mxu2 %v4593_v39  ;;  %v4735_v22 = vsub.f32 %v70_v35, %v4709_v37  ;;  %v4749_v35 = vsub.f32 %v69_v9, %v4724_v3  ;;  %v1306_v27 = vsub.f32 %v4701_v8, %v1305_v7 }
  0x9d   :  { %1164 = vmatpush.msra.mxu1 %v4296_v19  ;;  %1272 = vmatpush.msra.mxu3 %v1271_v14  ;;  %v1289_v19 = vand.u32 4294901760, %v1288_v36  ;;  %v1300_v14 = vsub.f32 %v4685_v11, %v1299_v46  ;;  %v1224_v36 = vand.u32 4294901760, %v4738_v59 }
  0x9e   :  { %1127 = vmatpush.msra.mxu0 %v6859_v32  ;;  %1207 = vmatpush.msra.mxu2 %v4610_v55  ;;  %v1317_v53 = vand.u32 4294901760, %v4735_v22  ;;  %v6863_v32 = vand.u32 4294901760, %v4486_v56 }
  0x9f   :  { %1166 = vmatpush.msra.mxu1 %v4322_v60  ;;  %1278 = vmatpush.msra.mxu3 %v1277_v28  ;;  %v1295_v60 = vand.u32 4294901760, %v1294_v16  ;;  %v6861_v28 = vand.u32 4294901760, %v4448_v45  ;;  %v1301_v9 = vand.u32 4294901760, %v1300_v14  ;;  %v1312_v45 = vsub.f32 %v4722_v42, %v1311_v24 }
  0xa0   :  { %1131 = vmatpush.msra.mxu0 %v6860_v0  ;;  %1209 = vmatpush.msra.mxu2 %v4627_v33  ;;  %v1307_v16 = vand.u32 4294901760, %v1306_v27 }
  0xa1   :  { %1168 = vmatpush.msra.mxu1 %v4338_v58  ;;  %1284 = vmatpush.msra.mxu3 %v1283_v48  ;;  %v6862_v58 = vand.u32 4294901760, %v4466_v30  ;;  %v1323_v48 = vand.u32 4294901760, %v4749_v35  ;;  %v1225_v30 = vsub.f32 %v4738_v59, %v1224_v36  ;;  %v1313_v56 = vand.u32 4294901760, %v1312_v45 }
  0xa2   :  { %1135 = vmatpush.msra.mxu0 %v6861_v28  ;;  %1211 = vmatpush.msra.mxu2 %v4642_v40 }
  0xa3   :  { %1170 = vmatpush.msra.mxu1 %v4352_v20  ;;  %1290 = vmatpush.msra.mxu3 %v1289_v19  ;;  %v1318_v20 = vsub.f32 %v4735_v22, %v1317_v53  ;;  %v1324_v19 = vsub.f32 %v4749_v35, %v1323_v48 }
  0xa4   :  { %1139 = vmatpush.msra.mxu0 %v6862_v58  ;;  %1213 = vmatpush.msra.mxu2 %v4657_v43 }
  0xa5   :  { %1172 = vmatpush.msra.mxu1 %v4368_v26  ;;  %1296 = vmatpush.msra.mxu3 %v1295_v60  ;;  %v6864_v26 = vand.u32 4294901760, %v4514_v10  ;;  %v1319_v14 = vand.u32 4294901760, %v1318_v20  ;;  %v1325_v10 = vand.u32 4294901760, %v1324_v19  ;;  %v88_v19 = vld [vmem:[%s6708_s1 + $0x218] sm:$0xff] }
  0xa6   :  { %1143 = vmatpush.msra.mxu0 %v6863_v32  ;;  %1215 = vmatpush.msra.mxu2 %v4670_v1  ;;  %v4993_v32 = vld [vmem:[%s6709_s0] sm:$0xff] }
  0xa7   :  { %1174 = vmatpush.msra.mxu1 %v4384_v44  ;;  %1302 = vmatpush.msra.mxu3 %v1301_v9  ;;  %v1226_v44 = vand.u32 4294901760, %v1225_v30  ;;  %v155_v20 = vperm.slane %v4993_v32, 4 }
  0xa8   :  { %1147 = vmatpush.msra.mxu0 %v6864_v26  ;;  %1217 = vmatpush.msra.mxu2 %v4693_v41 }
  0xa9   :  { %1176 = vmatpush.msra.mxu1 %v4399_v63  ;;  %1308 = vmatpush.msra.mxu3 %v1307_v16  ;;  %v6865_v63 = vand.u32 4294901760, %v4507_v18  ;;  %v89_v16 = vld [vmem:[%s6708_s1 + $0x220] sm:$0xff] }
  0xaa   :  { %1149 = vmatmul.f32.vlgmr.msra.gmra.mxu0 %v4410_v54  ;;  %1219 = vmatpush.msra.mxu2 %v4709_v37 }
  0xab   :  { %1334 = vmatpush.msrb.mxu0 %v4507_v18  ;;  %1178 = vmatpush.msra.mxu1 %v4416_v57  ;;  %v6866_v57 = vand.u32 4294901760, %v4531_v51  ;;  %v6868_v18 = vand.u32 4294901760, %v4544_v21 }
  0xac   :  { %1314 = vmatpush.msra.mxu3 %v1313_v56  ;;  %1221 = vmatpush.msra.mxu2 %v4724_v3 }
  0xad   :  { %1337 = vmatpush.msrb.mxu0 %v4531_v51  ;;  %1180 = vmatpush.msra.mxu1 %v4428_v47  ;;  %v6867_v47 = vld [vmem:[#allocation2_spill] sm:$0xff]  ;;  %v6874_v51 = vand.u32 4294901760, %v4640_v2 }
  0xae   :  { %1320 = vmatpush.msra.mxu3 %v1319_v14  ;;  %1227 = vmatmul.f32.vlgmr.msra.gmra.mxu2 %v1226_v44  ;;  %v5012_v44 = vand.u32 4294901760, %v89_v16 }
  0xaf   :  { %1340 = vmatpush.msrb.mxu0 %v4544_v21  ;;  %1428 = vmatpush.msrb.mxu2 %v6865_v63 }
  0xb0   :  { %1182 = vmatpush.msra.mxu1 %v4455_v23  ;;  %1326 = vmatpush.msra.mxu3 %v1325_v10  ;;  %v6869_v23 = vand.u32 4294901760, %v4552_v15 }
  0xb1   :  { %1328 = vmatmul.f32.vlgmr.msra.gmra.mxu3 %v4711_v61  ;;  %1343 = vmatpush.msrb.mxu0 %v4552_v15  ;;  %v6872_v15 = vand.u32 4294901760, %v4608_v6 }
  0xb2   :  { %1432 = vmatpush.msrb.mxu2 %v6866_v57  ;;  %1495 = vmatpush.msrb.mxu3 %v4471_v62 }
  0xb3   :  { %1184 = vmatpush.msra.mxu1 %v6867_v47  ;;  %1346 = vmatpush.msrb.mxu0 %v4566_v4  ;;  %v87_v47 = vld [vmem:[%s6708_s1 + $0x210] sm:$0xff] }
  0xb4   :  { %1186 = vmatmul.f32.vlgmr.msra.gmra.mxu1 %v4410_v54  ;;  %1436 = vmatpush.msrb.mxu2 %v6868_v18  ;;  %v6870_v54 = vand.u32 4294901760, %v4566_v4  ;;  %v97_v4 = vld [vmem:[%s6708_s1 + $0x260] sm:$0xff]  ;;  %v5023_v18 = vand.u32 4294901760, %v155_v20 }
  0xb5   :  { %1387 = vmatpush.msrb.mxu1 %v4471_v62  ;;  %1497 = vmatpush.msrb.mxu3 %v4496_v31  ;;  %v6871_v62 = vand.u32 4294901760, %v4591_v38 }
  0xb6   :  { %1349 = vmatpush.msrb.mxu0 %v4591_v38  ;;  %1440 = vmatpush.msrb.mxu2 %v6869_v23  ;;  %v96_v38 = vld [vmem:[%s6708_s1 + $0x258] sm:$0xff] }
  0xb7   :  { %1389 = vmatpush.msrb.mxu1 %v4496_v31  ;;  %1499 = vmatpush.msrb.mxu3 %v4516_v5 }
  0xb8   :  { %1352 = vmatpush.msrb.mxu0 %v4608_v6  ;;  %1444 = vmatpush.msrb.mxu2 %v6870_v54  ;;  %v5029_v54 = vand.u32 4294901760, %v88_v19 }
  0xb9   :  { %1391 = vmatpush.msrb.mxu1 %v4516_v5  ;;  %1501 = vmatpush.msrb.mxu3 %v4524_v34  ;;  %v6873_v5 = vand.u32 4294901760, %v4625_v50 }
  0xba   :  { %1355 = vmatpush.msrb.mxu0 %v4625_v50  ;;  %1448 = vmatpush.msrb.mxu2 %v6871_v62  ;;  %v4894_v50 = vand.u32 4294901760, %v96_v38 }
  0xbb   :  { %1393 = vmatpush.msrb.mxu1 %v4524_v34  ;;  %1503 = vmatpush.msrb.mxu3 %v4536_v52 }
  0xbc   :  { %1358 = vmatpush.msrb.mxu0 %v4640_v2  ;;  %1452 = vmatpush.msrb.mxu2 %v6872_v15 }
  0xbd   :  { %1395 = vmatpush.msrb.mxu1 %v4536_v52  ;;  %1505 = vmatpush.msrb.mxu3 %v4559_v49  ;;  %v100_v52 = vld [vmem:[%s6708_s1 + $0x278] sm:$0xff] }
  0xbe   :  { %1361 = vmatpush.msrb.mxu0 %v4655_v29  ;;  %1456 = vmatpush.msrb.mxu2 %v6873_v5  ;;  %v4850_v21 = vand.u32 4294901760, %v100_v52  ;;  %v94_v29 = vld [vmem:[%s6708_s1 + $0x248] sm:$0xff] }
  0xbf   :  { %1397 = vmatpush.msrb.mxu1 %v4559_v49  ;;  %1507 = vmatpush.msrb.mxu3 %v4577_v17  ;;  %v99_v49 = vld [vmem:[%s6708_s1 + $0x270] sm:$0xff] }
  0xc0   :  { %1364 = vmatpush.msrb.mxu0 %v4668_v13  ;;  %1460 = vmatpush.msrb.mxu2 %v6874_v51  ;;  %v4860_v31 = vand.u32 4294901760, %v99_v49  ;;  %v4920_v13 = vsub.f32 %v96_v38, %v4894_v50  ;;  %v5053_v38 = vsub.f32 %v155_v20, %v5023_v18 }
  0xc1   :  { %1399 = vmatpush.msrb.mxu1 %v4577_v17  ;;  %1509 = vmatpush.msrb.mxu3 %v4593_v39  ;;  %v98_v17 = vld [vmem:[%s6708_s1 + $0x268] sm:$0xff] }
  0xc2   :  { %1367 = vmatpush.msrb.mxu0 %v4685_v11  ;;  %1464 = vmatpush.msrb.mxu2 %v1287_v25  ;;  %v4870_v34 = vand.u32 4294901760, %v98_v17  ;;  %v4886_v6 = vsub.f32 %v99_v49, %v4860_v31  ;;  %v93_v25 = vld [vmem:[%s6708_s1 + $0x240] sm:$0xff] }
  0xc3   :  { %1401 = vmatpush.msrb.mxu1 %v4593_v39  ;;  %1511 = vmatpush.msrb.mxu3 %v4610_v55  ;;  %v4873_v39 = vsub.f32 %v100_v52, %v4850_v21  ;;  %v5041_v52 = vand.u32 4294901760, %v87_v47 }
  0xc4   :  { %1370 = vmatpush.msrb.mxu0 %v4701_v8  ;;  %1468 = vmatpush.msrb.mxu2 %v1293_v12  ;;  %v4900_v2 = vsub.f32 %v98_v17, %v4870_v34  ;;  %v4930_v12 = vand.u32 4294901760, %v94_v29  ;;  %v5045_v17 = vsub.f32 %v89_v16, %v5012_v44  ;;  %v115_v16 = vld [vmem:[%s6708_s1 + $0x2f0] sm:$0xff] }
  0xc5   :  { %1403 = vmatpush.msrb.mxu1 %v4610_v55  ;;  %1513 = vmatpush.msrb.mxu3 %v4627_v33  ;;  %v95_v55 = vld [vmem:[%s6708_s1 + $0x250] sm:$0xff]  ;;  %v1574_v11 = vand.u32 4294901760, %v4873_v39 }
  0xc6   :  { %1373 = vmatpush.msrb.mxu0 %v4722_v42  ;;  %1472 = vmatpush.msrb.mxu2 %v1299_v46  ;;  %v1586_v8 = vand.u32 4294901760, %v4900_v2 }
  0xc7   :  { %1405 = vmatpush.msrb.mxu1 %v4627_v33  ;;  %1515 = vmatpush.msrb.mxu3 %v4642_v40  ;;  %v4883_v33 = vand.u32 4294901760, %v97_v4 }
  0xc8   :  { %1376 = vmatpush.msrb.mxu0 %v4735_v22  ;;  %1476 = vmatpush.msrb.mxu2 %v1305_v7  ;;  %v92_v7 = vld [vmem:[%s6708_s1 + $0x238] sm:$0xff]  ;;  %v4946_v22 = vand.u32 4294901760, %v93_v25  ;;  %v1587_v27 = vsub.f32 %v4900_v2, %v1586_v8 }
  0xc9   :  { %1407 = vmatpush.msrb.mxu1 %v4642_v40  ;;  %1517 = vmatpush.msrb.mxu3 %v4657_v43  ;;  %v4905_v40 = vand.u32 4294901760, %v95_v55  ;;  %v4914_v46 = vsub.f32 %v97_v4, %v4883_v33  ;;  %v4960_v28 = vand.u32 4294901760, %v92_v7  ;;  %v86_v4 = vld [vmem:[%s6708_s1 + $0x208] sm:$0xff] }
  0xca   :  { %1379 = vmatpush.msrb.mxu0 %v4749_v35  ;;  %1480 = vmatpush.msrb.mxu2 %v1311_v24  ;;  %v6770_v24 = vand.u32 4294901760, %v4920_v13  ;;  %v91_v35 = vld [vmem:[%s6708_s1 + $0x230] sm:$0xff] }
  0xcb   :  { %1409 = vmatpush.msrb.mxu1 %v4657_v43  ;;  %1519 = vmatpush.msrb.mxu3 %v4670_v1  ;;  %v1580_v43 = vand.u32 4294901760, %v4886_v6  ;;  %v4936_v42 = vsub.f32 %v95_v55, %v4905_v40  ;;  %v6772_v0 = vand.u32 4294901760, %v4914_v46  ;;  %v4976_v45 = vand.u32 4294901760, %v91_v35 }
  0xcc   :  { %1382 = vmatmul.f32.vlgmr.msrb.gmra.mxu0 %v4738_v59  ;;  %1484 = vmatpush.msrb.mxu2 %v1317_v53  ;;  %v1588_v59 = vand.u32 4294901760, %v1587_v27  ;;  %v5001_v26 = vsub.f32 %v92_v7, %v4960_v28  ;;  %v116_v7 = vld [vmem:[%s6708_s1 + $0x2f8] sm:$0xff] }
  0xcd   :  { %1532 = vmatpush.msra.mxu0 %v4850_v21  ;;  %1411 = vmatpush.msrb.mxu1 %v4670_v1  ;;  %v1575_v1 = vsub.f32 %v4873_v39, %v1574_v11  ;;  %v6769_v53 = vand.u32 4294901760, %v4936_v42  ;;  %v1593_v58 = vsub.f32 %v4914_v46, %v6772_v0  ;;  %v5016_v63 = vsub.f32 %v91_v35, %v4976_v45  ;;  %v85_v35 = vld [vmem:[%s6708_s1 + $0x200] sm:$0xff] }
  0xce   :  { %1521 = vmatpush.msrb.mxu3 %v4693_v41  ;;  %1488 = vmatpush.msrb.mxu2 %v1323_v48  ;;  %v4979_v48 = vsub.f32 %v93_v25, %v4946_v22  ;;  %v6765_v62 = vand.u32 4294901760, %v5001_v26 }
  0xcf   :  { %1534 = vmatpush.msra.mxu0 %v4860_v31  ;;  %1413 = vmatpush.msrb.mxu1 %v4693_v41  ;;  %v1581_v41 = vsub.f32 %v4886_v6, %v1580_v43  ;;  %v1576_v60 = vand.u32 4294901760, %v1575_v1  ;;  %v1605_v56 = vsub.f32 %v4936_v42, %v6769_v53  ;;  %v1594_v14 = vand.u32 4294901760, %v1593_v58 }
  0xd0   :  { %1523 = vmatpush.msrb.mxu3 %v4709_v37  ;;  %1490 = vmatmul.f32.vlgmr.msrb.gmra.mxu2 %v4711_v61  ;;  %v6766_v10 = vand.u32 4294901760, %v4979_v48  ;;  %v6763_v49 = vand.u32 4294901760, %v5016_v63  ;;  %v5061_v1 = vsub.f32 %v88_v19, %v5029_v54  ;;  %v6775_v58 = vand.u32 4294901760, %v5053_v38 }
  0xd1   :  { %1536 = vmatpush.msra.mxu0 %v4870_v34  ;;  %1675 = vmatpush.msra.mxu2 %v4873_v39  ;;  %v1582_v9 = vand.u32 4294901760, %v1581_v41  ;;  %v1606_v5 = vand.u32 4294901760, %v1605_v56  ;;  %v5068_v41 = vand.u32 4294901760, %v86_v4  ;;  %v5093_v56 = vand.u32 4294901760, %v85_v35  ;;  %v108_v39 = vld [vmem:[%s6708_s1 + $0x2b8] sm:$0xff] }
  0xd2   :  { %1415 = vmatpush.msrb.mxu1 %v4709_v37  ;;  %1525 = vmatpush.msrb.mxu3 %v4724_v3  ;;  %v4963_v37 = vsub.f32 %v94_v29, %v4930_v12  ;;  %v1617_v51 = vsub.f32 %v4979_v48, %v6766_v10  ;;  %v1623_v29 = vsub.f32 %v5001_v26, %v6765_v62  ;;  %v6764_v19 = vand.u32 4294901760, %v5061_v1 }
  0xd3   :  { %1527 = vmatmul.f32.vlgmr.msrb.gmra.mxu3 %v4711_v61  ;;  %1538 = vmatpush.msra.mxu0 %v4883_v33  ;;  %v90_v61 = vld [vmem:[%s6708_s1 + $0x228] sm:$0xff]  ;;  %v1629_v27 = vsub.f32 %v5016_v63, %v6763_v49  ;;  %6875 = vst [vmem:[#allocation3_spill] sm:$0xff] %v5093_v56  ;;  %v112_v49 = vld [vmem:[%s6708_s1 + $0x2d8] sm:$0xff] }
  0xd4   :  { %1678 = vmatpush.msra.mxu2 %v4886_v6  ;;  %1728 = vmatpush.msra.mxu3 %v4850_v21  ;;  %v6767_v30 = vand.u32 4294901760, %v4963_v37  ;;  %v1624_v20 = vand.u32 4294901760, %v1623_v29  ;;  %v107_v6 = vld [vmem:[%s6708_s1 + $0x2b0] sm:$0xff] }
  0xd5   :  { %1417 = vmatpush.msrb.mxu1 %v4724_v3  ;;  %1540 = vmatpush.msra.mxu0 %v4894_v50  ;;  %v1599_v3 = vsub.f32 %v4920_v13, %v6770_v24 }
  0xd6   :  { %1421 = vmatmul.f32.vlgmr.msrb.gmra.mxu1 %v1224_v36  ;;  %1681 = vmatpush.msra.mxu2 %v4900_v2  ;;  %v4997_v36 = vand.u32 4294901760, %v90_v61  ;;  %v1611_v23 = vsub.f32 %v4963_v37, %v6767_v30  ;;  %v5149_v30 = vand.u32 4294901760, %v112_v49 }
  0xd7   :  { %1577 = vmatpush.msra.mxu1 %v1576_v60  ;;  %1730 = vmatpush.msra.mxu3 %v4860_v31  ;;  %v1600_v57 = vand.u32 4294901760, %v1599_v3  ;;  %v1618_v60 = vand.u32 4294901760, %v1617_v51  ;;  %v5084_v3 = vand.u32 4294901760, %v116_v7  ;;  %v5109_v51 = vand.u32 4294901760, %v115_v16 }
  0xd8   :  { %1542 = vmatpush.msra.mxu0 %v4905_v40  ;;  %1684 = vmatpush.msra.mxu2 %v4914_v46  ;;  %v5033_v15 = vsub.f32 %v90_v61, %v4997_v36  ;;  %v1612_v55 = vand.u32 4294901760, %v1611_v23  ;;  %v6761_v61 = vand.u32 4294901760, %v5045_v17 }
  0xd9   :  { %1583 = vmatpush.msra.mxu1 %v1582_v9  ;;  %1732 = vmatpush.msra.mxu3 %v4870_v34  ;;  %v5079_v9 = vsub.f32 %v87_v47, %v5041_v52  ;;  %v1630_v47 = vand.u32 4294901760, %v1629_v27  ;;  %v5120_v29 = vsub.f32 %v116_v7, %v5084_v3  ;;  %v1647_v27 = vsub.f32 %v5061_v1, %v6764_v19 }
  0xda   :  { %1544 = vmatpush.msra.mxu0 %v4930_v12  ;;  %1687 = vmatpush.msra.mxu2 %v4920_v13  ;;  %v6762_v25 = vand.u32 4294901760, %v5033_v15  ;;  %v1641_v23 = vsub.f32 %v5045_v17, %v6761_v61  ;;  %v5127_v61 = vsub.f32 %v85_v35, %v5093_v56  ;;  %v5144_v19 = vsub.f32 %v115_v16, %v5109_v51 }
  0xdb   :  { %1589 = vmatpush.msra.mxu1 %v1588_v59  ;;  %1734 = vmatpush.msra.mxu3 %v4883_v33  ;;  %v6773_v10 = vand.u32 4294901760, %v5120_v29 }
  0xdc   :  { %1546 = vmatpush.msra.mxu0 %v4946_v22  ;;  %1690 = vmatpush.msra.mxu2 %v4936_v42  ;;  %v1635_v59 = vsub.f32 %v5033_v15, %v6762_v25  ;;  %v6774_v16 = vand.u32 4294901760, %v5127_v61 }
  0xdd   :  { %1595 = vmatpush.msra.mxu1 %v1594_v14  ;;  %1736 = vmatpush.msra.mxu3 %v4894_v50  ;;  %v5099_v14 = vsub.f32 %v86_v4, %v5068_v41  ;;  %v113_v4 = vld [vmem:[%s6708_s1 + $0x2e0] sm:$0xff] }
  0xde   :  { %1548 = vmatpush.msra.mxu0 %v4960_v28  ;;  %1693 = vmatpush.msra.mxu2 %v4963_v37 }
  0xdf   :  { %1601 = vmatpush.msra.mxu1 %v1600_v57  ;;  %1738 = vmatpush.msra.mxu3 %v4905_v40  ;;  %v114_v57 = vld [vmem:[%s6708_s1 + $0x2e8] sm:$0xff]  ;;  %v6771_v7 = vand.u32 4294901760, %v5099_v14 }
  0xe0   :  { %1550 = vmatpush.msra.mxu0 %v4976_v45  ;;  %1696 = vmatpush.msra.mxu2 %v4979_v48  ;;  %v5129_v25 = vand.u32 4294901760, %v114_v57 }
  0xe1   :  { %1607 = vmatpush.msra.mxu1 %v1606_v5  ;;  %1740 = vmatpush.msra.mxu3 %v4930_v12  ;;  %v6768_v5 = vand.u32 4294901760, %v5079_v9 }
  0xe2   :  { %1552 = vmatpush.msra.mxu0 %v4997_v36  ;;  %1699 = vmatpush.msra.mxu2 %v5001_v26 }
  0xe3   :  { %1613 = vmatpush.msra.mxu1 %v1612_v55  ;;  %1742 = vmatpush.msra.mxu3 %v4946_v22  ;;  %v1566_v55 = vsub.f32 %v5053_v38, %v6775_v58  ;;  %v1653_v35 = vsub.f32 %v5079_v9, %v6768_v5  ;;  %v5157_v5 = vsub.f32 %v114_v57, %v5129_v25  ;;  %v5240_v58 = vand.u32 4294901760, %v107_v6 }
  0xe4   :  { %1554 = vmatpush.msra.mxu0 %v5012_v44  ;;  %1702 = vmatpush.msra.mxu2 %v5016_v63 }
  0xe5   :  { %1619 = vmatpush.msra.mxu1 %v1618_v60  ;;  %1744 = vmatpush.msra.mxu3 %v4960_v28  ;;  %v1636_v60 = vand.u32 4294901760, %v1635_v59  ;;  %v1642_v59 = vand.u32 4294901760, %v1641_v23  ;;  %v1567_v62 = vand.u32 4294901760, %v1566_v55  ;;  %v1648_v23 = vand.u32 4294901760, %v1647_v27 }
  0xe6   :  { %1556 = vmatpush.msra.mxu0 %v5029_v54  ;;  %1705 = vmatpush.msra.mxu2 %v5033_v15  ;;  %v1659_v55 = vsub.f32 %v5099_v14, %v6771_v7  ;;  %v1654_v57 = vand.u32 4294901760, %v1653_v35  ;;  %v6777_v27 = vand.u32 4294901760, %v5144_v19  ;;  %v5179_v7 = vsub.f32 %v112_v49, %v5149_v30 }
  0xe7   :  { %1625 = vmatpush.msra.mxu1 %v1624_v20  ;;  %1746 = vmatpush.msra.mxu3 %v4976_v45  ;;  %v5137_v20 = vand.u32 4294901760, %v113_v4  ;;  %v6776_v35 = vand.u32 4294901760, %v5157_v5 }
  0xe8   :  { %1558 = vmatpush.msra.mxu0 %v5041_v52  ;;  %1708 = vmatpush.msra.mxu2 %v5045_v17  ;;  %v1660_v49 = vand.u32 4294901760, %v1659_v55 }
  0xe9   :  { %1631 = vmatpush.msra.mxu1 %v1630_v47  ;;  %1748 = vmatpush.msra.mxu3 %v4997_v36  ;;  %v111_v47 = vld [vmem:[%s6708_s1 + $0x2d0] sm:$0xff]  ;;  %v5165_v53 = vsub.f32 %v113_v4, %v5137_v20  ;;  %v1916_v4 = vsub.f32 %v5120_v29, %v6773_v10 }
  0xea   :  { %1560 = vmatpush.msra.mxu0 %v5068_v41  ;;  %1711 = vmatpush.msra.mxu2 %v5061_v1  ;;  %v5172_v24 = vand.u32 4294901760, %v111_v47 }
  0xeb   :  { %1637 = vmatpush.msra.mxu1 %v1636_v60  ;;  %1750 = vmatpush.msra.mxu3 %v5012_v44  ;;  %v110_v60 = vld [vmem:[%s6708_s1 + $0x2c8] sm:$0xff]  ;;  %v6778_v10 = vand.u32 4294901760, %v5165_v53  ;;  %v1917_v55 = vand.u32 4294901760, %v1916_v4  ;;  %v5223_v4 = vand.u32 4294901760, %v108_v39 }
  0xec   :  { %1562 = vmatpush.msra.mxu0 %v5093_v56  ;;  %1714 = vmatpush.msra.mxu2 %v5079_v9  ;;  %v5190_v0 = vand.u32 4294901760, %v110_v60 }
  0xed   :  { %1643 = vmatpush.msra.mxu1 %v1642_v59  ;;  %1752 = vmatpush.msra.mxu3 %v5029_v54  ;;  %v109_v59 = vld [vmem:[%s6708_s1 + $0x2c0] sm:$0xff]  ;;  %v1934_v2 = vsub.f32 %v5165_v53, %v6778_v10  ;;  %v6878_v10 = vand.u32 4294901760, %v5179_v7 }
  0xee   :  { %1568 = vmatmul.f32.vlgmr.msra.gmra.mxu0 %v1567_v62  ;;  %1717 = vmatpush.msra.mxu2 %v5099_v14  ;;  %v1665_v62 = vsub.f32 %v5127_v61, %v6774_v16  ;;  %v5206_v16 = vand.u32 4294901760, %v109_v59 }
  0xef   :  { %1769 = vmatpush.msrb.mxu0 %v1574_v11  ;;  %1649 = vmatpush.msra.mxu1 %v1648_v23  ;;  %v1922_v11 = vsub.f32 %v5144_v19, %v6777_v27  ;;  %v5204_v23 = vsub.f32 %v111_v47, %v5172_v24  ;;  %v1928_v47 = vsub.f32 %v5157_v5, %v6776_v35  ;;  %v6877_v35 = vand.u32 4294901760, %v4914_v46  ;;  %v105_v46 = vld [vmem:[%s6708_s1 + $0x2a0] sm:$0xff] }
  0xf0   :  { %1754 = vmatpush.msra.mxu3 %v5041_v52  ;;  %1720 = vmatpush.msra.mxu2 %v5127_v61 }
  0xf1   :  { %1773 = vmatpush.msrb.mxu0 %v1580_v43  ;;  %1655 = vmatpush.msra.mxu1 %v1654_v57  ;;  %v1666_v43 = vand.u32 4294901760, %v1665_v62  ;;  %v5221_v57 = vsub.f32 %v110_v60, %v5190_v0  ;;  %v6876_v62 = vand.u32 4294901760, %v5053_v38  ;;  %v1923_v60 = vand.u32 4294901760, %v1922_v11 }
  0xf2   :  { %1756 = vmatpush.msra.mxu3 %v5068_v41  ;;  %1723 = vmatmul.f32.vlgmr.msra.gmra.mxu2 %v5053_v38  ;;  %v6780_v27 = vand.u32 4294901760, %v5204_v23  ;;  %v6879_v38 = vand.u32 4294901760, %v4920_v13  ;;  %v5253_v11 = vsub.f32 %v108_v39, %v5223_v4 }
  0xf3   :  { %1777 = vmatpush.msrb.mxu0 %v1586_v8  ;;  %1873 = vmatpush.msrb.mxu2 %v5084_v3  ;;  %v106_v8 = vld [vmem:[%s6708_s1 + $0x2a8] sm:$0xff] }
  0xf4   :  { %1661 = vmatpush.msra.mxu1 %v1660_v49  ;;  %1758 = vmatpush.msra.mxu3 %v5093_v56  ;;  %v5238_v49 = vsub.f32 %v109_v59, %v5206_v16  ;;  %v1940_v56 = vsub.f32 %v5179_v7, %v6878_v10  ;;  %v6781_v59 = vand.u32 4294901760, %v5221_v57  ;;  %v1935_v10 = vand.u32 4294901760, %v1934_v2 }
  0xf5   :  { %1762 = vmatmul.f32.vlgmr.msra.gmra.mxu3 %v6876_v62  ;;  %1781 = vmatpush.msrb.mxu0 %v6877_v35  ;;  %v1929_v35 = vand.u32 4294901760, %v1928_v47  ;;  %v5255_v62 = vand.u32 4294901760, %v106_v8  ;;  %v1946_v13 = vsub.f32 %v5204_v23, %v6780_v27  ;;  %v5270_v47 = vand.u32 4294901760, %v105_v46 }
  0xf6   :  { %1875 = vmatpush.msrb.mxu2 %v5109_v51  ;;  %1918 = vmatpush.msrb.mxu3 %v1917_v55  ;;  %v104_v55 = vld [vmem:[%s6708_s1 + $0x298] sm:$0xff]  ;;  %v6782_v39 = vand.u32 4294901760, %v5238_v49  ;;  %v6880_v2 = vand.u32 4294901760, %v4936_v42  ;;  %v103_v42 = vld [vmem:[%s6708_s1 + $0x290] sm:$0xff] }
  0xf7   :  { %1667 = vmatpush.msra.mxu1 %v1666_v43  ;;  %1785 = vmatpush.msrb.mxu0 %v6879_v38  ;;  %v5268_v43 = vsub.f32 %v107_v6, %v5240_v58  ;;  %v1941_v38 = vand.u32 4294901760, %v1940_v56  ;;  %v5281_v6 = vsub.f32 %v106_v8, %v5255_v62  ;;  %v5283_v27 = vand.u32 4294901760, %v104_v55 }
  0xf8   :  { %1669 = vmatmul.f32.vlgmr.msra.gmra.mxu1 %v5023_v18  ;;  %1877 = vmatpush.msrb.mxu2 %v5129_v25  ;;  %v6881_v56 = vand.u32 4294901760, %v4963_v37  ;;  %v1958_v8 = vsub.f32 %v5238_v49, %v6782_v39  ;;  %v102_v37 = vld [vmem:[%s6708_s1 + $0x288] sm:$0xff] }
  0xf9   :  { %1836 = vmatpush.msrb.mxu1 %v4850_v21  ;;  %1924 = vmatpush.msrb.mxu3 %v1923_v60  ;;  %v1952_v21 = vsub.f32 %v5221_v57, %v6781_v59  ;;  %v6783_v60 = vand.u32 4294901760, %v5253_v11  ;;  %v5298_v59 = vsub.f32 %v105_v46, %v5270_v47  ;;  %v5314_v39 = vsub.f32 %v104_v55, %v5283_v27 }
  0xfa   :  { %1789 = vmatpush.msrb.mxu0 %v6880_v2  ;;  %1879 = vmatpush.msrb.mxu2 %v5137_v20  ;;  %v6784_v2 = vand.u32 4294901760, %v5268_v43 }
  0xfb   :  { %1838 = vmatpush.msrb.mxu1 %v4860_v31  ;;  %1930 = vmatpush.msrb.mxu3 %v1929_v35  ;;  %v156_v31 = vperm.slane %v4993_v32, 5  ;;  %v1947_v35 = vand.u32 4294901760, %v1946_v13  ;;  %v1964_v46 = vsub.f32 %v5253_v11, %v6783_v60  ;;  %v1981_v60 = vand.u32 4294901760, %v5298_v59 }
  0xfc   :  { %1793 = vmatpush.msrb.mxu0 %v6881_v56  ;;  %1881 = vmatpush.msrb.mxu2 %v5149_v30  ;;  %v6882_v56 = vand.u32 4294901760, %v4979_v48  ;;  %v101_v48 = vld [vmem:[%s6708_s1 + $0x280] sm:$0xff]  ;;  %v1970_v55 = vsub.f32 %v5268_v43, %v6784_v2  ;;  %v6884_v13 = vand.u32 4294901760, %v5016_v63  ;;  %v1987_v2 = vand.u32 4294901760, %v5314_v39 }
  0xfd   :  { %1840 = vmatpush.msrb.mxu1 %v4870_v34  ;;  %1936 = vmatpush.msrb.mxu3 %v1935_v10  ;;  %v5306_v34 = vand.u32 4294901760, %v103_v42  ;;  %v1953_v10 = vand.u32 4294901760, %v1952_v21  ;;  %v1959_v21 = vand.u32 4294901760, %v1958_v8  ;;  %v6886_v63 = vand.u32 4294901760, %v5033_v15 }
  0xfe   :  { %1797 = vmatpush.msrb.mxu0 %v6882_v56  ;;  %1883 = vmatpush.msrb.mxu2 %v5172_v24  ;;  %v6883_v56 = vand.u32 4294901760, %v5001_v26 }
  0xff   :  { %1842 = vmatpush.msrb.mxu1 %v4883_v33  ;;  %1942 = vmatpush.msrb.mxu3 %v1941_v38  ;;  %v5322_v33 = vand.u32 4294901760, %v102_v37  ;;  %v5324_v38 = vand.u32 4294901760, %v156_v31  ;;  %v5335_v26 = vsub.f32 %v103_v42, %v5306_v34 }
 0x100   :  { %1801 = vmatpush.msrb.mxu0 %v6883_v56  ;;  %1885 = vmatpush.msrb.mxu2 %v5190_v0  ;;  %v5337_v56 = vand.u32 4294901760, %v101_v48 }
 0x101   :  { %1844 = vmatpush.msrb.mxu1 %v4894_v50  ;;  %1948 = vmatpush.msrb.mxu3 %v1947_v35  ;;  %v1965_v50 = vand.u32 4294901760, %v1964_v46  ;;  %v6885_v35 = vand.u32 4294901760, %v5281_v6  ;;  %v5348_v42 = vsub.f32 %v102_v37, %v5322_v33  ;;  %v6887_v46 = vand.u32 4294901760, %v5045_v17 }
 0x102   :  { %1805 = vmatpush.msrb.mxu0 %v6884_v13  ;;  %1887 = vmatpush.msrb.mxu2 %v5206_v16  ;;  %v5351_v13 = vsub.f32 %v156_v31, %v5324_v38  ;;  %v1993_v15 = vand.u32 4294901760, %v5335_v26  ;;  %v5362_v37 = vsub.f32 %v101_v48, %v5337_v56  ;;  %v1988_v31 = vsub.f32 %v5314_v39, %v1987_v2 }
 0x103   :  { %1846 = vmatpush.msrb.mxu1 %v4905_v40  ;;  %1954 = vmatpush.msrb.mxu3 %v1953_v10  ;;  %v1976_v8 = vsub.f32 %v5281_v6, %v6885_v35  ;;  %v1971_v40 = vand.u32 4294901760, %v1970_v55  ;;  %v1982_v10 = vsub.f32 %v5298_v59, %v1981_v60  ;;  %v1999_v17 = vand.u32 4294901760, %v5348_v42 }
 0x104   :  { %1809 = vmatpush.msrb.mxu0 %v6886_v63  ;;  %1889 = vmatpush.msrb.mxu2 %v5223_v4  ;;  %v1906_v55 = vand.u32 4294901760, %v5351_v13  ;;  %v1989_v35 = vand.u32 4294901760, %v1988_v31 }
 0x105   :  { %1848 = vmatpush.msrb.mxu1 %v4930_v12  ;;  %1960 = vmatpush.msrb.mxu3 %v1959_v21  ;;  %v1977_v12 = vand.u32 4294901760, %v1976_v8  ;;  %v6888_v21 = vand.u32 4294901760, %v5061_v1  ;;  %v1983_v48 = vand.u32 4294901760, %v1982_v10  ;;  %v1994_v1 = vsub.f32 %v5335_v26, %v1993_v15 }
 0x106   :  { %1813 = vmatpush.msrb.mxu0 %v6887_v46  ;;  %1891 = vmatpush.msrb.mxu2 %v5240_v58  ;;  %v6890_v8 = vand.u32 4294901760, %v5099_v14 }
 0x107   :  { %1850 = vmatpush.msrb.mxu1 %v4946_v22  ;;  %1966 = vmatpush.msrb.mxu3 %v1965_v50  ;;  %v6889_v22 = vand.u32 4294901760, %v5079_v9  ;;  %v2005_v50 = vand.u32 4294901760, %v5362_v37  ;;  %v1907_v9 = vsub.f32 %v5351_v13, %v1906_v55  ;;  %v1995_v14 = vand.u32 4294901760, %v1994_v1 }
 0x108   :  { %1817 = vmatpush.msrb.mxu0 %v6888_v21  ;;  %1893 = vmatpush.msrb.mxu2 %v5255_v62  ;;  %v123_v21 = vld [vmem:[%s6708_s1 + $0x330] sm:$0xff] }
 0x109   :  { %1852 = vmatpush.msrb.mxu1 %v4960_v28  ;;  %1972 = vmatpush.msrb.mxu3 %v1971_v40  ;;  %v2000_v28 = vsub.f32 %v5348_v42, %v1999_v17  ;;  %v2006_v63 = vsub.f32 %v5362_v37, %v2005_v50 }
 0x10a   :  { %1821 = vmatpush.msrb.mxu0 %v6889_v22  ;;  %1895 = vmatpush.msrb.mxu2 %v5270_v47 }
 0x10b   :  { %1854 = vmatpush.msrb.mxu1 %v4976_v45  ;;  %1978 = vmatpush.msrb.mxu3 %v1977_v12  ;;  %v6891_v45 = vand.u32 4294901760, %v5127_v61  ;;  %v2001_v40 = vand.u32 4294901760, %v2000_v28  ;;  %v2007_v61 = vand.u32 4294901760, %v2006_v63 }
 0x10c   :  { %1825 = vmatpush.msrb.mxu0 %v6890_v8  ;;  %1897 = vmatpush.msrb.mxu2 %v5283_v27  ;;  %v5589_v8 = vand.u32 4294901760, %v123_v21 }
 0x10d   :  { %1856 = vmatpush.msrb.mxu1 %v4997_v36  ;;  %1984 = vmatpush.msrb.mxu3 %v1983_v48  ;;  %v1908_v36 = vand.u32 4294901760, %v1907_v9  ;;  %v121_v9 = vld [vmem:[%s6708_s1 + $0x320] sm:$0xff] }
 0x10e   :  { %1829 = vmatpush.msrb.mxu0 %v6891_v45  ;;  %1899 = vmatpush.msrb.mxu2 %v5306_v34  ;;  %v157_v45 = vperm.slane %v4993_v32, 6  ;;  %v120_v32 = vld [vmem:[%s6708_s1 + $0x318] sm:$0xff] }
 0x10f   :  { %1858 = vmatpush.msrb.mxu1 %v5012_v44  ;;  %1990 = vmatpush.msrb.mxu3 %v1989_v35  ;;  %v6892_v44 = vand.u32 4294901760, %v5120_v29 }
 0x110   :  { %1831 = vmatmul.f32.vlgmr.msrb.gmra.mxu0 %v5023_v18  ;;  %1901 = vmatpush.msrb.mxu2 %v5322_v33 }
 0x111   :  { %2016 = vmatpush.msra.mxu0 %v5120_v29  ;;  %1860 = vmatpush.msrb.mxu1 %v5029_v54  ;;  %v6893_v54 = vand.u32 4294901760, %v5144_v19  ;;  %v6895_v29 = vand.u32 4294901760, %v5157_v5 }
 0x112   :  { %1996 = vmatpush.msrb.mxu3 %v1995_v14  ;;  %1903 = vmatpush.msrb.mxu2 %v5337_v56 }
 0x113   :  { %2019 = vmatpush.msra.mxu0 %v5144_v19  ;;  %1862 = vmatpush.msrb.mxu1 %v5041_v52  ;;  %v6894_v52 = vld [vmem:[#allocation3_spill] sm:$0xff]  ;;  %v6901_v19 = vand.u32 4294901760, %v5253_v11 }
 0x114   :  { %2002 = vmatpush.msrb.mxu3 %v2001_v40  ;;  %1909 = vmatmul.f32.vlgmr.msrb.gmra.mxu2 %v1908_v36 }
 0x115   :  { %2022 = vmatpush.msra.mxu0 %v5157_v5  ;;  %2110 = vmatpush.msra.mxu2 %v6892_v44  ;;  %v6902_v5 = vand.u32 4294901760, %v5268_v43 }
 0x116   :  { %1864 = vmatpush.msrb.mxu1 %v5068_v41  ;;  %2008 = vmatpush.msrb.mxu3 %v2007_v61  ;;  %v6896_v41 = vand.u32 4294901760, %v5165_v53  ;;  %v5620_v61 = vand.u32 4294901760, %v121_v9 }
 0x117   :  { %2010 = vmatmul.f32.vlgmr.msrb.gmra.mxu3 %v5324_v38  ;;  %2025 = vmatpush.msra.mxu0 %v5165_v53  ;;  %v6899_v53 = vand.u32 4294901760, %v5221_v57 }
 0x118   :  { %2114 = vmatpush.msra.mxu2 %v6893_v54  ;;  %2177 = vmatpush.msra.mxu3 %v5084_v3  ;;  %v5624_v54 = vsub.f32 %v123_v21, %v5589_v8 }
 0x119   :  { %1866 = vmatpush.msrb.mxu1 %v6894_v52  ;;  %2028 = vmatpush.msra.mxu0 %v5179_v7 }
 0x11a   :  { %1868 = vmatmul.f32.vlgmr.msrb.gmra.mxu1 %v5023_v18  ;;  %2118 = vmatpush.msra.mxu2 %v6895_v29  ;;  %v6897_v18 = vand.u32 4294901760, %v5179_v7  ;;  %v130_v7 = vld [vmem:[%s6708_s1 + $0x368] sm:$0xff]  ;;  %v119_v29 = vld [vmem:[%s6708_s1 + $0x310] sm:$0xff] }
 0x11b   :  { %2069 = vmatpush.msra.mxu1 %v5084_v3  ;;  %2179 = vmatpush.msra.mxu3 %v5109_v51  ;;  %v6898_v3 = vand.u32 4294901760, %v5204_v23 }
 0x11c   :  { %2031 = vmatpush.msra.mxu0 %v5204_v23  ;;  %2122 = vmatpush.msra.mxu2 %v6896_v41  ;;  %v5483_v23 = vand.u32 4294901760, %v130_v7  ;;  %v5631_v41 = vand.u32 4294901760, %v157_v45 }
 0x11d   :  { %2071 = vmatpush.msra.mxu1 %v5109_v51  ;;  %2181 = vmatpush.msra.mxu3 %v5129_v25 }
 0x11e   :  { %2034 = vmatpush.msra.mxu0 %v5221_v57  ;;  %2126 = vmatpush.msra.mxu2 %v6897_v18 }
 0x11f   :  { %2073 = vmatpush.msra.mxu1 %v5129_v25  ;;  %2183 = vmatpush.msra.mxu3 %v5137_v20  ;;  %v6900_v25 = vand.u32 4294901760, %v5238_v49 }
 0x120   :  { %2037 = vmatpush.msra.mxu0 %v5238_v49  ;;  %2130 = vmatpush.msra.mxu2 %v6898_v3  ;;  %v5637_v3 = vand.u32 4294901760, %v120_v32 }
 0x121   :  { %2075 = vmatpush.msra.mxu1 %v5137_v20  ;;  %2185 = vmatpush.msra.mxu3 %v5149_v30 }
 0x122   :  { %2040 = vmatpush.msra.mxu0 %v5253_v11  ;;  %2134 = vmatpush.msra.mxu2 %v6899_v53 }
 0x123   :  { %2077 = vmatpush.msra.mxu1 %v5149_v30  ;;  %2187 = vmatpush.msra.mxu3 %v5172_v24  ;;  %v132_v30 = vld [vmem:[%s6708_s1 + $0x378] sm:$0xff] }
 0x124   :  { %2043 = vmatpush.msra.mxu0 %v5268_v43  ;;  %2138 = vmatpush.msra.mxu2 %v6900_v25  ;;  %v5463_v51 = vand.u32 4294901760, %v132_v30 }
 0x125   :  { %2079 = vmatpush.msra.mxu1 %v5172_v24  ;;  %2189 = vmatpush.msra.mxu3 %v5190_v0  ;;  %v131_v24 = vld [vmem:[%s6708_s1 + $0x370] sm:$0xff] }
 0x126   :  { %2046 = vmatpush.msra.mxu0 %v5281_v6  ;;  %2142 = vmatpush.msra.mxu2 %v6901_v19  ;;  %v5473_v20 = vand.u32 4294901760, %v131_v24  ;;  %v5486_v57 = vsub.f32 %v132_v30, %v5463_v51 }
 0x127   :  { %2081 = vmatpush.msra.mxu1 %v5190_v0  ;;  %2191 = vmatpush.msra.mxu3 %v5206_v16  ;;  %v6903_v0 = vand.u32 4294901760, %v5281_v6 }
 0x128   :  { %2049 = vmatpush.msra.mxu0 %v5298_v59  ;;  %2146 = vmatpush.msra.mxu2 %v6902_v5  ;;  %v5499_v49 = vsub.f32 %v131_v24, %v5473_v20  ;;  %v127_v59 = vld [vmem:[%s6708_s1 + $0x350] sm:$0xff]  ;;  %v5649_v5 = vand.u32 4294901760, %v119_v29  ;;  %v6788_v24 = vand.u32 4294901760, %v5624_v54 }
 0x129   :  { %2083 = vmatpush.msra.mxu1 %v5206_v16  ;;  %2193 = vmatpush.msra.mxu3 %v5223_v4  ;;  %v129_v16 = vld [vmem:[%s6708_s1 + $0x360] sm:$0xff]  ;;  %v5518_v43 = vand.u32 4294901760, %v127_v59 }
 0x12a   :  { %2052 = vmatpush.msra.mxu0 %v5314_v39  ;;  %2150 = vmatpush.msra.mxu2 %v6903_v0  ;;  %v5513_v39 = vsub.f32 %v130_v7, %v5483_v23  ;;  %v5653_v0 = vsub.f32 %v121_v9, %v5620_v61  ;;  %v118_v7 = vld [vmem:[%s6708_s1 + $0x308] sm:$0xff] }
 0x12b   :  { %2085 = vmatpush.msra.mxu1 %v5223_v4  ;;  %2195 = vmatpush.msra.mxu3 %v5240_v58  ;;  %v128_v4 = vld [vmem:[%s6708_s1 + $0x358] sm:$0xff]  ;;  %v5549_v46 = vsub.f32 %v127_v59, %v5518_v43 }
 0x12c   :  { %2055 = vmatpush.msra.mxu0 %v5335_v26  ;;  %2154 = vmatpush.msra.mxu2 %v1981_v60  ;;  %v5507_v11 = vand.u32 4294901760, %v128_v4  ;;  %v126_v60 = vld [vmem:[%s6708_s1 + $0x348] sm:$0xff]  ;;  %v125_v26 = vld [vmem:[%s6708_s1 + $0x340] sm:$0xff]  ;;  %v2268_v10 = vand.u32 4294901760, %v5513_v39 }
 0x12d   :  { %2087 = vmatpush.msra.mxu1 %v5240_v58  ;;  %2197 = vmatpush.msra.mxu3 %v5255_v62  ;;  %v5496_v58 = vand.u32 4294901760, %v129_v16  ;;  %v6793_v1 = vand.u32 4294901760, %v5549_v46 }
 0x12e   :  { %2058 = vmatpush.msra.mxu0 %v5348_v42  ;;  %2158 = vmatpush.msra.mxu2 %v1987_v2  ;;  %v5533_v2 = vsub.f32 %v128_v4, %v5507_v11  ;;  %v5543_v42 = vand.u32 4294901760, %v126_v60  ;;  %v2269_v48 = vsub.f32 %v5513_v39, %v2268_v10 }
 0x12f   :  { %2089 = vmatpush.msra.mxu1 %v5255_v62  ;;  %2199 = vmatpush.msra.mxu3 %v5270_v47  ;;  %v2256_v62 = vand.u32 4294901760, %v5486_v57  ;;  %v5527_v6 = vsub.f32 %v129_v16, %v5496_v58  ;;  %v2287_v40 = vsub.f32 %v5549_v46, %v6793_v1  ;;  %v5661_v16 = vsub.f32 %v157_v45, %v5631_v41 }
 0x130   :  { %2061 = vmatpush.msra.mxu0 %v5362_v37  ;;  %2162 = vmatpush.msra.mxu2 %v1993_v15  ;;  %v124_v15 = vld [vmem:[%s6708_s1 + $0x338] sm:$0xff]  ;;  %v5559_v37 = vand.u32 4294901760, %v125_v26  ;;  %v6795_v31 = vand.u32 4294901760, %v5533_v2  ;;  %v2270_v14 = vand.u32 4294901760, %v2269_v48  ;;  %v6785_v48 = vand.u32 4294901760, %v5653_v0 }
 0x131   :  { %2091 = vmatpush.msra.mxu1 %v5270_v47  ;;  %2201 = vmatpush.msra.mxu3 %v5283_v27  ;;  %v2262_v47 = vand.u32 4294901760, %v5499_v49  ;;  %v6798_v12 = vand.u32 4294901760, %v5527_v6  ;;  %v5573_v22 = vand.u32 4294901760, %v124_v15  ;;  %v2288_v19 = vand.u32 4294901760, %v2287_v40 }
 0x132   :  { %2064 = vmatmul.f32.vlgmr.msra.gmra.mxu0 %v5351_v13  ;;  %2166 = vmatpush.msra.mxu2 %v1999_v17  ;;  %v5592_v28 = vsub.f32 %v125_v26, %v5559_v37  ;;  %v5669_v26 = vsub.f32 %v120_v32, %v5637_v3 }
 0x133   :  { %2214 = vmatpush.msrb.mxu0 %v5463_v51  ;;  %2093 = vmatpush.msra.mxu1 %v5283_v27  ;;  %v2257_v27 = vsub.f32 %v5486_v57, %v2256_v62  ;;  %v2275_v35 = vsub.f32 %v5527_v6, %v6798_v12 }
 0x134   :  { %2203 = vmatpush.msra.mxu3 %v5306_v34  ;;  %2170 = vmatpush.msra.mxu2 %v2005_v50  ;;  %v6790_v44 = vand.u32 4294901760, %v5592_v28  ;;  %v6787_v40 = vand.u32 4294901760, %v5669_v26 }
 0x135   :  { %2216 = vmatpush.msrb.mxu0 %v5473_v20  ;;  %2095 = vmatpush.msra.mxu1 %v5306_v34  ;;  %v2263_v34 = vsub.f32 %v5499_v49, %v2262_v47  ;;  %v2258_v17 = vand.u32 4294901760, %v2257_v27  ;;  %v2276_v36 = vand.u32 4294901760, %v2275_v35  ;;  %v148_v27 = vld [vmem:[%s6708_s1 + $0x3f8] sm:$0xff] }
 0x136   :  { %2205 = vmatpush.msra.mxu3 %v5322_v33  ;;  %2172 = vmatmul.f32.vlgmr.msra.gmra.mxu2 %v5324_v38  ;;  %v2299_v30 = vsub.f32 %v5592_v28, %v6790_v44  ;;  %v5692_v35 = vand.u32 4294901760, %v148_v27 }
 0x137   :  { %2218 = vmatpush.msrb.mxu0 %v5483_v23  ;;  %2357 = vmatpush.msrb.mxu2 %v5486_v57  ;;  %v2264_v50 = vand.u32 4294901760, %v2263_v34  ;;  %v117_v34 = vld [vmem:[%s6708_s1 + $0x300] sm:$0xff]  ;;  %v140_v57 = vld [vmem:[%s6708_s1 + $0x3b8] sm:$0xff] }
 0x138   :  { %2097 = vmatpush.msra.mxu1 %v5322_v33  ;;  %2207 = vmatpush.msra.mxu3 %v5337_v56  ;;  %v5576_v33 = vsub.f32 %v126_v60, %v5543_v42  ;;  %v2300_v21 = vand.u32 4294901760, %v2299_v30  ;;  %v145_v30 = vld [vmem:[%s6708_s1 + $0x3e0] sm:$0xff] }
 0x139   :  { %2209 = vmatmul.f32.vlgmr.msra.gmra.mxu3 %v5324_v38  ;;  %2220 = vmatpush.msrb.mxu0 %v5496_v58  ;;  %v122_v38 = vld [vmem:[%s6708_s1 + $0x328] sm:$0xff] }
 0x13a   :  { %2360 = vmatpush.msrb.mxu2 %v5499_v49  ;;  %2410 = vmatpush.msrb.mxu3 %v5463_v51  ;;  %v5605_v63 = vand.u32 4294901760, %v122_v38  ;;  %v6792_v13 = vand.u32 4294901760, %v5576_v33  ;;  %v139_v49 = vld [vmem:[%s6708_s1 + $0x3b0] sm:$0xff] }
 0x13b   :  { %2099 = vmatpush.msra.mxu1 %v5337_v56  ;;  %2222 = vmatpush.msrb.mxu0 %v5507_v11  ;;  %v2281_v56 = vsub.f32 %v5533_v2, %v6795_v31 }
 0x13c   :  { %2103 = vmatmul.f32.vlgmr.msra.gmra.mxu1 %v1906_v55  ;;  %2363 = vmatpush.msrb.mxu2 %v5513_v39  ;;  %v5609_v55 = vsub.f32 %v124_v15, %v5573_v22  ;;  %v2293_v18 = vsub.f32 %v5576_v33, %v6792_v13  ;;  %v5641_v25 = vsub.f32 %v122_v38, %v5605_v63  ;;  %v5676_v15 = vand.u32 4294901760, %v118_v7 }
 0x13d   :  { %2259 = vmatpush.msrb.mxu1 %v2258_v17  ;;  %2412 = vmatpush.msrb.mxu3 %v5473_v20  ;;  %v2282_v52 = vand.u32 4294901760, %v2281_v56  ;;  %v2311_v17 = vsub.f32 %v5624_v54, %v6788_v24  ;;  %v5687_v38 = vsub.f32 %v119_v29, %v5649_v5  ;;  %v147_v56 = vld [vmem:[%s6708_s1 + $0x3f0] sm:$0xff]  ;;  %v2323_v29 = vsub.f32 %v5653_v0, %v6785_v48 }
 0x13e   :  { %2224 = vmatpush.msrb.mxu0 %v5518_v43  ;;  %2366 = vmatpush.msrb.mxu2 %v5527_v6  ;;  %v6789_v53 = vand.u32 4294901760, %v5609_v55  ;;  %v2294_v4 = vand.u32 4294901760, %v2293_v18  ;;  %v6786_v60 = vand.u32 4294901760, %v5641_v25  ;;  %v5707_v32 = vsub.f32 %v118_v7, %v5676_v15 }
 0x13f   :  { %2265 = vmatpush.msrb.mxu1 %v2264_v50  ;;  %2414 = vmatpush.msrb.mxu3 %v5483_v23  ;;  %v2247_v50 = vand.u32 4294901760, %v5661_v16  ;;  %v6791_v18 = vand.u32 4294901760, %v5687_v38 }
 0x140   :  { %2226 = vmatpush.msrb.mxu0 %v5543_v42  ;;  %2369 = vmatpush.msrb.mxu2 %v5533_v2  ;;  %v2305_v59 = vsub.f32 %v5609_v55, %v6789_v53  ;;  %v2317_v45 = vsub.f32 %v5641_v25, %v6786_v60  ;;  %v144_v60 = vld [vmem:[%s6708_s1 + $0x3d8] sm:$0xff] }
 0x141   :  { %2271 = vmatpush.msrb.mxu1 %v2270_v14  ;;  %2416 = vmatpush.msrb.mxu3 %v5496_v58  ;;  %v5701_v14 = vand.u32 4294901760, %v117_v34  ;;  %v2248_v7 = vsub.f32 %v5661_v16, %v2247_v50  ;;  %v5757_v44 = vand.u32 4294901760, %v144_v60 }
 0x142   :  { %2228 = vmatpush.msrb.mxu0 %v5559_v37  ;;  %2372 = vmatpush.msrb.mxu2 %v5549_v46  ;;  %v2306_v9 = vand.u32 4294901760, %v2305_v59  ;;  %v2318_v59 = vand.u32 4294901760, %v2317_v45  ;;  %v2324_v45 = vand.u32 4294901760, %v2323_v29 }
 0x143   :  { %2277 = vmatpush.msrb.mxu1 %v2276_v36  ;;  %2418 = vmatpush.msrb.mxu3 %v5507_v11  ;;  %v146_v36 = vld [vmem:[%s6708_s1 + $0x3e8] sm:$0xff]  ;;  %v2249_v24 = vand.u32 4294901760, %v2248_v7 }
 0x144   :  { %2230 = vmatpush.msrb.mxu0 %v5573_v22  ;;  %2375 = vmatpush.msrb.mxu2 %v5576_v33  ;;  %v5737_v48 = vand.u32 4294901760, %v146_v36 }
 0x145   :  { %2283 = vmatpush.msrb.mxu1 %v2282_v52  ;;  %2420 = vmatpush.msrb.mxu3 %v5518_v43  ;;  %v2312_v52 = vand.u32 4294901760, %v2311_v17  ;;  %v5735_v17 = vsub.f32 %v117_v34, %v5701_v14  ;;  %v2335_v34 = vsub.f32 %v5687_v38, %v6791_v18 }
 0x146   :  { %2232 = vmatpush.msrb.mxu0 %v5589_v8  ;;  %2378 = vmatpush.msrb.mxu2 %v5592_v28  ;;  %v5765_v18 = vsub.f32 %v146_v36, %v5737_v48 }
 0x147   :  { %2289 = vmatpush.msrb.mxu1 %v2288_v19  ;;  %2422 = vmatpush.msrb.mxu3 %v5543_v42  ;;  %v5717_v19 = vand.u32 4294901760, %v147_v56  ;;  %v2336_v36 = vand.u32 4294901760, %v2335_v34 }
 0x148   :  { %2234 = vmatpush.msrb.mxu0 %v5605_v63  ;;  %2381 = vmatpush.msrb.mxu2 %v5609_v55  ;;  %v6799_v34 = vand.u32 4294901760, %v5765_v18 }
 0x149   :  { %2295 = vmatpush.msrb.mxu1 %v2294_v4  ;;  %2424 = vmatpush.msrb.mxu3 %v5559_v37  ;;  %v5728_v4 = vsub.f32 %v148_v27, %v5692_v35  ;;  %v6794_v27 = vand.u32 4294901760, %v5707_v32 }
 0x14a   :  { %2236 = vmatpush.msrb.mxu0 %v5620_v61  ;;  %2384 = vmatpush.msrb.mxu2 %v5624_v54 }
 0x14b   :  { %2301 = vmatpush.msrb.mxu1 %v2300_v21  ;;  %2426 = vmatpush.msrb.mxu3 %v5573_v22  ;;  %v2329_v21 = vsub.f32 %v5669_v26, %v6787_v40  ;;  %v5752_v40 = vsub.f32 %v147_v56, %v5717_v19  ;;  %v6796_v53 = vand.u32 4294901760, %v5728_v4  ;;  %v6797_v56 = vand.u32 4294901760, %v5735_v17 }
 0x14c   :  { %2238 = vmatpush.msrb.mxu0 %v5637_v3  ;;  %2387 = vmatpush.msrb.mxu2 %v5641_v25  ;;  %v2341_v7 = vsub.f32 %v5707_v32, %v6794_v27  ;;  %v5787_v27 = vsub.f32 %v144_v60, %v5757_v44 }
 0x14d   :  { %2307 = vmatpush.msrb.mxu1 %v2306_v9  ;;  %2428 = vmatpush.msrb.mxu3 %v5589_v8  ;;  %v5745_v9 = vand.u32 4294901760, %v145_v30  ;;  %v2330_v29 = vand.u32 4294901760, %v2329_v21  ;;  %v6800_v21 = vand.u32 4294901760, %v5752_v40 }
 0x14e   :  { %2240 = vmatpush.msrb.mxu0 %v5649_v5  ;;  %2390 = vmatpush.msrb.mxu2 %v5653_v0  ;;  %v2342_v60 = vand.u32 4294901760, %v2341_v7  ;;  %v6802_v12 = vand.u32 4294901760, %v5787_v27 }
 0x14f   :  { %2313 = vmatpush.msrb.mxu1 %v2312_v52  ;;  %2430 = vmatpush.msrb.mxu3 %v5605_v63  ;;  %v143_v52 = vld [vmem:[%s6708_s1 + $0x3d0] sm:$0xff]  ;;  %v5773_v13 = vsub.f32 %v145_v30, %v5745_v9  ;;  %v2598_v30 = vsub.f32 %v5728_v4, %v6796_v53 }
 0x150   :  { %2242 = vmatpush.msrb.mxu0 %v5676_v15  ;;  %2393 = vmatpush.msrb.mxu2 %v5669_v26  ;;  %v5780_v1 = vand.u32 4294901760, %v143_v52 }
 0x151   :  { %2319 = vmatpush.msrb.mxu1 %v2318_v59  ;;  %2432 = vmatpush.msrb.mxu3 %v5620_v61  ;;  %v142_v59 = vld [vmem:[%s6708_s1 + $0x3c8] sm:$0xff]  ;;  %v6801_v53 = vand.u32 4294901760, %v5773_v13  ;;  %v2599_v7 = vand.u32 4294901760, %v2598_v30  ;;  %v5831_v30 = vand.u32 4294901760, %v140_v57 }
 0x152   :  { %2244 = vmatpush.msrb.mxu0 %v5701_v14  ;;  %2396 = vmatpush.msrb.mxu2 %v5687_v38  ;;  %v5798_v31 = vand.u32 4294901760, %v142_v59 }
 0x153   :  { %2325 = vmatpush.msrb.mxu1 %v2324_v45  ;;  %2434 = vmatpush.msrb.mxu3 %v5637_v3  ;;  %v141_v45 = vld [vmem:[%s6708_s1 + $0x3c0] sm:$0xff]  ;;  %v2616_v39 = vsub.f32 %v5773_v13, %v6801_v53  ;;  %v2622_v53 = vsub.f32 %v5787_v27, %v6802_v12 }
 0x154   :  { %2250 = vmatmul.f32.vlgmr.msrb.gmra.mxu0 %v2249_v24  ;;  %2399 = vmatpush.msrb.mxu2 %v5707_v32  ;;  %v2347_v24 = vsub.f32 %v5735_v17, %v6797_v56  ;;  %v5814_v56 = vand.u32 4294901760, %v141_v45 }
 0x155   :  { %2451 = vmatpush.msra.mxu0 %v2256_v62  ;;  %2331 = vmatpush.msrb.mxu1 %v2330_v29  ;;  %v2604_v62 = vsub.f32 %v5752_v40, %v6800_v21  ;;  %v5812_v29 = vsub.f32 %v143_v52, %v5780_v1  ;;  %v2610_v52 = vsub.f32 %v5765_v18, %v6799_v34  ;;  %v5848_v21 = vand.u32 4294901760, %v139_v49 }
 0x156   :  { %2436 = vmatpush.msrb.mxu3 %v5649_v5  ;;  %2402 = vmatpush.msrb.mxu2 %v5735_v17  ;;  %v2623_v12 = vand.u32 4294901760, %v2622_v53  ;;  %v6907_v53 = vand.u32 4294901760, %v5576_v33 }
 0x157   :  { %2455 = vmatpush.msra.mxu0 %v2262_v47  ;;  %2337 = vmatpush.msrb.mxu1 %v2336_v36  ;;  %v2348_v47 = vand.u32 4294901760, %v2347_v24  ;;  %v5829_v36 = vsub.f32 %v142_v59, %v5798_v31  ;;  %v6904_v24 = vand.u32 4294901760, %v5527_v6  ;;  %v2605_v59 = vand.u32 4294901760, %v2604_v62  ;;  %v137_v6 = vld [vmem:[%s6708_s1 + $0x3a0] sm:$0xff] }
 0x158   :  { %2438 = vmatpush.msrb.mxu3 %v5676_v15  ;;  %2405 = vmatmul.f32.vlgmr.msrb.gmra.mxu2 %v5661_v16  ;;  %v6803_v34 = vand.u32 4294901760, %v5812_v29  ;;  %v6905_v16 = vand.u32 4294901760, %v5533_v2  ;;  %v5861_v62 = vsub.f32 %v140_v57, %v5831_v30 }
 0x159   :  { %2459 = vmatpush.msra.mxu0 %v2268_v10  ;;  %2555 = vmatpush.msra.mxu2 %v5692_v35  ;;  %v138_v10 = vld [vmem:[%s6708_s1 + $0x3a8] sm:$0xff] }
 0x15a   :  { %2343 = vmatpush.msrb.mxu1 %v2342_v60  ;;  %2440 = vmatpush.msrb.mxu3 %v5701_v14  ;;  %v5846_v60 = vsub.f32 %v141_v45, %v5814_v56  ;;  %v6804_v45 = vand.u32 4294901760, %v5829_v36  ;;  %v2628_v2 = vsub.f32 %v5812_v29, %v6803_v34 }
 0x15b   :  { %2444 = vmatmul.f32.vlgmr.msrb.gmra.mxu3 %v2247_v50  ;;  %2463 = vmatpush.msra.mxu0 %v6904_v24  ;;  %v2611_v50 = vand.u32 4294901760, %v2610_v52  ;;  %v5863_v24 = vand.u32 4294901760, %v138_v10  ;;  %v5876_v52 = vsub.f32 %v139_v49, %v5848_v21 }
 0x15c   :  { %2557 = vmatpush.msra.mxu2 %v5717_v19  ;;  %2600 = vmatpush.msra.mxu3 %v2599_v7  ;;  %v2617_v7 = vand.u32 4294901760, %v2616_v39  ;;  %v6805_v57 = vand.u32 4294901760, %v5846_v60  ;;  %v6906_v39 = vand.u32 4294901760, %v5549_v46  ;;  %v135_v46 = vld [vmem:[%s6708_s1 + $0x390] sm:$0xff] }
 0x15d   :  { %2349 = vmatpush.msrb.mxu1 %v2348_v47  ;;  %2467 = vmatpush.msra.mxu0 %v6905_v16  ;;  %v136_v47 = vld [vmem:[%s6708_s1 + $0x398] sm:$0xff]  ;;  %v5878_v16 = vand.u32 4294901760, %v137_v6  ;;  %v5889_v49 = vsub.f32 %v138_v10, %v5863_v24  ;;  %v2629_v10 = vand.u32 4294901760, %v2628_v2  ;;  %v6909_v2 = vand.u32 4294901760, %v5861_v62 }
 0x15e   :  { %2351 = vmatmul.f32.vlgmr.msrb.gmra.mxu1 %v5631_v41  ;;  %2559 = vmatpush.msra.mxu2 %v5737_v48  ;;  %v5891_v34 = vand.u32 4294901760, %v136_v47 }
 0x15f   :  { %2518 = vmatpush.msra.mxu1 %v5463_v51  ;;  %2606 = vmatpush.msra.mxu3 %v2605_v59  ;;  %v2634_v51 = vsub.f32 %v5829_v36, %v6804_v45  ;;  %v6806_v45 = vand.u32 4294901760, %v5876_v52  ;;  %v5908_v33 = vsub.f32 %v137_v6, %v5878_v16  ;;  %v6908_v59 = vand.u32 4294901760, %v5592_v28  ;;  %v133_v28 = vld [vmem:[%s6708_s1 + $0x380] sm:$0xff] }
 0x160   :  { %2471 = vmatpush.msra.mxu0 %v6906_v39  ;;  %2561 = vmatpush.msra.mxu2 %v5745_v9  ;;  %v2640_v39 = vsub.f32 %v5846_v60, %v6805_v57  ;;  %v2646_v6 = vsub.f32 %v5861_v62, %v6909_v2  ;;  %v5924_v57 = vsub.f32 %v136_v47, %v5891_v34 }
 0x161   :  { %2520 = vmatpush.msra.mxu1 %v5473_v20  ;;  %2612 = vmatpush.msra.mxu3 %v2611_v50  ;;  %v3632_v20 = vld [vmem:[%s6709_s0] sm:$0xff]  ;;  %v2652_v47 = vsub.f32 %v5876_v52, %v6806_v45  ;;  %v2663_v2 = vand.u32 4294901760, %v5908_v33 }
 0x162   :  { %2475 = vmatpush.msra.mxu0 %v6907_v53  ;;  %2563 = vmatpush.msra.mxu2 %v5757_v44  ;;  %v158_v50 = vperm.slane %v3632_v20, 7  ;;  %v134_v53 = vld [vmem:[%s6708_s1 + $0x388] sm:$0xff]  ;;  %v6911_v20 = vand.u32 4294901760, %v5624_v54  ;;  %v2669_v45 = vand.u32 4294901760, %v5924_v57  ;;  %v6913_v54 = vand.u32 4294901760, %v5641_v25 }
 0x163   :  { %2522 = vmatpush.msra.mxu1 %v5483_v23  ;;  %2618 = vmatpush.msra.mxu3 %v2617_v7  ;;  %v5916_v23 = vand.u32 4294901760, %v135_v46  ;;  %v2635_v7 = vand.u32 4294901760, %v2634_v51  ;;  %v2641_v51 = vand.u32 4294901760, %v2640_v39 }
 0x164   :  { %2479 = vmatpush.msra.mxu0 %v6908_v59  ;;  %2565 = vmatpush.msra.mxu2 %v5780_v1  ;;  %v6910_v59 = vand.u32 4294901760, %v5609_v55 }
 0x165   :  { %2524 = vmatpush.msra.mxu1 %v5496_v58  ;;  %2624 = vmatpush.msra.mxu3 %v2623_v12  ;;  %v5932_v58 = vand.u32 4294901760, %v134_v53  ;;  %v5934_v12 = vand.u32 4294901760, %v158_v50  ;;  %v5945_v55 = vsub.f32 %v135_v46, %v5916_v23 }
 0x166   :  { %2483 = vmatpush.msra.mxu0 %v6910_v59  ;;  %2567 = vmatpush.msra.mxu2 %v5798_v31  ;;  %v5947_v59 = vand.u32 4294901760, %v133_v28 }
 0x167   :  { %2526 = vmatpush.msra.mxu1 %v5507_v11  ;;  %2630 = vmatpush.msra.mxu3 %v2629_v10  ;;  %v2647_v11 = vand.u32 4294901760, %v2646_v6  ;;  %v6912_v10 = vand.u32 4294901760, %v5889_v49  ;;  %v5958_v46 = vsub.f32 %v134_v53, %v5932_v58  ;;  %v6914_v6 = vand.u32 4294901760, %v5653_v0 }
 0x168   :  { %2487 = vmatpush.msra.mxu0 %v6911_v20  ;;  %2569 = vmatpush.msra.mxu2 %v5814_v56  ;;  %v5961_v20 = vsub.f32 %v158_v50, %v5934_v12  ;;  %v2675_v25 = vand.u32 4294901760, %v5945_v55  ;;  %v5972_v53 = vsub.f32 %v133_v28, %v5947_v59  ;;  %v2670_v50 = vsub.f32 %v5924_v57, %v2669_v45 }
 0x169   :  { %2528 = vmatpush.msra.mxu1 %v5518_v43  ;;  %2636 = vmatpush.msra.mxu3 %v2635_v7  ;;  %v2658_v39 = vsub.f32 %v5889_v49, %v6912_v10  ;;  %v2653_v43 = vand.u32 4294901760, %v2652_v47  ;;  %v2664_v7 = vsub.f32 %v5908_v33, %v2663_v2  ;;  %v2681_v0 = vand.u32 4294901760, %v5958_v46 }
 0x16a   :  { %2491 = vmatpush.msra.mxu0 %v6913_v54  ;;  %2571 = vmatpush.msra.mxu2 %v5831_v30  ;;  %v2588_v47 = vand.u32 4294901760, %v5961_v20  ;;  %v2671_v10 = vand.u32 4294901760, %v2670_v50 }
 0x16b   :  { %2530 = vmatpush.msra.mxu1 %v5543_v42  ;;  %2642 = vmatpush.msra.mxu3 %v2641_v51  ;;  %v2659_v42 = vand.u32 4294901760, %v2658_v39  ;;  %v6915_v51 = vand.u32 4294901760, %v5669_v26  ;;  %v2665_v28 = vand.u32 4294901760, %v2664_v7  ;;  %v2676_v26 = vsub.f32 %v5945_v55, %v2675_v25  ;;  %v2926_v7 = vld [vmem:[%s6711_s3 + $0xf0] sm:$0xff] }
 0x16c   :  { %2495 = vmatpush.msra.mxu0 %v6914_v6  ;;  %2573 = vmatpush.msra.mxu2 %v5848_v21  ;;  %v6917_v39 = vand.u32 4294901760, %v5707_v32  ;;  %v6109_v6 = vand.u32 4294901760, %v2926_v7 }
 0x16d   :  { %2532 = vmatpush.msra.mxu1 %v5559_v37  ;;  %2648 = vmatpush.msra.mxu3 %v2647_v11  ;;  %v6916_v37 = vand.u32 4294901760, %v5687_v38  ;;  %v2687_v11 = vand.u32 4294901760, %v5972_v53  ;;  %v2589_v38 = vsub.f32 %v5961_v20, %v2588_v47  ;;  %v2677_v32 = vand.u32 4294901760, %v2676_v26 }
 0x16e   :  { %2499 = vmatpush.msra.mxu0 %v6915_v51  ;;  %2575 = vmatpush.msra.mxu2 %v5863_v24 }
 0x16f   :  { %2534 = vmatpush.msra.mxu1 %v5573_v22  ;;  %2654 = vmatpush.msra.mxu3 %v2653_v43  ;;  %v2682_v22 = vsub.f32 %v5958_v46, %v2681_v0  ;;  %v2688_v54 = vsub.f32 %v5972_v53, %v2687_v11 }
 0x170   :  { %2503 = vmatpush.msra.mxu0 %v6916_v37  ;;  %2577 = vmatpush.msra.mxu2 %v5878_v16  ;;  %v2916_v37 = vld [vmem:[%s6711_s3 + $0xa0] sm:$0xff] }
 0x171   :  { %2536 = vmatpush.msra.mxu1 %v5589_v8  ;;  %2660 = vmatpush.msra.mxu3 %v2659_v42  ;;  %v6918_v8 = vand.u32 4294901760, %v5735_v17  ;;  %v2683_v43 = vand.u32 4294901760, %v2682_v22  ;;  %v2689_v17 = vand.u32 4294901760, %v2688_v54  ;;  %v2920_v42 = vld [vmem:[%s6711_s3 + $0xc0] sm:$0xff] }
 0x172   :  { %2507 = vmatpush.msra.mxu0 %v6917_v39  ;;  %2579 = vmatpush.msra.mxu2 %v5891_v34  ;;  %v6139_v39 = vand.u32 4294901760, %v2916_v37 }
 0x173   :  { %2538 = vmatpush.msra.mxu1 %v5605_v63  ;;  %2666 = vmatpush.msra.mxu3 %v2665_v28  ;;  %v2590_v63 = vand.u32 4294901760, %v2589_v38  ;;  %v2918_v28 = vld [vmem:[%s6711_s3 + $0xb0] sm:$0xff] }
 0x174   :  { %2511 = vmatpush.msra.mxu0 %v6918_v8  ;;  %2581 = vmatpush.msra.mxu2 %v5916_v23 }
 0x175   :  { %2540 = vmatpush.msra.mxu1 %v5620_v61  ;;  %2672 = vmatpush.msra.mxu3 %v2671_v10  ;;  %v6919_v61 = vand.u32 4294901760, %v5728_v4  ;;  %v6137_v10 = vand.u32 4294901760, %v2918_v28 }
 0x176   :  { %2513 = vmatmul.f32.vlgmr.msra.gmra.mxu0 %v5631_v41  ;;  %2583 = vmatpush.msra.mxu2 %v5932_v58 }
 0x177   :  { %2698 = vmatpush.msrb.mxu0 %v5728_v4  ;;  %2542 = vmatpush.msra.mxu1 %v5637_v3  ;;  %v6920_v3 = vand.u32 4294901760, %v5752_v40 }
 0x178   :  { %2678 = vmatpush.msra.mxu3 %v2677_v32  ;;  %2585 = vmatpush.msra.mxu2 %v5947_v59 }
 0x179   :  { %2701 = vmatpush.msrb.mxu0 %v5752_v40  ;;  %2544 = vmatpush.msra.mxu1 %v5649_v5  ;;  %v6921_v5 = vand.u32 4294901760, %v5765_v18  ;;  %v205_v40 = vpop.f32.mrf.mxu0 }
 0x17a   :  { %2684 = vmatpush.msra.mxu3 %v2683_v43  ;;  %2591 = vmatmul.f32.vlgmr.msra.gmra.mxu2 %v2590_v63  ;;  %v6154_v43 = vsub.f32 %v2918_v28, %v6137_v10  ;;  %v6157_v63 = vsub.f32 %v2916_v37, %v6139_v39 }
 0x17b   :  { %2704 = vmatpush.msrb.mxu0 %v5765_v18  ;;  %2792 = vmatpush.msrb.mxu2 %v6919_v61 }
 0x17c   :  { %2546 = vmatpush.msra.mxu1 %v5676_v15  ;;  %2690 = vmatpush.msra.mxu3 %v2689_v17  ;;  %v6922_v15 = vand.u32 4294901760, %v5773_v13 }
 0x17d   :  { %2692 = vmatmul.f32.vlgmr.msra.gmra.mxu3 %v5934_v12  ;;  %2707 = vmatpush.msrb.mxu0 %v5773_v13  ;;  %v6925_v13 = vand.u32 4294901760, %v5829_v36 }
 0x17e   :  { %2796 = vmatpush.msrb.mxu2 %v6920_v3  ;;  %2859 = vmatpush.msrb.mxu3 %v5692_v35 }
 0x17f   :  { %2548 = vmatpush.msra.mxu1 %v5701_v14  ;;  %2710 = vmatpush.msrb.mxu0 %v5787_v27  ;;  %v6927_v14 = vand.u32 4294901760, %v5861_v62 }
 0x180   :  { %2550 = vmatmul.f32.vlgmr.msra.gmra.mxu1 %v5631_v41  ;;  %2800 = vmatpush.msrb.mxu2 %v6921_v5  ;;  %v6923_v41 = vand.u32 4294901760, %v5787_v27  ;;  %v360_v27 = vpop.f32.mrf.mxu2 }
 0x181   :  { %2751 = vmatpush.msrb.mxu1 %v5692_v35  ;;  %2861 = vmatpush.msrb.mxu3 %v5717_v19  ;;  %v6924_v35 = vand.u32 4294901760, %v5812_v29 }
 0x182   :  { %2713 = vmatpush.msrb.mxu0 %v5812_v29  ;;  %2804 = vmatpush.msrb.mxu2 %v6922_v15  ;;  %v468_v29 = vpop.f32.mrf.mxu0 }
 0x183   :  { %2753 = vmatpush.msrb.mxu1 %v5717_v19  ;;  %2863 = vmatpush.msrb.mxu3 %v5737_v48  ;;  %v306_v19 = vpop.f32.mrf.mxu1 }
 0x184   :  { %2716 = vmatpush.msrb.mxu0 %v5829_v36  ;;  %2808 = vmatpush.msrb.mxu2 %v6923_v41 }
 0x185   :  { %2755 = vmatpush.msrb.mxu1 %v5737_v48  ;;  %2865 = vmatpush.msrb.mxu3 %v5745_v9  ;;  %v6926_v48 = vand.u32 4294901760, %v5846_v60 }
 0x186   :  { %2719 = vmatpush.msrb.mxu0 %v5846_v60  ;;  %2812 = vmatpush.msrb.mxu2 %v6924_v35  ;;  %v3001_v35 = vand.u32 4294901760, %v6154_v43 }
 0x187   :  { %2757 = vmatpush.msrb.mxu1 %v5745_v9  ;;  %2867 = vmatpush.msrb.mxu3 %v5757_v44 }
 0x188   :  { %2722 = vmatpush.msrb.mxu0 %v5861_v62  ;;  %2816 = vmatpush.msrb.mxu2 %v6925_v13  ;;  %v546_v60 = vpop.f32.mrf.mxu2 }
 0x189   :  { %2759 = vmatpush.msrb.mxu1 %v5757_v44  ;;  %2869 = vmatpush.msrb.mxu3 %v5780_v1  ;;  %v149_v44 = vld [vmem:[%s6710_s2] sm:$0x1] }
 0x18a   :  { %2725 = vmatpush.msrb.mxu0 %v5876_v52  ;;  %2820 = vmatpush.msrb.mxu2 %v6926_v48  ;;  %v206_v18 = vadd.f32 %v205_v40, %v149_v44 }
 0x18b   :  { %2761 = vmatpush.msrb.mxu1 %v5780_v1  ;;  %2871 = vmatpush.msrb.mxu3 %v5798_v31  ;;  %v6928_v1 = vand.u32 4294901760, %v5876_v52  ;;  %v505_v36 = vpop.f32.mrf.mxu1 }
 0x18c   :  { %2728 = vmatpush.msrb.mxu0 %v5889_v49  ;;  %2824 = vmatpush.msrb.mxu2 %v6927_v14  ;;  %v307_v4 = vadd.f32 %v306_v19, %v206_v18 }
 0x18d   :  { %2763 = vmatpush.msrb.mxu1 %v5798_v31  ;;  %2873 = vmatpush.msrb.mxu3 %v5814_v56  ;;  %v6929_v31 = vand.u32 4294901760, %v5889_v49 }
 0x18e   :  { %2731 = vmatpush.msrb.mxu0 %v5908_v33  ;;  %2828 = vmatpush.msrb.mxu2 %v6928_v1  ;;  %v361_v9 = vadd.f32 %v360_v27, %v307_v4  ;;  %v3007_v1 = vand.u32 4294901760, %v6157_v63  ;;  %v3002_v27 = vsub.f32 %v6154_v43, %v3001_v35 }
 0x18f   :  { %2765 = vmatpush.msrb.mxu1 %v5814_v56  ;;  %2875 = vmatpush.msrb.mxu3 %v5831_v30  ;;  %v399_v56 = vpop.f32.mrf.mxu3 }
 0x190   :  { %2734 = vmatpush.msrb.mxu0 %v5924_v57  ;;  %2832 = vmatpush.msrb.mxu2 %v6929_v31  ;;  %v809_v33 = vpop.f32.mrf.mxu2 }
 0x191   :  { %2767 = vmatpush.msrb.mxu1 %v5831_v30  ;;  %2877 = vmatpush.msrb.mxu3 %v5848_v21 }
 0x192   :  { %2737 = vmatpush.msrb.mxu0 %v5945_v55  ;;  %2836 = vmatpush.msrb.mxu2 %v2663_v2 }
 0x193   :  { %2769 = vmatpush.msrb.mxu1 %v5848_v21  ;;  %2879 = vmatpush.msrb.mxu3 %v5863_v24  ;;  %v400_v21 = vadd.f32 %v399_v56, %v361_v9  ;;  %v740_v52 = vpop.f32.mrf.mxu1  ;;  %v2914_v9 = vld [vmem:[%s6711_s3 + $0x90] sm:$0xff] }
 0x194   :  { %2740 = vmatpush.msrb.mxu0 %v5958_v46  ;;  %2840 = vmatpush.msrb.mxu2 %v2669_v45 }
 0x195   :  { %2771 = vmatpush.msrb.mxu1 %v5863_v24  ;;  %2881 = vmatpush.msrb.mxu3 %v5878_v16  ;;  %v701_v24 = vpop.f32.mrf.mxu0 }
 0x196   :  { %2743 = vmatpush.msrb.mxu0 %v5972_v53  ;;  %2844 = vmatpush.msrb.mxu2 %v2675_v25  ;;  %v2924_v25 = vld [vmem:[%s6711_s3 + $0xe0] sm:$0xff]  ;;  %v2922_v53 = vld [vmem:[%s6711_s3 + $0xd0] sm:$0xff] }
 0x197   :  { %2773 = vmatpush.msrb.mxu1 %v5878_v16  ;;  %2883 = vmatpush.msrb.mxu3 %v5891_v34  ;;  %v647_v62 = vpop.f32.mrf.mxu3  ;;  %v6120_v51 = vand.u32 4294901760, %v2924_v25 }
 0x198   :  { %2746 = vmatmul.f32.vlgmr.msrb.gmra.mxu0 %v5961_v20  ;;  %2848 = vmatpush.msrb.mxu2 %v2681_v0  ;;  %v1042_v20 = vpop.f32.mrf.mxu2  ;;  %v6122_v0 = vand.u32 4294901760, %v2922_v53 }
 0x199   :  { %2775 = vmatpush.msrb.mxu1 %v5891_v34  ;;  %2885 = vmatpush.msrb.mxu3 %v5916_v23  ;;  %v469_v34 = vadd.f32 %v468_v29, %v400_v21  ;;  %v6142_v22 = vsub.f32 %v2924_v25, %v6120_v51  ;;  %v3008_v21 = vsub.f32 %v6157_v63, %v3007_v1  ;;  %v6196_v29 = vand.u32 4294901760, %v2914_v9 }
 0x19a   :  { %2852 = vmatpush.msrb.mxu2 %v2687_v11  ;;  %v6133_v11 = vsub.f32 %v2926_v7, %v6109_v6  ;;  %2935 = vmatpush.msra.mxu0 %v6109_v6  ;;  %v6145_v38 = vsub.f32 %v2922_v53, %v6122_v0  ;;  %v2906_v7 = vld [vmem:[%s6711_s3 + $0x50] sm:$0xff] }
 0x19b   :  { %2777 = vmatpush.msrb.mxu1 %v5916_v23  ;;  %2887 = vmatpush.msrb.mxu3 %v5932_v58  ;;  %v506_v30 = vadd.f32 %v505_v36, %v469_v34  ;;  %v988_v55 = vpop.f32.mrf.mxu1  ;;  %v2983_v61 = vand.u32 4294901760, %v6142_v22  ;;  %v2912_v36 = vld [vmem:[%s6711_s3 + $0x80] sm:$0xff] }
 0x19c   :  { %2854 = vmatmul.f32.vlgmr.msrb.gmra.mxu2 %v5934_v12  ;;  %v2977_v54 = vand.u32 4294901760, %v6133_v11  ;;  %v2989_v3 = vand.u32 4294901760, %v6145_v38  ;;  %2937 = vmatpush.msra.mxu0 %v6120_v51 }
 0x19d   :  { %2779 = vmatpush.msrb.mxu1 %v5932_v58  ;;  %2889 = vmatpush.msrb.mxu3 %v5947_v59  ;;  %v547_v45 = vadd.f32 %v546_v60, %v506_v30  ;;  %v2984_v48 = vsub.f32 %v6142_v22, %v2983_v61  ;;  %v3003_v60 = vand.u32 4294901760, %v3002_v27  ;;  %v2900_v27 = vld [vmem:[%s6711_s3 + $0x20] sm:$0xff] }
 0x19e   :  { %2891 = vmatmul.f32.vlgmr.msrb.gmra.mxu3 %v5934_v12  ;;  %v887_v12 = vpop.f32.mrf.mxu0  ;;  %3078 = vmatpush.msra.mxu2 %v6133_v11  ;;  %v2978_v41 = vsub.f32 %v6133_v11, %v2977_v54  ;;  %v2990_v14 = vsub.f32 %v6145_v38, %v2989_v3  ;;  %v2919_v11 = vld [vmem:[%s6711_s3 + $0xb8] sm:$0xff] }
 0x19f   :  { %2781 = vmatpush.msrb.mxu1 %v5947_v59  ;;  %v648_v57 = vadd.f32 %v647_v62, %v547_v45  ;;  %v846_v58 = vpop.f32.mrf.mxu3  ;;  %3131 = vmatpush.msra.mxu3 %v6109_v6  ;;  %v2985_v18 = vand.u32 4294901760, %v2984_v48  ;;  %v6204_v45 = vsub.f32 %v2914_v9, %v6196_v29  ;;  %v6207_v62 = vand.u32 4294901760, %v2912_v36 }
 0x1a0   :  { %2785 = vmatmul.f32.vlgmr.msrb.gmra.mxu1 %v2588_v47  ;;  %v6124_v47 = vand.u32 4294901760, %v2920_v42  ;;  %3081 = vmatpush.msra.mxu2 %v6142_v22  ;;  %v2979_v44 = vand.u32 4294901760, %v2978_v41  ;;  %v1228_v19 = vpop.f32.mrf.mxu2  ;;  %v2991_v4 = vand.u32 4294901760, %v2990_v14  ;;  %v2902_v14 = vld [vmem:[%s6711_s3 + $0x30] sm:$0xff] }
 0x1a1   :  { %v702_v16 = vadd.f32 %v701_v24, %v648_v57  ;;  %3133 = vmatpush.msra.mxu3 %v6120_v51  ;;  %2939 = vmatpush.msra.mxu0 %v6122_v0  ;;  %v2910_v24 = vld [vmem:[%s6711_s3 + $0x70] sm:$0xff] }
 0x1a2   :  { %v6148_v8 = vsub.f32 %v2920_v42, %v6124_v47  ;;  %3084 = vmatpush.msra.mxu2 %v6145_v38  ;;  %2980 = vmatpush.msra.mxu1 %v2979_v44 }
 0x1a3   :  { %v741_v49 = vadd.f32 %v740_v52, %v702_v16  ;;  %v1187_v15 = vpop.f32.mrf.mxu1  ;;  %3135 = vmatpush.msra.mxu3 %v6122_v0  ;;  %2941 = vmatpush.msra.mxu0 %v6124_v47  ;;  %v3009_v52 = vand.u32 4294901760, %v3008_v21  ;;  %v3013_v16 = vand.u32 4294901760, %v6204_v45 }
 0x1a4   :  { %v2995_v5 = vand.u32 4294901760, %v6148_v8  ;;  %3087 = vmatpush.msra.mxu2 %v6148_v8  ;;  %2986 = vmatpush.msra.mxu1 %v2985_v18  ;;  %v6274_v18 = vand.u32 4294901760, %v2902_v14 }
 0x1a5   :  { %v810_v23 = vadd.f32 %v809_v33, %v741_v49  ;;  %3137 = vmatpush.msra.mxu3 %v6124_v47  ;;  %2943 = vmatpush.msra.mxu0 %v6137_v10  ;;  %v6216_v49 = vsub.f32 %v2912_v36, %v6207_v62  ;;  %v6219_v33 = vand.u32 4294901760, %v2910_v24 }
 0x1a6   :  { %v1150_v32 = vpop.f32.mrf.mxu0  ;;  %v2996_v40 = vsub.f32 %v6148_v8, %v2995_v5  ;;  %3090 = vmatpush.msra.mxu2 %v6154_v43  ;;  %2992 = vmatpush.msra.mxu1 %v2991_v4  ;;  %v6290_v21 = vsub.f32 %v2902_v14, %v6274_v18 }
 0x1a7   :  { %v847_v2 = vadd.f32 %v846_v58, %v810_v23  ;;  %v1081_v26 = vpop.f32.mrf.mxu3  ;;  %3139 = vmatpush.msra.mxu3 %v6137_v10  ;;  %2945 = vmatpush.msra.mxu0 %v6139_v39  ;;  %v2908_v58 = vld [vmem:[%s6711_s3 + $0x60] sm:$0xff] }
 0x1a8   :  { %v2997_v56 = vand.u32 4294901760, %v2996_v40  ;;  %3093 = vmatpush.msra.mxu2 %v6157_v63 }
 0x1a9   :  { %v888_v59 = vadd.f32 %v887_v12, %v847_v2  ;;  %3141 = vmatpush.msra.mxu3 %v6139_v39  ;;  %2947 = vmatpush.msra.mxu0 %v6196_v29  ;;  %v3014_v2 = vsub.f32 %v6204_v45, %v3013_v16 }
 0x1aa   :  { %2998 = vmatpush.msra.mxu1 %v2997_v56  ;;  %3096 = vmatpush.msra.mxu2 %v6204_v45  ;;  %v2911_v45 = vld [vmem:[%s6711_s3 + $0x78] sm:$0xff] }
 0x1ab   :  { %v989_v46 = vadd.f32 %v988_v55, %v888_v59  ;;  %3143 = vmatpush.msra.mxu3 %v6196_v29  ;;  %2949 = vmatpush.msra.mxu0 %v6207_v62  ;;  %v1422_v12 = vpop.f32.mrf.mxu1  ;;  %v3019_v55 = vand.u32 4294901760, %v6216_v49  ;;  %v6231_v59 = vsub.f32 %v2910_v24, %v6219_v33  ;;  %v3015_v25 = vand.u32 4294901760, %v3014_v2  ;;  %v2896_v2 = vld [vmem:[%s6711_s3] sm:$0xff] }
 0x1ac   :  { %3004 = vmatpush.msra.mxu1 %v3003_v60  ;;  %3099 = vmatpush.msra.mxu2 %v6216_v49  ;;  %v2898_v60 = vld [vmem:[%s6711_s3 + $0x10] sm:$0xff] }
 0x1ad   :  { %v1043_v50 = vadd.f32 %v1042_v20, %v989_v46  ;;  %3145 = vmatpush.msra.mxu3 %v6207_v62  ;;  %v6234_v20 = vand.u32 4294901760, %v2908_v58  ;;  %2951 = vmatpush.msra.mxu0 %v6219_v33  ;;  %v3020_v53 = vsub.f32 %v6216_v49, %v3019_v55  ;;  %v3025_v42 = vand.u32 4294901760, %v6231_v59  ;;  %v2909_v49 = vld [vmem:[%s6711_s3 + $0x68] sm:$0xff] }
 0x1ae   :  { %v1383_v57 = vpop.f32.mrf.mxu0  ;;  %3010 = vmatpush.msra.mxu1 %v3009_v52  ;;  %3102 = vmatpush.msra.mxu2 %v6231_v59  ;;  %v3049_v52 = vand.u32 4294901760, %v6290_v21 }
 0x1af   :  { %v1082_v17 = vadd.f32 %v1081_v26, %v1043_v50  ;;  %v1329_v30 = vpop.f32.mrf.mxu3  ;;  %3147 = vmatpush.msra.mxu3 %v6219_v33  ;;  %v6246_v50 = vand.u32 4294901760, %v2906_v7  ;;  %v6249_v37 = vsub.f32 %v2908_v58, %v6234_v20  ;;  %v2904_v26 = vld [vmem:[%s6711_s3 + $0x40] sm:$0xff]  ;;  %2953 = vmatpush.msra.mxu0 %v6234_v20 }
 0x1b0   :  { %3016 = vmatpush.msra.mxu1 %v3015_v25  ;;  %v3050_v25 = vsub.f32 %v6290_v21, %v3049_v52 }
 0x1b1   :  { %v1151_v13 = vadd.f32 %v1150_v32, %v1082_v17  ;;  %3149 = vmatpush.msra.mxu3 %v6234_v20  ;;  %v1491_v32 = vpop.f32.mrf.mxu2  ;;  %v3021_v17 = vand.u32 4294901760, %v3020_v53  ;;  %v6260_v41 = vsub.f32 %v2906_v7, %v6246_v50  ;;  %v3031_v48 = vand.u32 4294901760, %v6249_v37  ;;  %3105 = vmatpush.msra.mxu2 %v6249_v37 }
 0x1b2   :  { %2955 = vmatpush.msra.mxu0 %v6246_v50  ;;  %v6317_v53 = vand.u32 4294901760, %v2896_v2 }
 0x1b3   :  { %v1188_v31 = vadd.f32 %v1187_v15, %v1151_v13  ;;  %v3026_v15 = vsub.f32 %v6231_v59, %v3025_v42  ;;  %v6262_v13 = vand.u32 4294901760, %v2904_v26  ;;  %3151 = vmatpush.msra.mxu3 %v6246_v50  ;;  %3022 = vmatpush.msra.mxu1 %v3021_v17  ;;  %v3037_v40 = vand.u32 4294901760, %v6260_v41 }
 0x1b4   :  { %v3032_v4 = vsub.f32 %v6249_v37, %v3031_v48  ;;  %3108 = vmatpush.msra.mxu2 %v6260_v41  ;;  %v6327_v14 = vsub.f32 %v2896_v2, %v6317_v53 }
 0x1b5   :  { %v1229_v34 = vadd.f32 %v1228_v19, %v1188_v31  ;;  %v3027_v44 = vand.u32 4294901760, %v3026_v15  ;;  %v6272_v31 = vsub.f32 %v2904_v26, %v6262_v13  ;;  %3153 = vmatpush.msra.mxu3 %v6262_v13  ;;  %v3038_v9 = vsub.f32 %v6260_v41, %v3037_v40  ;;  %2957 = vmatpush.msra.mxu0 %v6262_v13  ;;  %v2903_v41 = vld [vmem:[%s6711_s3 + $0x38] sm:$0xff] }
 0x1b6   :  { %v3051_v15 = vand.u32 4294901760, %v3050_v25 }
 0x1b7   :  { %v1330_v23 = vadd.f32 %v1329_v30, %v1229_v34  ;;  %3028 = vmatpush.msra.mxu1 %v3027_v44  ;;  %v3043_v56 = vand.u32 4294901760, %v6272_v31  ;;  %v6292_v34 = vand.u32 4294901760, %v2900_v27  ;;  %v1528_v36 = vpop.f32.mrf.mxu3  ;;  %v3033_v30 = vand.u32 4294901760, %v3032_v4  ;;  %3111 = vmatpush.msra.mxu2 %v6272_v31 }
 0x1b8   :  { %3155 = vmatpush.msra.mxu3 %v6274_v18  ;;  %v3039_v24 = vand.u32 4294901760, %v3038_v9  ;;  %2959 = vmatpush.msra.mxu0 %v6274_v18  ;;  %v2927_v9 = vld [vmem:[%s6711_s3 + $0xf8] sm:$0xff] }
 0x1b9   :  { %v1384_v46 = vadd.f32 %v1383_v57, %v1330_v23  ;;  %v3044_v57 = vsub.f32 %v6272_v31, %v3043_v56  ;;  %v1569_v23 = vpop.f32.mrf.mxu0  ;;  %3034 = vmatpush.msra.mxu1 %v3033_v30  ;;  %v6306_v58 = vsub.f32 %v2900_v27, %v6292_v34  ;;  %3114 = vmatpush.msra.mxu2 %v6290_v21  ;;  %v6809_v27 = vand.u32 4294901760, %v6327_v14  ;;  %v2923_v30 = vld [vmem:[%s6711_s3 + $0xd8] sm:$0xff]  ;;  %v2901_v31 = vld [vmem:[%s6711_s3 + $0x28] sm:$0xff] }
 0x1ba   :  { %3157 = vmatpush.msra.mxu3 %v6292_v34  ;;  %2961 = vmatpush.msra.mxu0 %v6292_v34  ;;  %v6362_v25 = vand.u32 4294901760, %v2923_v30 }
 0x1bb   :  { %v1423_v28 = vadd.f32 %v1422_v12, %v1384_v46  ;;  %v6309_v12 = vand.u32 4294901760, %v2898_v60  ;;  %v3045_v7 = vand.u32 4294901760, %v3044_v57  ;;  %3040 = vmatpush.msra.mxu1 %v3039_v24  ;;  %v6808_v26 = vand.u32 4294901760, %v6306_v58  ;;  %3117 = vmatpush.msra.mxu2 %v6306_v58 }
 0x1bd   :  { %v1492_v19 = vadd.f32 %v1491_v32, %v1423_v28  ;;  %v1670_v28 = vpop.f32.mrf.mxu1  ;;  %v6323_v32 = vsub.f32 %v2898_v60, %v6309_v12  ;;  %3159 = vmatpush.msra.mxu3 %v6309_v12  ;;  %2963 = vmatpush.msra.mxu0 %v6309_v12  ;;  %v3056_v44 = vsub.f32 %v6306_v58, %v6808_v26  ;;  %v1724_v60 = vpop.f32.mrf.mxu2 }
 0x1be   :  { %3046 = vmatpush.msra.mxu1 %v3045_v7  ;;  %v3068_v7 = vsub.f32 %v6327_v14, %v6809_v27  ;;  %v6376_v27 = vsub.f32 %v2923_v30, %v6362_v25 }
 0x1bf   :  { %v1529_v46 = vadd.f32 %v1528_v36, %v1492_v19  ;;  %v6807_v19 = vand.u32 4294901760, %v6323_v32  ;;  %3120 = vmatpush.msra.mxu2 %v6323_v32  ;;  %3161 = vmatpush.msra.mxu3 %v6317_v53  ;;  %v2925_v36 = vld [vmem:[%s6711_s3 + $0xe8] sm:$0xff]  ;;  %v3057_v24 = vand.u32 4294901760, %v3056_v44 }
 0x1c0   :  { %2965 = vmatpush.msra.mxu0 %v6317_v53  ;;  %3052 = vmatpush.msra.mxu1 %v3051_v15  ;;  %v6354_v2 = vand.u32 4294901760, %v2925_v36  ;;  %v3069_v26 = vand.u32 4294901760, %v3068_v7  ;;  %v3330_v30 = vand.u32 4294901760, %v6376_v27 }
 0x1c1   :  { %v1570_v17 = vadd.f32 %v1569_v23, %v1529_v46  ;;  %v3062_v57 = vsub.f32 %v6323_v32, %v6807_v19  ;;  %3123 = vmatpush.msra.mxu2 %v6327_v14  ;;  %v6352_v23 = vand.u32 4294901760, %v2927_v9  ;;  %v2921_v46 = vld [vmem:[%s6711_s3 + $0xc8] sm:$0xff] }
 0x1c2   :  { %3172 = vmatpush.msrb.mxu0 %v2977_v54  ;;  %3058 = vmatpush.msra.mxu1 %v3057_v24  ;;  %v6373_v44 = vsub.f32 %v2925_v36, %v6354_v2  ;;  %v3331_v38 = vsub.f32 %v6376_v27, %v3330_v30 }
 0x1c3   :  { %v1671_v4 = vadd.f32 %v1670_v28, %v1570_v17  ;;  %v6366_v28 = vand.u32 4294901760, %v2921_v46  ;;  %v3063_v17 = vand.u32 4294901760, %v3062_v57  ;;  %3276 = vmatpush.msrb.mxu2 %v6352_v23  ;;  %v6370_v15 = vsub.f32 %v2927_v9, %v6352_v23  ;;  %v1763_v9 = vpop.f32.mrf.mxu3 }
 0x1c4   :  { %3176 = vmatpush.msrb.mxu0 %v2983_v61  ;;  %v6810_v36 = vand.u32 4294901760, %v6373_v44  ;;  %v1832_v61 = vpop.f32.mrf.mxu0  ;;  %v6400_v57 = vand.u32 4294901760, %v2919_v11  ;;  %v3332_v8 = vand.u32 4294901760, %v3331_v38 }
 0x1c5   :  { %v1725_v19 = vadd.f32 %v1724_v60, %v1671_v4  ;;  %v6384_v54 = vsub.f32 %v2921_v46, %v6366_v28  ;;  %3064 = vmatpush.msra.mxu1 %v3063_v17  ;;  %3278 = vmatpush.msrb.mxu2 %v6354_v2  ;;  %v3318_v4 = vand.u32 4294901760, %v6370_v15  ;;  %v1910_v43 = vpop.f32.mrf.mxu2 }
 0x1c6   :  { %3180 = vmatpush.msrb.mxu0 %v2989_v3  ;;  %v3325_v24 = vsub.f32 %v6373_v44, %v6810_v36  ;;  %v1869_v3 = vpop.f32.mrf.mxu1 }
 0x1c7   :  { %v3336_v22 = vand.u32 4294901760, %v6384_v54  ;;  %3070 = vmatpush.msra.mxu1 %v3069_v26  ;;  %v3319_v60 = vsub.f32 %v6370_v15, %v3318_v4  ;;  %3280 = vmatpush.msrb.mxu2 %v6362_v25  ;;  %v1764_v46 = vadd.f32 %v1763_v9, %v1725_v19  ;;  %v6422_v19 = vsub.f32 %v2919_v11, %v6400_v57 }
 0x1c8   :  { %3184 = vmatpush.msrb.mxu0 %v2995_v5  ;;  %v3326_v7 = vand.u32 4294901760, %v3325_v24 }
 0x1c9   :  { %3239 = vmatpush.msrb.mxu1 %v6109_v6  ;;  %v3320_v26 = vand.u32 4294901760, %v3319_v60  ;;  %3282 = vmatpush.msrb.mxu2 %v6366_v28  ;;  %v3337_v17 = vsub.f32 %v6384_v54, %v3336_v22  ;;  %v1833_v36 = vadd.f32 %v1832_v61, %v1764_v46  ;;  %v2917_v6 = vld [vmem:[%s6711_s3 + $0xa8] sm:$0xff]  ;;  %v3342_v61 = vand.u32 4294901760, %v6422_v19 }
 0x1ca   :  { %3188 = vmatpush.msrb.mxu0 %v3001_v35  ;;  %v6419_v5 = vand.u32 4294901760, %v2917_v6 }
 0x1cb   :  { %3241 = vmatpush.msrb.mxu1 %v6120_v51  ;;  %3321 = vmatpush.msrb.mxu3 %v3320_v26  ;;  %v1870_v9 = vadd.f32 %v1869_v3, %v1833_v36  ;;  %v2915_v51 = vld [vmem:[%s6711_s3 + $0x98] sm:$0xff]  ;;  %v3338_v35 = vand.u32 4294901760, %v3337_v17  ;;  %v3343_v63 = vsub.f32 %v6422_v19, %v3342_v61  ;;  %v6464_v26 = vand.u32 4294901760, %v2911_v45 }
 0x1cc   :  { %3284 = vmatpush.msrb.mxu2 %v6400_v57  ;;  %3192 = vmatpush.msrb.mxu0 %v3007_v1  ;;  %v6432_v60 = vand.u32 4294901760, %v2915_v51  ;;  %v6435_v11 = vsub.f32 %v2917_v6, %v6419_v5 }
 0x1cd   :  { %3243 = vmatpush.msrb.mxu1 %v6122_v0  ;;  %3327 = vmatpush.msrb.mxu3 %v3326_v7  ;;  %v2913_v0 = vld [vmem:[%s6711_s3 + $0x88] sm:$0xff]  ;;  %v1911_v24 = vadd.f32 %v1910_v43, %v1870_v9  ;;  %v3344_v46 = vand.u32 4294901760, %v3343_v63  ;;  %v6482_v6 = vsub.f32 %v2911_v45, %v6464_v26 }
 0x1ce   :  { %3286 = vmatpush.msrb.mxu2 %v6419_v5  ;;  %3196 = vmatpush.msrb.mxu0 %v3013_v16  ;;  %v3348_v1 = vand.u32 4294901760, %v6435_v11  ;;  %v6448_v36 = vand.u32 4294901760, %v2913_v0  ;;  %v2011_v16 = vpop.f32.mrf.mxu3  ;;  %v2104_v9 = vpop.f32.mrf.mxu1 }
 0x1cf   :  { %3245 = vmatpush.msrb.mxu1 %v6124_v47  ;;  %3333 = vmatpush.msrb.mxu3 %v3332_v8  ;;  %v6451_v47 = vsub.f32 %v2915_v51, %v6432_v60  ;;  %v2012_v8 = vadd.f32 %v2011_v16, %v1911_v24  ;;  %v3366_v43 = vand.u32 4294901760, %v6482_v6 }
 0x1d0   :  { %3288 = vmatpush.msrb.mxu2 %v6432_v60  ;;  %3200 = vmatpush.msrb.mxu0 %v3019_v55  ;;  %v3349_v38 = vsub.f32 %v6435_v11, %v3348_v1  ;;  %v2065_v55 = vpop.f32.mrf.mxu0 }
 0x1d1   :  { %3247 = vmatpush.msrb.mxu1 %v6137_v10  ;;  %3339 = vmatpush.msrb.mxu3 %v3338_v35  ;;  %v3354_v3 = vand.u32 4294901760, %v6451_v47  ;;  %v6468_v10 = vsub.f32 %v2913_v0, %v6448_v36  ;;  %v2066_v0 = vadd.f32 %v2065_v55, %v2012_v8  ;;  %v3367_v63 = vsub.f32 %v6482_v6, %v3366_v43 }
 0x1d2   :  { %3290 = vmatpush.msrb.mxu2 %v6448_v36  ;;  %3204 = vmatpush.msrb.mxu0 %v3025_v42  ;;  %v3350_v7 = vand.u32 4294901760, %v3349_v38  ;;  %v2907_v42 = vld [vmem:[%s6711_s3 + $0x58] sm:$0xff]  ;;  %v6541_v8 = vand.u32 4294901760, %v2901_v31 }
 0x1d3   :  { %3249 = vmatpush.msrb.mxu1 %v6139_v39  ;;  %3345 = vmatpush.msrb.mxu3 %v3344_v46  ;;  %v3355_v17 = vsub.f32 %v6451_v47, %v3354_v3  ;;  %v6479_v39 = vand.u32 4294901760, %v2909_v49  ;;  %v3360_v59 = vand.u32 4294901760, %v6468_v10  ;;  %v6493_v35 = vand.u32 4294901760, %v2907_v42 }
 0x1d4   :  { %3292 = vmatpush.msrb.mxu2 %v6464_v26  ;;  %3208 = vmatpush.msrb.mxu0 %v3031_v48  ;;  %v2905_v48 = vld [vmem:[%s6711_s3 + $0x48] sm:$0xff]  ;;  %v2105_v16 = vadd.f32 %v2104_v9, %v2066_v0  ;;  %v3368_v38 = vand.u32 4294901760, %v3367_v63  ;;  %v6558_v21 = vsub.f32 %v2901_v31, %v6541_v8 }
 0x1d5   :  { %3251 = vmatpush.msrb.mxu1 %v6196_v29  ;;  %3351 = vmatpush.msrb.mxu3 %v3350_v7  ;;  %v3356_v51 = vand.u32 4294901760, %v3355_v17  ;;  %v6496_v29 = vsub.f32 %v2909_v49, %v6479_v39  ;;  %v3361_v37 = vsub.f32 %v6468_v10, %v3360_v59  ;;  %v6512_v24 = vand.u32 4294901760, %v2905_v48 }
 0x1d6   :  { %3294 = vmatpush.msrb.mxu2 %v6479_v39  ;;  %3212 = vmatpush.msrb.mxu0 %v3037_v40  ;;  %v6515_v45 = vsub.f32 %v2907_v42, %v6493_v35  ;;  %v2173_v40 = vpop.f32.mrf.mxu2  ;;  %v6528_v7 = vand.u32 4294901760, %v2903_v41  ;;  %v2210_v0 = vpop.f32.mrf.mxu3 }
 0x1d7   :  { %3253 = vmatpush.msrb.mxu1 %v6207_v62  ;;  %3357 = vmatpush.msrb.mxu3 %v3356_v51  ;;  %v3372_v62 = vand.u32 4294901760, %v6496_v29  ;;  %v3362_v46 = vand.u32 4294901760, %v3361_v37  ;;  %v2899_v51 = vld [vmem:[%s6711_s3 + $0x18] sm:$0xff] }
 0x1d8   :  { %3296 = vmatpush.msrb.mxu2 %v6493_v35  ;;  %3216 = vmatpush.msrb.mxu0 %v3043_v56  ;;  %v3378_v55 = vand.u32 4294901760, %v6515_v45  ;;  %v6544_v42 = vsub.f32 %v2903_v41, %v6528_v7  ;;  %v6555_v63 = vand.u32 4294901760, %v2899_v51  ;;  %v6813_v41 = vand.u32 4294901760, %v6558_v21 }
 0x1d9   :  { %3255 = vmatpush.msrb.mxu1 %v6219_v33  ;;  %v3373_v49 = vsub.f32 %v6496_v29, %v3372_v62  ;;  %3363 = vmatpush.msrb.mxu3 %v3362_v46  ;;  %v6532_v33 = vsub.f32 %v2905_v48, %v6512_v24 }
 0x1da   :  { %3298 = vmatpush.msrb.mxu2 %v6512_v24  ;;  %v3379_v17 = vsub.f32 %v6515_v45, %v3378_v55  ;;  %3220 = vmatpush.msrb.mxu0 %v3049_v52  ;;  %v6811_v48 = vand.u32 4294901760, %v6544_v42  ;;  %v6580_v31 = vsub.f32 %v2899_v51, %v6555_v63 }
 0x1db   :  { %3257 = vmatpush.msrb.mxu1 %v6234_v20  ;;  %v3374_v56 = vand.u32 4294901760, %v3373_v49  ;;  %v2174_v20 = vadd.f32 %v2173_v40, %v2105_v16  ;;  %3369 = vmatpush.msrb.mxu3 %v3368_v38  ;;  %v6814_v9 = vand.u32 4294901760, %v6532_v33  ;;  %v2251_v16 = vpop.f32.mrf.mxu0 }
 0x1dc   :  { %3300 = vmatpush.msrb.mxu2 %v6528_v7  ;;  %v3380_v37 = vand.u32 4294901760, %v3379_v17  ;;  %v3391_v46 = vsub.f32 %v6544_v42, %v6811_v48  ;;  %v6932_v48 = vand.u32 4294901760, %v6327_v14 }
 0x1dd   :  { %3259 = vmatpush.msrb.mxu1 %v6246_v50  ;;  %v6930_v50 = vand.u32 4294901760, %v6306_v58  ;;  %3375 = vmatpush.msrb.mxu3 %v3374_v56  ;;  %v3385_v52 = vsub.f32 %v6532_v33, %v6814_v9  ;;  %v2897_v58 = vld [vmem:[%s6711_s3 + $0x8] sm:$0xff]  ;;  %v2211_v40 = vadd.f32 %v2210_v0, %v2174_v20  ;;  %v2352_v56 = vpop.f32.mrf.mxu1 }
 0x1de   :  { %3302 = vmatpush.msrb.mxu2 %v6541_v8  ;;  %v6577_v49 = vand.u32 4294901760, %v2897_v58  ;;  %v3392_v17 = vand.u32 4294901760, %v3391_v46 }
 0x1df   :  { %3224 = vmatpush.msrb.mxu0 %v6930_v50  ;;  %3261 = vmatpush.msrb.mxu1 %v6262_v13  ;;  %v6931_v13 = vand.u32 4294901760, %v6323_v32  ;;  %v3386_v38 = vand.u32 4294901760, %v3385_v52  ;;  %v3397_v50 = vsub.f32 %v6558_v21, %v6813_v41  ;;  %v2252_v32 = vadd.f32 %v2251_v16, %v2211_v40 }
 0x1e0   :  { %3304 = vmatpush.msrb.mxu2 %v6555_v63  ;;  %3381 = vmatpush.msrb.mxu3 %v3380_v37  ;;  %v6590_v20 = vsub.f32 %v2897_v58, %v6577_v49 }
 0x1e1   :  { %3228 = vmatpush.msrb.mxu0 %v6931_v13  ;;  %3263 = vmatpush.msrb.mxu1 %v6274_v18  ;;  %v6812_v18 = vand.u32 4294901760, %v6580_v31  ;;  %v3398_v51 = vand.u32 4294901760, %v3397_v50  ;;  %v2353_v0 = vadd.f32 %v2352_v56, %v2252_v32 }
 0x1e2   :  { %3387 = vmatpush.msrb.mxu3 %v3386_v38  ;;  %3306 = vmatpush.msrb.mxu2 %v6577_v49  ;;  %v6815_v37 = vand.u32 4294901760, %v6590_v20 }
 0x1e3   :  { %3232 = vmatpush.msrb.mxu0 %v6932_v48  ;;  %3265 = vmatpush.msrb.mxu1 %v6292_v34  ;;  %v3403_v14 = vsub.f32 %v6580_v31, %v6812_v18  ;;  %v2406_v34 = vpop.f32.mrf.mxu2 }
 0x1e4   :  { %3393 = vmatpush.msrb.mxu3 %v3392_v17  ;;  %v3409_v52 = vsub.f32 %v6590_v20, %v6815_v37  ;;  %v2407_v16 = vadd.f32 %v2406_v34, %v2353_v0 }
 0x1e5   :  { %3267 = vmatpush.msrb.mxu1 %v6309_v12  ;;  %v3404_v48 = vand.u32 4294901760, %v3403_v14  ;;  %v2445_v12 = vpop.f32.mrf.mxu3 }
 0x1e6   :  { %3399 = vmatpush.msrb.mxu3 %v3398_v51  ;;  %v3410_v46 = vand.u32 4294901760, %v3409_v52  ;;  %v2446_v13 = vadd.f32 %v2445_v12, %v2407_v16 }
 0x1e7   :  { %3269 = vmatpush.msrb.mxu1 %v6317_v53 }
 0x1e8   :  { %3405 = vmatpush.msrb.mxu3 %v3404_v48 }
 0x1ea   :  { %3411 = vmatpush.msrb.mxu3 %v3410_v46 }
 0x1f3   :  { %v2514_v58 = vpop.f32.mrf.mxu0 }
 0x1f4   :  { %v2515_v38 = vadd.f32 %v2514_v58, %v2446_v13 }
 0x1fd   :  { %v2551_v40 = vpop.f32.mrf.mxu1  ;;  %v2592_v17 = vpop.f32.mrf.mxu2 }
 0x1fe   :  { %v2552_v56 = vadd.f32 %v2551_v40, %v2515_v38 }
 0x200   :  { %v2593_v50 = vadd.f32 %v2592_v17, %v2552_v56  ;;  %v2693_v32 = vpop.f32.mrf.mxu3 }
 0x202   :  { %v2694_v51 = vadd.f32 %v2693_v32, %v2593_v50 }
 0x215   :  { %v2747_v53 = vpop.f32.mrf.mxu0 }
 0x216   :  { %v2748_v14 = vadd.f32 %v2747_v53, %v2694_v51 }
 0x21d   :  { %v2786_v18 = vpop.f32.mrf.mxu1 }
 0x21e   :  { %v2787_v41 = vadd.f32 %v2786_v18, %v2748_v14 }
 0x21f   :  { %v2855_v9 = vpop.f32.mrf.mxu2 }
 0x220   :  { %v2856_v37 = vadd.f32 %v2855_v9, %v2787_v41  ;;  %v6933_v41 = vand.u32 4294901760, %v6373_v44 }
 0x221   :  { %v2892_v0 = vpop.f32.mrf.mxu3 }
 0x222   :  { %v2893_v34 = vadd.f32 %v2892_v0, %v2856_v37 }
 0x224   :  { %v2895_v48 = vmax.f32 %v2893_v34, 0.0 }
 0x226   :  { %v6602_v52 = vand.u32 4294901760, %v2895_v48 }
 0x228   :  { %v6605_v16 = vsub.f32 %v2895_v48, %v6602_v52  ;;  %3072 = vmatmul.f32.vlgmr.msra.gmra.mxu1 %v6602_v52 }
 0x229   :  { %3472 = vmatpush.msra.mxu1 %v6352_v23 }
 0x22a   :  { %3126 = vmatmul.f32.vlgmr.msra.gmra.mxu2 %v6605_v16  ;;  %v6611_v46 = vand.u32 4294901760, %v6605_v16 }
 0x22b   :  { %3474 = vmatpush.msra.mxu1 %v6354_v2  ;;  %3513 = vmatpush.msra.mxu2 %v3318_v4 }
 0x22c   :  { %3165 = vmatmul.f32.vlgmr.msra.gmra.mxu3 %v6611_v46  ;;  %v2969_v9 = vsub.f32 %v6605_v16, %v6611_v46 }
 0x22d   :  { %3476 = vmatpush.msra.mxu1 %v6362_v25  ;;  %3517 = vmatpush.msra.mxu2 %v6933_v41 }
 0x22e   :  { %3580 = vmatpush.msra.mxu3 %v6352_v23  ;;  %v2970_v18 = vand.u32 4294901760, %v2969_v9  ;;  %v6935_v23 = vand.u32 4294901760, %v6544_v42 }
 0x22f   :  { %3478 = vmatpush.msra.mxu1 %v6366_v28  ;;  %3521 = vmatpush.msra.mxu2 %v3330_v30 }
 0x230   :  { %3582 = vmatpush.msra.mxu3 %v6354_v2  ;;  %2971 = vmatmul.f32.vlgmr.msra.gmra.mxu0 %v2970_v18  ;;  %v6936_v2 = vand.u32 4294901760, %v6558_v21 }
 0x231   :  { %3271 = vmatmul.f32.vlgmr.msrb.gmra.mxu1 %v6602_v52  ;;  %3419 = vmatpush.msra.mxu0 %v6370_v15  ;;  %v2928_v15 = vld [vmem:[%s6712_s4] sm:$0x3] }
 0x232   :  { %3480 = vmatpush.msra.mxu1 %v6400_v57  ;;  %3525 = vmatpush.msra.mxu2 %v3336_v22  ;;  %v2930_v30 = vperm.slane %v2928_v15, 0 }
 0x233   :  { %3584 = vmatpush.msra.mxu3 %v6362_v25  ;;  %3312 = vmatmul.f32.vlgmr.msrb.gmra.mxu2 %v2970_v18  ;;  %v6937_v25 = vand.u32 4294901760, %v6580_v31 }
 0x234   :  { %3422 = vmatpush.msra.mxu0 %v6373_v44  ;;  %3482 = vmatpush.msra.mxu1 %v6419_v5 }
 0x235   :  { %3529 = vmatpush.msra.mxu2 %v3342_v61  ;;  %3586 = vmatpush.msra.mxu3 %v6366_v28  ;;  %v6938_v28 = vand.u32 4294901760, %v6590_v20 }
 0x236   :  { %3413 = vmatmul.f32.vlgmr.msrb.gmra.mxu3 %v6602_v52  ;;  %3425 = vmatpush.msra.mxu0 %v6376_v27  ;;  %v6934_v27 = vand.u32 4294901760, %v6532_v33 }
 0x237   :  { %3484 = vmatpush.msra.mxu1 %v6432_v60  ;;  %3533 = vmatpush.msra.mxu2 %v3348_v1 }
 0x238   :  { %3588 = vmatpush.msra.mxu3 %v6400_v57  ;;  %3428 = vmatpush.msra.mxu0 %v6384_v54 }
 0x239   :  { %3486 = vmatpush.msra.mxu1 %v6448_v36  ;;  %3537 = vmatpush.msra.mxu2 %v3354_v3 }
 0x23a   :  { %3590 = vmatpush.msra.mxu3 %v6419_v5  ;;  %3234 = vmatmul.f32.vlgmr.msrb.gmra.mxu0 %v6602_v52  ;;  %v2931_v5 = vperm.slane %v2928_v15, 1 }
 0x23b   :  { %3431 = vmatpush.msra.mxu0 %v6422_v19  ;;  %3488 = vmatpush.msra.mxu1 %v6464_v26 }
 0x23c   :  { %3541 = vmatpush.msra.mxu2 %v3360_v59  ;;  %3592 = vmatpush.msra.mxu3 %v6432_v60 }
 0x23d   :  { %3434 = vmatpush.msra.mxu0 %v6435_v11  ;;  %3490 = vmatpush.msra.mxu1 %v6479_v39 }
 0x23e   :  { %3545 = vmatpush.msra.mxu2 %v3366_v43  ;;  %3594 = vmatpush.msra.mxu3 %v6448_v36 }
 0x23f   :  { %3437 = vmatpush.msra.mxu0 %v6451_v47  ;;  %3492 = vmatpush.msra.mxu1 %v6493_v35 }
 0x240   :  { %3549 = vmatpush.msra.mxu2 %v3372_v62  ;;  %3596 = vmatpush.msra.mxu3 %v6464_v26  ;;  %v3622_v62 = vlaneseq }
 0x241   :  { %3440 = vmatpush.msra.mxu0 %v6468_v10  ;;  %3494 = vmatpush.msra.mxu1 %v6512_v24 }
 0x242   :  { %3553 = vmatpush.msra.mxu2 %v3378_v55  ;;  %3598 = vmatpush.msra.mxu3 %v6479_v39  ;;  %vm3624_vm1 = vcmp.lt.s32.totalorder %v3622_v62, 256 }
 0x243   :  { %3443 = vmatpush.msra.mxu0 %v6482_v6  ;;  %3496 = vmatpush.msra.mxu1 %v6528_v7 }
 0x244   :  { %3557 = vmatpush.msra.mxu2 %v6934_v27  ;;  %3600 = vmatpush.msra.mxu3 %v6493_v35 }
 0x245   :  { %3446 = vmatpush.msra.mxu0 %v6496_v29  ;;  %3498 = vmatpush.msra.mxu1 %v6541_v8 }
 0x246   :  { %3561 = vmatpush.msra.mxu2 %v6935_v23  ;;  %3602 = vmatpush.msra.mxu3 %v6512_v24 }
 0x247   :  { %3449 = vmatpush.msra.mxu0 %v6515_v45  ;;  %3500 = vmatpush.msra.mxu1 %v6555_v63 }
 0x248   :  { %3565 = vmatpush.msra.mxu2 %v6936_v2  ;;  %3604 = vmatpush.msra.mxu3 %v6528_v7 }
 0x249   :  { %3452 = vmatpush.msra.mxu0 %v6532_v33  ;;  %3502 = vmatpush.msra.mxu1 %v6577_v49 }
 0x24a   :  { %3569 = vmatpush.msra.mxu2 %v6937_v25  ;;  %3606 = vmatpush.msra.mxu3 %v6541_v8 }
 0x24b   :  { %3506 = vmatmul.f32.vlgmr.msra.gmra.mxu1 %v6611_v46  ;;  %3455 = vmatpush.msra.mxu0 %v6544_v42 }
 0x24c   :  { %3573 = vmatpush.msra.mxu2 %v6938_v28  ;;  %3608 = vmatpush.msra.mxu3 %v6555_v63 }
 0x24d   :  { %3575 = vmatmul.f32.vlgmr.msra.gmra.mxu2 %v6602_v52  ;;  %3458 = vmatpush.msra.mxu0 %v6558_v21 }
 0x24e   :  { %3610 = vmatpush.msra.mxu3 %v6577_v49 }
 0x24f   :  { %3612 = vmatmul.f32.vlgmr.msra.gmra.mxu3 %v6602_v52  ;;  %3461 = vmatpush.msra.mxu0 %v6580_v31 }
 0x251   :  { %3464 = vmatpush.msra.mxu0 %v6590_v20 }
 0x252   :  { %3467 = vmatmul.f32.vlgmr.msra.gmra.mxu0 %v6605_v16 }
 0x2a5   :  { %v3073_v4 = vpop.f32.mrf.mxu1 }
 0x2ad   :  { %v2972_v44 = vpop.f32.mrf.mxu0  ;;  %v3127_v54 = vpop.f32.mrf.mxu2 }
 0x2ae   :  { %v2973_v57 = vadd.f32 %v2972_v44, %v2930_v30  ;;  %v3272_v11 = vpop.f32.mrf.mxu1 }
 0x2af   :  { %v3166_v22 = vpop.f32.mrf.mxu3 }
 0x2b0   :  { %v3074_v60 = vadd.f32 %v3073_v4, %v2973_v57 }
 0x2b2   :  { %v3128_v47 = vadd.f32 %v3127_v54, %v3074_v60 }
 0x2b4   :  { %v3167_v10 = vadd.f32 %v3166_v22, %v3128_v47 }
 0x2b6   :  { %v3313_v61 = vpop.f32.mrf.mxu2 }
 0x2b7   :  { %v3235_v19 = vpop.f32.mrf.mxu0  ;;  %v3314_v1 = vadd.f32 %v3313_v61, %v2931_v5 }
 0x2b8   :  { %v3236_v35 = vadd.f32 %v3235_v19, %v3167_v10 }
 0x2b9   :  { %v3414_v36 = vpop.f32.mrf.mxu3 }
 0x2ba   :  { %v3415_v3 = vadd.f32 %v3414_v36, %v3314_v1  ;;  %v3273_v55 = vadd.f32 %v3272_v11, %v3236_v35 }
 0x2c8   :  { %v3507_v6 = vpop.f32.mrf.mxu1 }
 0x2cf   :  { %v3468_v26 = vpop.f32.mrf.mxu0 }
 0x2d0   :  { %v3469_v39 = vadd.f32 %v3468_v26, %v3415_v3  ;;  %v3576_v43 = vpop.f32.mrf.mxu2 }
 0x2d2   :  { %v3508_v59 = vadd.f32 %v3507_v6, %v3469_v39  ;;  %v3613_v24 = vpop.f32.mrf.mxu3 }
 0x2d4   :  { %v3577_v29 = vadd.f32 %v3576_v43, %v3508_v59 }
 0x2d6   :  { %v3614_v45 = vadd.f32 %v3613_v24, %v3577_v29 }
 0x2d8   :  { %v3618_v7 = vrot.slane %v3614_v45, 7 }
 0x2da   :  { %v3620_v33 = vsel %vm3619_vm0, %v3273_v55, %v3618_v7 }
 0x2db   :  { %3626 = vst.msk [vmem:[%s6713_s5] sm:$0x3] %vm3624_vm1, %v3620_v33 }

</bundles_post_ra>
